<compile_context>
chip_gen: v7x
topology: tpu7x:2x2x1
jax: 0.10.0
libtpu: 0.0.40
codegen_flags: <defaults>
</compile_context>

<pallas_src>
import functools

import jax
import jax.numpy as jnp
from jax import lax
from jax.experimental import pallas as pl
from jax.experimental.pallas import tpu as pltpu


# ----------------------------------------------------------------------------
# Fused kernel: T-step LSTM + Bahdanau attention recurrence, then flattened
# penult + tied projection + log_softmax epilogue.  grid=(1,).
# ----------------------------------------------------------------------------
def _fused_decoder_kernel(
    x_ref,        # (T, B, EZ)      embedded trg words cat z
    h0_ref,       # (B, H)          initial hidden
    c0_ref,       # (B, H)          initial cell
    annot_ref,    # (S, B, 2H)      annotations (= encoded_src)
    ascore_ref,   # (S, B, H)       attn_annot(enc) + b_annot + b_ah (precomputed)
    w_lstm_ref,   # (EZ+2H+H, 4H)   fused [W_x||z ; W_ctx ; W_hh], gate order i,f,g,o
    b_lstm_ref,   # (1, 4H)         b_ih + b_hh
    w_ah_ref,     # (H, H)          attn_hidden weight (bias folded into ascore)
    w_o_ref,      # (1, H)          "other" Linear(H,1) weight (bias cancels in softmax)
    w_ph_ref,     # (H, E)          penult weight, rows acting on LSTM output
    w_pc_ref,     # (2H, E)         penult weight, rows acting on context
    b_p_ref,      # (1, E)
    w_out_ref,    # (E, Vp)         tied output weight, lane-padded
    b_out_ref,    # (1, Vp)         output bias, padded columns = -1e30
    scores_ref,   # out (T*B, Vp)   log-softmax scores (lane-dense)
    h_fin_ref,    # out (B, H)
    c_fin_ref,    # out (B, H)
    h_sc,         # VMEM (B, H)     hidden carry
    c_sc,         # VMEM (B, H)     cell carry
    ctx_sc,       # VMEM (B, 2H)    context carry
    outs_sc,      # VMEM (T*B, H)   per-step LSTM outputs stash
    ctxs_sc,      # VMEM (T*B, 2H)  per-step contexts stash
    *,
    hidden_size,
    n_steps,
    batch,
):
    H, T, B = hidden_size, n_steps, batch

    # ---- init recurrent state (kept in VMEM scratch; outputs written once
    # ---- after the loop — no per-step output-ref revisit traffic)
    h_sc[...] = h0_ref[...]
    c_sc[...] = c0_ref[...]
    ctx_sc[...] = jnp.zeros_like(ctx_sc)

    # ---- loop invariants hoisted out of the timestep loop (broadcasts are
    # ---- not CSE'd inside loops, so materialize them once here)
    annot = annot_ref[...]                                    # (S, B, 2H)
    ascore = ascore_ref[...]                                  # (S, B, H)
    w_lstm = w_lstm_ref[...]
    b_lstm = b_lstm_ref[...]
    w_ah = w_ah_ref[...]
    S = annot.shape[0]
    w_o_b = jnp.broadcast_to(w_o_ref[...][None, :, :], (S, B, H))

    def step(t, carry):
        x_t = x_ref[t]                                        # (B, EZ)
        h = h_sc[...]
        c = c_sc[...]
        ctx = ctx_sc[...]

        # ---- fused LSTM cell: gates = [x || ctx || h] @ W_fused + b
        inp = jnp.concatenate([x_t, ctx, h], axis=-1)         # (B, EZ+2H+H)
        gates = (jnp.dot(inp, w_lstm, preferred_element_type=jnp.float32)
                 + b_lstm)                                    # (B, 4H)
        i_g = jax.nn.sigmoid(gates[:, 0 * H:1 * H])
        f_g = jax.nn.sigmoid(gates[:, 1 * H:2 * H])
        g_g = jnp.tanh(gates[:, 2 * H:3 * H])
        o_g = jax.nn.sigmoid(gates[:, 3 * H:4 * H])
        c_new = f_g * c + i_g * g_g
        h_new = o_g * jnp.tanh(c_new)                         # (B, H)

        # ---- Bahdanau attention (attn_hidden bias already folded into ascore;
        # ---- the scalar `other` bias cancels in the softmax over source pos.)
        hid = jnp.dot(h_new, w_ah, preferred_element_type=jnp.float32)  # (B, H)
        tanh_val = jnp.tanh(hid[None, :, :] + ascore)         # (S, B, H)
        e = jnp.sum(tanh_val * w_o_b, axis=-1, keepdims=True)  # (S, B, 1)
        e = e - jnp.max(e, axis=0, keepdims=True)
        p = jnp.exp(e)
        attn = p / jnp.sum(p, axis=0, keepdims=True)          # (S, B, 1)
        new_ctx = jnp.sum(attn * annot, axis=0)               # (B, 2H)

        # ---- update carries + stash for the fused projection epilogue
        h_sc[...] = h_new
        c_sc[...] = c_new
        ctx_sc[...] = new_ctx
        row = pl.multiple_of(t * B, 8)                        # B padded to 8k
        outs_sc[pl.ds(row, B), :] = h_new
        ctxs_sc[pl.ds(row, B), :] = new_ctx
        return carry

    lax.fori_loop(0, T, step, 0, unroll=True)

    h_fin_ref[...] = h_sc[...]
    c_fin_ref[...] = c_sc[...]

    # ---- fused projection epilogue on flattened (T*B, .) activations
    outs = outs_sc[...]                                       # (T*B, H)
    ctxs = ctxs_sc[...]                                       # (T*B, 2H)
    pen = (jnp.dot(outs, w_ph_ref[...], preferred_element_type=jnp.float32)
           + jnp.dot(ctxs, w_pc_ref[...], preferred_element_type=jnp.float32)
           + b_p_ref[...])                                    # (T*B, E)
    logits = (jnp.dot(pen, w_out_ref[...], preferred_element_type=jnp.float32)
              + b_out_ref[...])                               # (T*B, Vp)
    m = jnp.max(logits, axis=-1, keepdims=True)
    shifted = logits - m
    lse = jnp.log(jnp.sum(jnp.exp(shifted), axis=-1, keepdims=True))
    scores_ref[...] = (shifted - lse).astype(scores_ref.dtype)


# ----------------------------------------------------------------------------
# pallas_call wrapper
# ----------------------------------------------------------------------------
def _decoder_pallas(x, h0, c0, annot, ascore, w_lstm, b_lstm, w_ah, w_o,
                    w_ph, w_pc, b_p, w_out_p, b_out_p):
    T, B, EZ = x.shape
    S = annot.shape[0]
    H = h0.shape[1]
    E = w_ph.shape[1]
    Vp = w_out_p.shape[1]
    IN = w_lstm.shape[0]

    grid_spec = pltpu.PrefetchScalarGridSpec(
        num_scalar_prefetch=0,
        grid=(1,),
        in_specs=[
            pl.BlockSpec((T, B, EZ), lambda i: (0, 0, 0)),      # x
            pl.BlockSpec((B, H), lambda i: (0, 0)),             # h0
            pl.BlockSpec((B, H), lambda i: (0, 0)),             # c0
            pl.BlockSpec((S, B, 2 * H), lambda i: (0, 0, 0)),   # annotations
            pl.BlockSpec((S, B, H), lambda i: (0, 0, 0)),       # annot_scores
            pl.BlockSpec((IN, 4 * H), lambda i: (0, 0)),        # fused LSTM W
            pl.BlockSpec((1, 4 * H), lambda i: (0, 0)),         # LSTM bias
            pl.BlockSpec((H, H), lambda i: (0, 0)),             # attn_hidden W
            pl.BlockSpec((1, H), lambda i: (0, 0)),             # other W
            pl.BlockSpec((H, E), lambda i: (0, 0)),             # penult W (out part)
            pl.BlockSpec((2 * H, E), lambda i: (0, 0)),         # penult W (ctx part)
            pl.BlockSpec((1, E), lambda i: (0, 0)),             # penult bias
            pl.BlockSpec((E, Vp), lambda i: (0, 0)),            # tied out W (padded)
            pl.BlockSpec((1, Vp), lambda i: (0, 0)),            # out bias (padded)
        ],
        out_specs=(
            pl.BlockSpec((T * B, Vp), lambda i: (0, 0)),        # scores (flat)
            pl.BlockSpec((B, H), lambda i: (0, 0)),             # h_final
            pl.BlockSpec((B, H), lambda i: (0, 0)),             # c_final
        ),
        scratch_shapes=[
            pltpu.VMEM((B, H), jnp.float32),                    # h carry
            pltpu.VMEM((B, H), jnp.float32),                    # c carry
            pltpu.VMEM((B, 2 * H), jnp.float32),                # ctx carry
            pltpu.VMEM((T * B, H), jnp.float32),                # outs stash
            pltpu.VMEM((T * B, 2 * H), jnp.float32),            # ctxs stash
        ],
    )
    kernel = functools.partial(
        _fused_decoder_kernel, hidden_size=H, n_steps=T, batch=B)
    return pl.pallas_call(
        kernel,
        grid_spec=grid_spec,
        out_shape=(
            jax.ShapeDtypeStruct((T * B, Vp), jnp.float32),
            jax.ShapeDtypeStruct((B, H), jnp.float32),
            jax.ShapeDtypeStruct((B, H), jnp.float32),
        ),
        compiler_params=pltpu.CompilerParams(
            dimension_semantics=("arbitrary",)),
    )(x, h0, c0, annot, ascore, w_lstm, b_lstm, w_ah, w_o,
      w_ph, w_pc, b_p, w_out_p, b_out_p)


def _pad_axis(a, axis, new_size):
    if a.shape[axis] == new_size:
        return a
    pads = [(0, 0)] * a.ndim
    pads[axis] = (0, new_size - a.shape[axis])
    return jnp.pad(a, pads)


def bahdanau_attn_decoder_forward(trg, z, encoded_src, params, hidden=None):
    """Equivalent of BahdanauAttnDecoder.forward (eval mode, num_layers=1)."""
    T, B = trg.shape
    H = params["w_hh"].shape[0]
    Z = z.shape[1]
    V, E = params["embedding"].shape
    S = encoded_src.shape[0]

    # glue: embedding gather + latent concat (per forward())
    emb = jnp.take(params["embedding"], trg, axis=0)                 # (T, B, E)
    x = jnp.concatenate(
        [emb, jnp.broadcast_to(z[None], (T, B, Z))], axis=2
    ).astype(jnp.float32)                                            # (T, B, E+Z)

    if hidden is None:
        h0 = jnp.zeros((B, H), jnp.float32)
        c0 = jnp.zeros((B, H), jnp.float32)
    else:
        h0, c0 = hidden[0][0], hidden[1][0]

    enc = encoded_src.astype(jnp.float32)
    # annot_scores precomputed once (attn_hidden bias folded in)
    ascore = enc @ params["w_annot"] + params["b_annot"] + params["b_ah"]

    # fused LSTM input weight acting on [emb||z || ctx || h]
    w_lstm = jnp.concatenate(
        [params["w_xz"], params["w_ctx"], params["w_hh"]], axis=0)

    # lane-pad the tied output projection to a multiple of 128 lanes
    Vp = ((V + 127) // 128) * 128
    w_out_p = jnp.zeros((E, Vp), jnp.float32).at[:, :V].set(params["embedding"].T)
    b_out_p = jnp.full((1, Vp), -1e30, jnp.float32).at[:, :V].set(params["b_out"])

    # pad batch to a multiple of 8 so per-step stash stores are sublane-aligned
    Bp = ((B + 7) // 8) * 8
    x_p = _pad_axis(x, 1, Bp)
    h0_p = _pad_axis(h0, 0, Bp)
    c0_p = _pad_axis(c0, 0, Bp)
    enc_p = _pad_axis(enc, 1, Bp)
    ascore_p = _pad_axis(ascore, 1, Bp)

    scores_flat, h_fin, c_fin = _decoder_pallas(
        x_p, h0_p, c0_p, enc_p, ascore_p, w_lstm, params["b_lstm"],
        params["w_ah"], params["w_o"], params["w_p_h"], params["w_p_c"],
        params["b_p"], w_out_p, b_out_p)

    scores = scores_flat.reshape(T, Bp, Vp)[:, :B, :V]
    return scores, (h_fin[:B][None], c_fin[:B][None])


# ----------------------------------------------------------------------------
# Deterministic synthetic parameters + pure-JAX reference for verification
# ----------------------------------------------------------------------------
def init_params(key, vocab_size, embed_size, hidden_size, latent_size):
    V, E, H, Z = vocab_size, embed_size, hidden_size, latent_size
    ks = jax.random.split(key, 15)

    def w(k, shape, fan_in):
        return jax.random.normal(k, shape, jnp.float32) / jnp.sqrt(float(fan_in))

    lstm_in = E + Z + 2 * H
    return {
        "embedding": w(ks[0], (V, E), E),             # nn.Embedding / tied out.weight
        "w_xz":   w(ks[1], (E + Z, 4 * H), lstm_in),  # LSTM W_ih (split), (in, 4H)
        "w_ctx":  w(ks[2], (2 * H, 4 * H), lstm_in),
        "w_hh":   w(ks[3], (H, 4 * H), H),
        "b_lstm": w(ks[4], (1, 4 * H), H),            # b_ih + b_hh combined
        "w_annot": w(ks[5], (2 * H, H), 2 * H),       # attn_annot
        "b_annot": w(ks[6], (1, H), 2 * H),
        "w_ah":   w(ks[7], (H, H), H),                # attn_hidden
        "b_ah":   w(ks[8], (1, H), H),
        "w_o":    w(ks[9], (1, H), H),                # other (Linear(H, 1))
        "b_o":    w(ks[10], (1, 1), H),               # used only by reference (cancels)
        "w_p_h":  w(ks[11], (H, E), 3 * H),           # penult (split: [out||ctx])
        "w_p_c":  w(ks[12], (2 * H, E), 3 * H),
        "b_p":    w(ks[13], (1, E), 3 * H),
        "b_out":  w(ks[14], (1, V), E),               # out bias (weight is tied)
    }


def reference_forward(trg, z, encoded_src, params, hidden=None):
    T, B = trg.shape
    Z = z.shape[1]
    H = params["w_hh"].shape[0]
    emb = params["embedding"][trg]
    x = jnp.concatenate([emb, jnp.broadcast_to(z[None], (T, B, Z))], axis=2)
    ascore = encoded_src @ params["w_annot"] + params["b_annot"]     # (S,B,H)
    if hidden is None:
        h = jnp.zeros((B, H), jnp.float32)
        c = jnp.zeros((B, H), jnp.float32)
    else:
        h, c = hidden[0][0], hidden[1][0]
    ctx = jnp.zeros((B, encoded_src.shape[-1]), jnp.float32)
    outs, ctxs = [], []
    for t in range(T):
        gates = (x[t] @ params["w_xz"] + ctx @ params["w_ctx"]
                 + h @ params["w_hh"] + params["b_lstm"])
        i_g = jax.nn.sigmoid(gates[:, :H])
        f_g = jax.nn.sigmoid(gates[:, H:2 * H])
        g_g = jnp.tanh(gates[:, 2 * H:3 * H])
        o_g = jax.nn.sigmoid(gates[:, 3 * H:])
        c = f_g * c + i_g * g_g
        h = o_g * jnp.tanh(c)
        hs = h @ params["w_ah"] + params["b_ah"]
        e = (jnp.sum(jnp.tanh(hs[None] + ascore) * params["w_o"][None], axis=-1)
             + params["b_o"][0, 0])                                  # (S, B)
        a = jax.nn.softmax(e, axis=0)
        ctx = jnp.sum(a[:, :, None] * encoded_src, axis=0)
        outs.append(h)
        ctxs.append(ctx)
    outs = jnp.stack(outs)
    ctxs = jnp.stack(ctxs)
    pen = outs @ params["w_p_h"] + ctxs @ params["w_p_c"] + params["b_p"]
    logits = pen @ params["embedding"].T + params["b_out"]
    scores = jax.nn.log_softmax(logits, axis=2)
    return scores, (h[None], c[None])


if __name__ == "__main__":
    # Small shapes consistent with the module.
    VOCAB, EMBED, HIDDEN, LATENT = 64, 32, 32, 16
    T, S, B = 6, 10, 8

    key = jax.random.PRNGKey(0)
    kp, kt, kz, ke = jax.random.split(key, 4)
    params = init_params(kp, VOCAB, EMBED, HIDDEN, LATENT)

    trg = jax.random.randint(kt, (T, B), 0, VOCAB, dtype=jnp.int32)
    z = jax.random.normal(kz, (B, LATENT), jnp.float32)
    encoded_src = jax.random.normal(ke, (S, B, 2 * HIDDEN), jnp.float32)

    fwd = jax.jit(bahdanau_attn_decoder_forward)
    scores, (h_n, c_n) = jax.block_until_ready(
        fwd(trg, z, encoded_src, params))

    ref_scores, (ref_h, ref_c) = reference_forward(trg, z, encoded_src, params)

    assert scores.shape == (T, B, VOCAB)
    assert h_n.shape == (1, B, HIDDEN) and c_n.shape == (1, B, HIDDEN)
    assert float(jnp.max(jnp.abs(scores - ref_scores))) < 1e-4
    assert float(jnp.max(jnp.abs(h_n - ref_h))) < 1e-4
    assert float(jnp.max(jnp.abs(c_n - ref_c))) < 1e-4
    print("KERNEL_OK")
</pallas_src>

<mosaic_0001>
module attributes {stable_mosaic.version = 11 : i64} {
  func.func @_fused_decoder_kernel(%arg0: i32, %arg1: memref<6x8x48xf32, #tpu.memory_space<vmem>>, %arg2: memref<8x32xf32, #tpu.memory_space<vmem>>, %arg3: memref<8x32xf32, #tpu.memory_space<vmem>>, %arg4: memref<10x8x64xf32, #tpu.memory_space<vmem>>, %arg5: memref<10x8x32xf32, #tpu.memory_space<vmem>>, %arg6: memref<144x128xf32, #tpu.memory_space<vmem>>, %arg7: memref<1x128xf32, #tpu.memory_space<vmem>>, %arg8: memref<32x32xf32, #tpu.memory_space<vmem>>, %arg9: memref<1x32xf32, #tpu.memory_space<vmem>>, %arg10: memref<32x32xf32, #tpu.memory_space<vmem>>, %arg11: memref<64x32xf32, #tpu.memory_space<vmem>>, %arg12: memref<1x32xf32, #tpu.memory_space<vmem>>, %arg13: memref<32x128xf32, #tpu.memory_space<vmem>>, %arg14: memref<1x128xf32, #tpu.memory_space<vmem>>, %arg15: memref<48x128xf32, #tpu.memory_space<vmem>>, %arg16: memref<8x32xf32, #tpu.memory_space<vmem>>, %arg17: memref<8x32xf32, #tpu.memory_space<vmem>>, %arg18: memref<8x32xf32, #tpu.memory_space<vmem>>, %arg19: memref<8x32xf32, #tpu.memory_space<vmem>>, %arg20: memref<8x64xf32, #tpu.memory_space<vmem>>, %arg21: memref<48x32xf32, #tpu.memory_space<vmem>>, %arg22: memref<48x64xf32, #tpu.memory_space<vmem>>) attributes {dimension_semantics = [#tpu.dimension_semantics<arbitrary>], iteration_bounds = array<i64: 1>, scalar_prefetch = 0 : i64, scratch_operands = 5 : i64, tpu.core_type = #tpu.core_type<tc>, window_params = [{pipeline_mode = #tpu.pipeline_mode<synchronous>, transform_indices = @transform_0, window_bounds = array<i64: 6, 8, 48>}, {pipeline_mode = #tpu.pipeline_mode<synchronous>, transform_indices = @transform_1, window_bounds = array<i64: 8, 32>}, {pipeline_mode = #tpu.pipeline_mode<synchronous>, transform_indices = @transform_2, window_bounds = array<i64: 8, 32>}, {pipeline_mode = #tpu.pipeline_mode<synchronous>, transform_indices = @transform_3, window_bounds = array<i64: 10, 8, 64>}, {pipeline_mode = #tpu.pipeline_mode<synchronous>, transform_indices = @transform_4, window_bounds = array<i64: 10, 8, 32>}, {pipeline_mode = #tpu.pipeline_mode<synchronous>, transform_indices = @transform_5, window_bounds = array<i64: 144, 128>}, {pipeline_mode = #tpu.pipeline_mode<synchronous>, transform_indices = @transform_6, window_bounds = array<i64: 1, 128>}, {pipeline_mode = #tpu.pipeline_mode<synchronous>, transform_indices = @transform_7, window_bounds = array<i64: 32, 32>}, {pipeline_mode = #tpu.pipeline_mode<synchronous>, transform_indices = @transform_8, window_bounds = array<i64: 1, 32>}, {pipeline_mode = #tpu.pipeline_mode<synchronous>, transform_indices = @transform_9, window_bounds = array<i64: 32, 32>}, {pipeline_mode = #tpu.pipeline_mode<synchronous>, transform_indices = @transform_10, window_bounds = array<i64: 64, 32>}, {pipeline_mode = #tpu.pipeline_mode<synchronous>, transform_indices = @transform_11, window_bounds = array<i64: 1, 32>}, {pipeline_mode = #tpu.pipeline_mode<synchronous>, transform_indices = @transform_12, window_bounds = array<i64: 32, 128>}, {pipeline_mode = #tpu.pipeline_mode<synchronous>, transform_indices = @transform_13, window_bounds = array<i64: 1, 128>}, {pipeline_mode = #tpu.pipeline_mode<synchronous>, transform_indices = @transform_14, window_bounds = array<i64: 48, 128>}, {pipeline_mode = #tpu.pipeline_mode<synchronous>, transform_indices = @transform_15, window_bounds = array<i64: 8, 32>}, {pipeline_mode = #tpu.pipeline_mode<synchronous>, transform_indices = @transform_16, window_bounds = array<i64: 8, 32>}]} {
    %c0 = arith.constant 0 : index
    %c0_0 = arith.constant 0 : index
    %0 = vector.load %arg2[%c0, %c0_0] : memref<8x32xf32, #tpu.memory_space<vmem>>, vector<8x32xf32>
    %c0_1 = arith.constant 0 : index
    %c0_2 = arith.constant 0 : index
    %1 = vector.load %arg18[%c0_1, %c0_2] : memref<8x32xf32, #tpu.memory_space<vmem>>, vector<8x32xf32>
    tpu.vector_store %arg18[%c0_1, %c0_2], %0 {strides = array<i32>} : memref<8x32xf32, #tpu.memory_space<vmem>>, vector<8x32xf32>,
    %c0_3 = arith.constant 0 : index
    %c0_4 = arith.constant 0 : index
    %2 = vector.load %arg3[%c0_3, %c0_4] : memref<8x32xf32, #tpu.memory_space<vmem>>, vector<8x32xf32>
    %c0_5 = arith.constant 0 : index
    %c0_6 = arith.constant 0 : index
    %3 = vector.load %arg19[%c0_5, %c0_6] : memref<8x32xf32, #tpu.memory_space<vmem>>, vector<8x32xf32>
    tpu.vector_store %arg19[%c0_5, %c0_6], %2 {strides = array<i32>} : memref<8x32xf32, #tpu.memory_space<vmem>>, vector<8x32xf32>,
    %cst = arith.constant 0.000000e+00 : f32
    %4 = vector.broadcast %cst : f32 to vector<8x64xf32>
    %c0_7 = arith.constant 0 : index
    %c0_8 = arith.constant 0 : index
    %5 = vector.load %arg20[%c0_7, %c0_8] : memref<8x64xf32, #tpu.memory_space<vmem>>, vector<8x64xf32>
    tpu.vector_store %arg20[%c0_7, %c0_8], %4 {strides = array<i32>} : memref<8x64xf32, #tpu.memory_space<vmem>>, vector<8x64xf32>,
    %c0_9 = arith.constant 0 : index
    %c0_10 = arith.constant 0 : index
    %c0_11 = arith.constant 0 : index
    %6 = vector.load %arg4[%c0_9, %c0_10, %c0_11] : memref<10x8x64xf32, #tpu.memory_space<vmem>>, vector<10x8x64xf32>
    %c0_12 = arith.constant 0 : index
    %c0_13 = arith.constant 0 : index
    %c0_14 = arith.constant 0 : index
    %7 = vector.load %arg5[%c0_12, %c0_13, %c0_14] : memref<10x8x32xf32, #tpu.memory_space<vmem>>, vector<10x8x32xf32>
    %c0_15 = arith.constant 0 : index
    %c0_16 = arith.constant 0 : index
    %8 = vector.load %arg6[%c0_15, %c0_16] : memref<144x128xf32, #tpu.memory_space<vmem>>, vector<144x128xf32>
    %c0_17 = arith.constant 0 : index
    %c0_18 = arith.constant 0 : index
    %9 = vector.load %arg7[%c0_17, %c0_18] : memref<1x128xf32, #tpu.memory_space<vmem>>, vector<1x128xf32>
    %c0_19 = arith.constant 0 : index
    %c0_20 = arith.constant 0 : index
    %10 = vector.load %arg8[%c0_19, %c0_20] : memref<32x32xf32, #tpu.memory_space<vmem>>, vector<32x32xf32>
    %c0_21 = arith.constant 0 : index
    %c0_22 = arith.constant 0 : index
    %11 = vector.load %arg9[%c0_21, %c0_22] : memref<1x32xf32, #tpu.memory_space<vmem>>, vector<1x32xf32>
    %12 = vector.shape_cast %11 : vector<1x32xf32> to vector<1x1x32xf32>
    %13 = vector.shape_cast %12 : vector<1x1x32xf32> to vector<1x1x32xf32>
    %14 = vector.broadcast %13 : vector<1x1x32xf32> to vector<10x8x32xf32>
    %c0_i32 = arith.constant 0 : i32
    %15 = arith.index_cast %c0_i32 : i32 to index
    %c0_23 = arith.constant 0 : index
    %c0_24 = arith.constant 0 : index
    %16 = vector.load %arg1[%15, %c0_23, %c0_24] : memref<6x8x48xf32, #tpu.memory_space<vmem>>, vector<1x8x48xf32>
    %17 = vector.shape_cast %16 : vector<1x8x48xf32> to vector<8x48xf32>
    %c0_25 = arith.constant 0 : index
    %c0_26 = arith.constant 0 : index
    %18 = vector.load %arg18[%c0_25, %c0_26] : memref<8x32xf32, #tpu.memory_space<vmem>>, vector<8x32xf32>
    %c0_27 = arith.constant 0 : index
    %c0_28 = arith.constant 0 : index
    %19 = vector.load %arg19[%c0_27, %c0_28] : memref<8x32xf32, #tpu.memory_space<vmem>>, vector<8x32xf32>
    %c0_29 = arith.constant 0 : index
    %c0_30 = arith.constant 0 : index
    %20 = vector.load %arg20[%c0_29, %c0_30] : memref<8x64xf32, #tpu.memory_space<vmem>>, vector<8x64xf32>
    %21 = tpu.concatenate %17, %20, %18 in 1 : vector<8x48xf32>, vector<8x64xf32>, vector<8x32xf32> -> vector<8x144xf32>
    %cst_31 = arith.constant dense<0.000000e+00> : vector<8x128xf32>
    %22 = tpu.matmul %21, %8, %cst_31 {dimension_numbers = #tpu.dot_dimension_numbers<[1], [0], [0], [1], [0, 0, 1, 1], [], []>} : vector<8x144xf32>, vector<144x128xf32>, vector<8x128xf32> -> vector<8x128xf32>
    %23 = vector.broadcast %9 : vector<1x128xf32> to vector<8x128xf32>
    %24 = arith.addf %22, %23 : vector<8x128xf32>
    %25 = vector.extract_strided_slice %24 {offsets = [0, 0], sizes = [8, 32], strides = [1, 1]} : vector<8x128xf32> to vector<8x32xf32>
    %26 = arith.negf %25 : vector<8x32xf32>
    %27 = math.exp %26 : vector<8x32xf32>
    %cst_32 = arith.constant 1.000000e+00 : f32
    %28 = vector.broadcast %cst_32 : f32 to vector<8x32xf32>
    %29 = arith.addf %28, %27 : vector<8x32xf32>
    %30 = arith.divf %28, %29 : vector<8x32xf32>
    %31 = vector.extract_strided_slice %24 {offsets = [0, 32], sizes = [8, 32], strides = [1, 1]} : vector<8x128xf32> to vector<8x32xf32>
    %32 = arith.negf %31 : vector<8x32xf32>
    %33 = math.exp %32 : vector<8x32xf32>
    %cst_33 = arith.constant 1.000000e+00 : f32
    %34 = vector.broadcast %cst_33 : f32 to vector<8x32xf32>
    %35 = arith.addf %34, %33 : vector<8x32xf32>
    %36 = arith.divf %34, %35 : vector<8x32xf32>
    %37 = vector.extract_strided_slice %24 {offsets = [0, 64], sizes = [8, 32], strides = [1, 1]} : vector<8x128xf32> to vector<8x32xf32>
    %38 = math.tanh %37 : vector<8x32xf32>
    %39 = vector.extract_strided_slice %24 {offsets = [0, 96], sizes = [8, 32], strides = [1, 1]} : vector<8x128xf32> to vector<8x32xf32>
    %40 = arith.negf %39 : vector<8x32xf32>
    %41 = math.exp %40 : vector<8x32xf32>
    %cst_34 = arith.constant 1.000000e+00 : f32
    %42 = vector.broadcast %cst_34 : f32 to vector<8x32xf32>
    %43 = arith.addf %42, %41 : vector<8x32xf32>
    %44 = arith.divf %42, %43 : vector<8x32xf32>
    %45 = arith.mulf %36, %19 : vector<8x32xf32>
    %46 = arith.mulf %30, %38 : vector<8x32xf32>
    %47 = arith.addf %45, %46 : vector<8x32xf32>
    %48 = math.tanh %47 : vector<8x32xf32>
    %49 = arith.mulf %44, %48 : vector<8x32xf32>
    %cst_35 = arith.constant dense<0.000000e+00> : vector<8x32xf32>
    %50 = tpu.matmul %49, %10, %cst_35 {dimension_numbers = #tpu.dot_dimension_numbers<[1], [0], [0], [1], [0, 0, 1, 1], [], []>} : vector<8x32xf32>, vector<32x32xf32>, vector<8x32xf32> -> vector<8x32xf32>
    %51 = vector.shape_cast %50 : vector<8x32xf32> to vector<1x8x32xf32>
    %52 = vector.broadcast %51 : vector<1x8x32xf32> to vector<10x8x32xf32>
    %53 = arith.addf %52, %7 : vector<10x8x32xf32>
    %54 = math.tanh %53 : vector<10x8x32xf32>
    %55 = arith.mulf %54, %14 : vector<10x8x32xf32>
    %cst_36 = arith.constant dense<0.000000e+00> : vector<10x8xf32>
    %56 = vector.multi_reduction <add>, %55, %cst_36 [2] : vector<10x8x32xf32> to vector<10x8xf32>
    %57 = vector.shape_cast %56 : vector<10x8xf32> to vector<10x8x1xf32>
    %cst_37 = arith.constant dense<0xFF800000> : vector<8x1xf32>
    %58 = vector.multi_reduction <maximumf>, %57, %cst_37 [0] : vector<10x8x1xf32> to vector<8x1xf32>
    %59 = vector.shape_cast %58 : vector<8x1xf32> to vector<1x8x1xf32>
    %60 = vector.broadcast %59 : vector<1x8x1xf32> to vector<10x8x1xf32>
    %61 = arith.subf %57, %60 : vector<10x8x1xf32>
    %62 = math.exp %61 : vector<10x8x1xf32>
    %cst_38 = arith.constant dense<0.000000e+00> : vector<8x1xf32>
    %63 = vector.multi_reduction <add>, %62, %cst_38 [0] : vector<10x8x1xf32> to vector<8x1xf32>
    %64 = vector.shape_cast %63 : vector<8x1xf32> to vector<1x8x1xf32>
    %65 = vector.broadcast %64 : vector<1x8x1xf32> to vector<10x8x1xf32>
    %66 = arith.divf %62, %65 : vector<10x8x1xf32>
    %67 = vector.broadcast %66 : vector<10x8x1xf32> to vector<10x8x64xf32>
    %68 = arith.mulf %67, %6 : vector<10x8x64xf32>
    %cst_39 = arith.constant dense<0.000000e+00> : vector<8x64xf32>
    %69 = vector.multi_reduction <add>, %68, %cst_39 [0] : vector<10x8x64xf32> to vector<8x64xf32>
    %c0_40 = arith.constant 0 : index
    %c0_41 = arith.constant 0 : index
    %70 = vector.load %arg18[%c0_40, %c0_41] : memref<8x32xf32, #tpu.memory_space<vmem>>, vector<8x32xf32>
    tpu.vector_store %arg18[%c0_40, %c0_41], %49 {strides = array<i32>} : memref<8x32xf32, #tpu.memory_space<vmem>>, vector<8x32xf32>,
    %c0_42 = arith.constant 0 : index
    %c0_43 = arith.constant 0 : index
    %71 = vector.load %arg19[%c0_42, %c0_43] : memref<8x32xf32, #tpu.memory_space<vmem>>, vector<8x32xf32>
    tpu.vector_store %arg19[%c0_42, %c0_43], %47 {strides = array<i32>} : memref<8x32xf32, #tpu.memory_space<vmem>>, vector<8x32xf32>,
    %c0_44 = arith.constant 0 : index
    %c0_45 = arith.constant 0 : index
    %72 = vector.load %arg20[%c0_44, %c0_45] : memref<8x64xf32, #tpu.memory_space<vmem>>, vector<8x64xf32>
    tpu.vector_store %arg20[%c0_44, %c0_45], %69 {strides = array<i32>} : memref<8x64xf32, #tpu.memory_space<vmem>>, vector<8x64xf32>,
    %c8_i32 = arith.constant 8 : i32
    %73 = arith.muli %c0_i32, %c8_i32 : i32
    %74 = tpu.assume_multiple %73, 8 : i32
    %75 = arith.index_cast %74 : i32 to index
    %c0_46 = arith.constant 0 : index
    %76 = vector.load %arg21[%75, %c0_46] : memref<48x32xf32, #tpu.memory_space<vmem>>, vector<8x32xf32>
    tpu.vector_store %arg21[%75, %c0_46], %49 {strides = array<i32>} : memref<48x32xf32, #tpu.memory_space<vmem>>, vector<8x32xf32>,
    %77 = arith.index_cast %74 : i32 to index
    %c0_47 = arith.constant 0 : index
    %78 = vector.load %arg22[%77, %c0_47] : memref<48x64xf32, #tpu.memory_space<vmem>>, vector<8x64xf32>
    tpu.vector_store %arg22[%77, %c0_47], %69 {strides = array<i32>} : memref<48x64xf32, #tpu.memory_space<vmem>>, vector<8x64xf32>,
    %c1_i32 = arith.constant 1 : i32
    %79 = arith.index_cast %c1_i32 : i32 to index
    %c0_48 = arith.constant 0 : index
    %c0_49 = arith.constant 0 : index
    %80 = vector.load %arg1[%79, %c0_48, %c0_49] : memref<6x8x48xf32, #tpu.memory_space<vmem>>, vector<1x8x48xf32>
    %81 = vector.shape_cast %80 : vector<1x8x48xf32> to vector<8x48xf32>
    %c0_50 = arith.constant 0 : index
    %c0_51 = arith.constant 0 : index
    %82 = vector.load %arg18[%c0_50, %c0_51] : memref<8x32xf32, #tpu.memory_space<vmem>>, vector<8x32xf32>
    %c0_52 = arith.constant 0 : index
    %c0_53 = arith.constant 0 : index
    %83 = vector.load %arg19[%c0_52, %c0_53] : memref<8x32xf32, #tpu.memory_space<vmem>>, vector<8x32xf32>
    %c0_54 = arith.constant 0 : index
    %c0_55 = arith.constant 0 : index
    %84 = vector.load %arg20[%c0_54, %c0_55] : memref<8x64xf32, #tpu.memory_space<vmem>>, vector<8x64xf32>
    %85 = tpu.concatenate %81, %84, %82 in 1 : vector<8x48xf32>, vector<8x64xf32>, vector<8x32xf32> -> vector<8x144xf32>
    %cst_56 = arith.constant dense<0.000000e+00> : vector<8x128xf32>
    %86 = tpu.matmul %85, %8, %cst_56 {dimension_numbers = #tpu.dot_dimension_numbers<[1], [0], [0], [1], [0, 0, 1, 1], [], []>} : vector<8x144xf32>, vector<144x128xf32>, vector<8x128xf32> -> vector<8x128xf32>
    %87 = vector.broadcast %9 : vector<1x128xf32> to vector<8x128xf32>
    %88 = arith.addf %86, %87 : vector<8x128xf32>
    %89 = vector.extract_strided_slice %88 {offsets = [0, 0], sizes = [8, 32], strides = [1, 1]} : vector<8x128xf32> to vector<8x32xf32>
    %90 = arith.negf %89 : vector<8x32xf32>
    %91 = math.exp %90 : vector<8x32xf32>
    %cst_57 = arith.constant 1.000000e+00 : f32
    %92 = vector.broadcast %cst_57 : f32 to vector<8x32xf32>
    %93 = arith.addf %92, %91 : vector<8x32xf32>
    %94 = arith.divf %92, %93 : vector<8x32xf32>
    %95 = vector.extract_strided_slice %88 {offsets = [0, 32], sizes = [8, 32], strides = [1, 1]} : vector<8x128xf32> to vector<8x32xf32>
    %96 = arith.negf %95 : vector<8x32xf32>
    %97 = math.exp %96 : vector<8x32xf32>
    %cst_58 = arith.constant 1.000000e+00 : f32
    %98 = vector.broadcast %cst_58 : f32 to vector<8x32xf32>
    %99 = arith.addf %98, %97 : vector<8x32xf32>
    %100 = arith.divf %98, %99 : vector<8x32xf32>
    %101 = vector.extract_strided_slice %88 {offsets = [0, 64], sizes = [8, 32], strides = [1, 1]} : vector<8x128xf32> to vector<8x32xf32>
    %102 = math.tanh %101 : vector<8x32xf32>
    %103 = vector.extract_strided_slice %88 {offsets = [0, 96], sizes = [8, 32], strides = [1, 1]} : vector<8x128xf32> to vector<8x32xf32>
    %104 = arith.negf %103 : vector<8x32xf32>
    %105 = math.exp %104 : vector<8x32xf32>
    %cst_59 = arith.constant 1.000000e+00 : f32
    %106 = vector.broadcast %cst_59 : f32 to vector<8x32xf32>
    %107 = arith.addf %106, %105 : vector<8x32xf32>
    %108 = arith.divf %106, %107 : vector<8x32xf32>
    %109 = arith.mulf %100, %83 : vector<8x32xf32>
    %110 = arith.mulf %94, %102 : vector<8x32xf32>
    %111 = arith.addf %109, %110 : vector<8x32xf32>
    %112 = math.tanh %111 : vector<8x32xf32>
    %113 = arith.mulf %108, %112 : vector<8x32xf32>
    %cst_60 = arith.constant dense<0.000000e+00> : vector<8x32xf32>
    %114 = tpu.matmul %113, %10, %cst_60 {dimension_numbers = #tpu.dot_dimension_numbers<[1], [0], [0], [1], [0, 0, 1, 1], [], []>} : vector<8x32xf32>, vector<32x32xf32>, vector<8x32xf32> -> vector<8x32xf32>
    %115 = vector.shape_cast %114 : vector<8x32xf32> to vector<1x8x32xf32>
    %116 = vector.broadcast %115 : vector<1x8x32xf32> to vector<10x8x32xf32>
    %117 = arith.addf %116, %7 : vector<10x8x32xf32>
    %118 = math.tanh %117 : vector<10x8x32xf32>
    %119 = arith.mulf %118, %14 : vector<10x8x32xf32>
    %cst_61 = arith.constant dense<0.000000e+00> : vector<10x8xf32>
    %120 = vector.multi_reduction <add>, %119, %cst_61 [2] : vector<10x8x32xf32> to vector<10x8xf32>
    %121 = vector.shape_cast %120 : vector<10x8xf32> to vector<10x8x1xf32>
    %cst_62 = arith.constant dense<0xFF800000> : vector<8x1xf32>
    %122 = vector.multi_reduction <maximumf>, %121, %cst_62 [0] : vector<10x8x1xf32> to vector<8x1xf32>
    %123 = vector.shape_cast %122 : vector<8x1xf32> to vector<1x8x1xf32>
    %124 = vector.broadcast %123 : vector<1x8x1xf32> to vector<10x8x1xf32>
    %125 = arith.subf %121, %124 : vector<10x8x1xf32>
    %126 = math.exp %125 : vector<10x8x1xf32>
    %cst_63 = arith.constant dense<0.000000e+00> : vector<8x1xf32>
    %127 = vector.multi_reduction <add>, %126, %cst_63 [0] : vector<10x8x1xf32> to vector<8x1xf32>
    %128 = vector.shape_cast %127 : vector<8x1xf32> to vector<1x8x1xf32>
    %129 = vector.broadcast %128 : vector<1x8x1xf32> to vector<10x8x1xf32>
    %130 = arith.divf %126, %129 : vector<10x8x1xf32>
    %131 = vector.broadcast %130 : vector<10x8x1xf32> to vector<10x8x64xf32>
    %132 = arith.mulf %131, %6 : vector<10x8x64xf32>
    %cst_64 = arith.constant dense<0.000000e+00> : vector<8x64xf32>
    %133 = vector.multi_reduction <add>, %132, %cst_64 [0] : vector<10x8x64xf32> to vector<8x64xf32>
    %c0_65 = arith.constant 0 : index
    %c0_66 = arith.constant 0 : index
    %134 = vector.load %arg18[%c0_65, %c0_66] : memref<8x32xf32, #tpu.memory_space<vmem>>, vector<8x32xf32>
    tpu.vector_store %arg18[%c0_65, %c0_66], %113 {strides = array<i32>} : memref<8x32xf32, #tpu.memory_space<vmem>>, vector<8x32xf32>,
    %c0_67 = arith.constant 0 : index
    %c0_68 = arith.constant 0 : index
    %135 = vector.load %arg19[%c0_67, %c0_68] : memref<8x32xf32, #tpu.memory_space<vmem>>, vector<8x32xf32>
    tpu.vector_store %arg19[%c0_67, %c0_68], %111 {strides = array<i32>} : memref<8x32xf32, #tpu.memory_space<vmem>>, vector<8x32xf32>,
    %c0_69 = arith.constant 0 : index
    %c0_70 = arith.constant 0 : index
    %136 = vector.load %arg20[%c0_69, %c0_70] : memref<8x64xf32, #tpu.memory_space<vmem>>, vector<8x64xf32>
    tpu.vector_store %arg20[%c0_69, %c0_70], %133 {strides = array<i32>} : memref<8x64xf32, #tpu.memory_space<vmem>>, vector<8x64xf32>,
    %c8_i32_71 = arith.constant 8 : i32
    %137 = arith.muli %c1_i32, %c8_i32_71 : i32
    %138 = tpu.assume_multiple %137, 8 : i32
    %139 = arith.index_cast %138 : i32 to index
    %c0_72 = arith.constant 0 : index
    %140 = vector.load %arg21[%139, %c0_72] : memref<48x32xf32, #tpu.memory_space<vmem>>, vector<8x32xf32>
    tpu.vector_store %arg21[%139, %c0_72], %113 {strides = array<i32>} : memref<48x32xf32, #tpu.memory_space<vmem>>, vector<8x32xf32>,
    %141 = arith.index_cast %138 : i32 to index
    %c0_73 = arith.constant 0 : index
    %142 = vector.load %arg22[%141, %c0_73] : memref<48x64xf32, #tpu.memory_space<vmem>>, vector<8x64xf32>
    tpu.vector_store %arg22[%141, %c0_73], %133 {strides = array<i32>} : memref<48x64xf32, #tpu.memory_space<vmem>>, vector<8x64xf32>,
    %c2_i32 = arith.constant 2 : i32
    %143 = arith.index_cast %c2_i32 : i32 to index
    %c0_74 = arith.constant 0 : index
    %c0_75 = arith.constant 0 : index
    %144 = vector.load %arg1[%143, %c0_74, %c0_75] : memref<6x8x48xf32, #tpu.memory_space<vmem>>, vector<1x8x48xf32>
    %145 = vector.shape_cast %144 : vector<1x8x48xf32> to vector<8x48xf32>
    %c0_76 = arith.constant 0 : index
    %c0_77 = arith.constant 0 : index
    %146 = vector.load %arg18[%c0_76, %c0_77] : memref<8x32xf32, #tpu.memory_space<vmem>>, vector<8x32xf32>
    %c0_78 = arith.constant 0 : index
    %c0_79 = arith.constant 0 : index
    %147 = vector.load %arg19[%c0_78, %c0_79] : memref<8x32xf32, #tpu.memory_space<vmem>>, vector<8x32xf32>
    %c0_80 = arith.constant 0 : index
    %c0_81 = arith.constant 0 : index
    %148 = vector.load %arg20[%c0_80, %c0_81] : memref<8x64xf32, #tpu.memory_space<vmem>>, vector<8x64xf32>
    %149 = tpu.concatenate %145, %148, %146 in 1 : vector<8x48xf32>, vector<8x64xf32>, vector<8x32xf32> -> vector<8x144xf32>
    %cst_82 = arith.constant dense<0.000000e+00> : vector<8x128xf32>
    %150 = tpu.matmul %149, %8, %cst_82 {dimension_numbers = #tpu.dot_dimension_numbers<[1], [0], [0], [1], [0, 0, 1, 1], [], []>} : vector<8x144xf32>, vector<144x128xf32>, vector<8x128xf32> -> vector<8x128xf32>
    %151 = vector.broadcast %9 : vector<1x128xf32> to vector<8x128xf32>
    %152 = arith.addf %150, %151 : vector<8x128xf32>
    %153 = vector.extract_strided_slice %152 {offsets = [0, 0], sizes = [8, 32], strides = [1, 1]} : vector<8x128xf32> to vector<8x32xf32>
    %154 = arith.negf %153 : vector<8x32xf32>
    %155 = math.exp %154 : vector<8x32xf32>
    %cst_83 = arith.constant 1.000000e+00 : f32
    %156 = vector.broadcast %cst_83 : f32 to vector<8x32xf32>
    %157 = arith.addf %156, %155 : vector<8x32xf32>
    %158 = arith.divf %156, %157 : vector<8x32xf32>
    %159 = vector.extract_strided_slice %152 {offsets = [0, 32], sizes = [8, 32], strides = [1, 1]} : vector<8x128xf32> to vector<8x32xf32>
    %160 = arith.negf %159 : vector<8x32xf32>
    %161 = math.exp %160 : vector<8x32xf32>
    %cst_84 = arith.constant 1.000000e+00 : f32
    %162 = vector.broadcast %cst_84 : f32 to vector<8x32xf32>
    %163 = arith.addf %162, %161 : vector<8x32xf32>
    %164 = arith.divf %162, %163 : vector<8x32xf32>
    %165 = vector.extract_strided_slice %152 {offsets = [0, 64], sizes = [8, 32], strides = [1, 1]} : vector<8x128xf32> to vector<8x32xf32>
    %166 = math.tanh %165 : vector<8x32xf32>
    %167 = vector.extract_strided_slice %152 {offsets = [0, 96], sizes = [8, 32], strides = [1, 1]} : vector<8x128xf32> to vector<8x32xf32>
    %168 = arith.negf %167 : vector<8x32xf32>
    %169 = math.exp %168 : vector<8x32xf32>
    %cst_85 = arith.constant 1.000000e+00 : f32
    %170 = vector.broadcast %cst_85 : f32 to vector<8x32xf32>
    %171 = arith.addf %170, %169 : vector<8x32xf32>
    %172 = arith.divf %170, %171 : vector<8x32xf32>
    %173 = arith.mulf %164, %147 : vector<8x32xf32>
    %174 = arith.mulf %158, %166 : vector<8x32xf32>
    %175 = arith.addf %173, %174 : vector<8x32xf32>
    %176 = math.tanh %175 : vector<8x32xf32>
    %177 = arith.mulf %172, %176 : vector<8x32xf32>
    %cst_86 = arith.constant dense<0.000000e+00> : vector<8x32xf32>
    %178 = tpu.matmul %177, %10, %cst_86 {dimension_numbers = #tpu.dot_dimension_numbers<[1], [0], [0], [1], [0, 0, 1, 1], [], []>} : vector<8x32xf32>, vector<32x32xf32>, vector<8x32xf32> -> vector<8x32xf32>
    %179 = vector.shape_cast %178 : vector<8x32xf32> to vector<1x8x32xf32>
    %180 = vector.broadcast %179 : vector<1x8x32xf32> to vector<10x8x32xf32>
    %181 = arith.addf %180, %7 : vector<10x8x32xf32>
    %182 = math.tanh %181 : vector<10x8x32xf32>
    %183 = arith.mulf %182, %14 : vector<10x8x32xf32>
    %cst_87 = arith.constant dense<0.000000e+00> : vector<10x8xf32>
    %184 = vector.multi_reduction <add>, %183, %cst_87 [2] : vector<10x8x32xf32> to vector<10x8xf32>
    %185 = vector.shape_cast %184 : vector<10x8xf32> to vector<10x8x1xf32>
    %cst_88 = arith.constant dense<0xFF800000> : vector<8x1xf32>
    %186 = vector.multi_reduction <maximumf>, %185, %cst_88 [0] : vector<10x8x1xf32> to vector<8x1xf32>
    %187 = vector.shape_cast %186 : vector<8x1xf32> to vector<1x8x1xf32>
    %188 = vector.broadcast %187 : vector<1x8x1xf32> to vector<10x8x1xf32>
    %189 = arith.subf %185, %188 : vector<10x8x1xf32>
    %190 = math.exp %189 : vector<10x8x1xf32>
    %cst_89 = arith.constant dense<0.000000e+00> : vector<8x1xf32>
    %191 = vector.multi_reduction <add>, %190, %cst_89 [0] : vector<10x8x1xf32> to vector<8x1xf32>
    %192 = vector.shape_cast %191 : vector<8x1xf32> to vector<1x8x1xf32>
    %193 = vector.broadcast %192 : vector<1x8x1xf32> to vector<10x8x1xf32>
    %194 = arith.divf %190, %193 : vector<10x8x1xf32>
    %195 = vector.broadcast %194 : vector<10x8x1xf32> to vector<10x8x64xf32>
    %196 = arith.mulf %195, %6 : vector<10x8x64xf32>
    %cst_90 = arith.constant dense<0.000000e+00> : vector<8x64xf32>
    %197 = vector.multi_reduction <add>, %196, %cst_90 [0] : vector<10x8x64xf32> to vector<8x64xf32>
    %c0_91 = arith.constant 0 : index
    %c0_92 = arith.constant 0 : index
    %198 = vector.load %arg18[%c0_91, %c0_92] : memref<8x32xf32, #tpu.memory_space<vmem>>, vector<8x32xf32>
    tpu.vector_store %arg18[%c0_91, %c0_92], %177 {strides = array<i32>} : memref<8x32xf32, #tpu.memory_space<vmem>>, vector<8x32xf32>,
    %c0_93 = arith.constant 0 : index
    %c0_94 = arith.constant 0 : index
    %199 = vector.load %arg19[%c0_93, %c0_94] : memref<8x32xf32, #tpu.memory_space<vmem>>, vector<8x32xf32>
    tpu.vector_store %arg19[%c0_93, %c0_94], %175 {strides = array<i32>} : memref<8x32xf32, #tpu.memory_space<vmem>>, vector<8x32xf32>,
    %c0_95 = arith.constant 0 : index
    %c0_96 = arith.constant 0 : index
    %200 = vector.load %arg20[%c0_95, %c0_96] : memref<8x64xf32, #tpu.memory_space<vmem>>, vector<8x64xf32>
    tpu.vector_store %arg20[%c0_95, %c0_96], %197 {strides = array<i32>} : memref<8x64xf32, #tpu.memory_space<vmem>>, vector<8x64xf32>,
    %c8_i32_97 = arith.constant 8 : i32
    %201 = arith.muli %c2_i32, %c8_i32_97 : i32
    %202 = tpu.assume_multiple %201, 8 : i32
    %203 = arith.index_cast %202 : i32 to index
    %c0_98 = arith.constant 0 : index
    %204 = vector.load %arg21[%203, %c0_98] : memref<48x32xf32, #tpu.memory_space<vmem>>, vector<8x32xf32>
    tpu.vector_store %arg21[%203, %c0_98], %177 {strides = array<i32>} : memref<48x32xf32, #tpu.memory_space<vmem>>, vector<8x32xf32>,
    %205 = arith.index_cast %202 : i32 to index
    %c0_99 = arith.constant 0 : index
    %206 = vector.load %arg22[%205, %c0_99] : memref<48x64xf32, #tpu.memory_space<vmem>>, vector<8x64xf32>
    tpu.vector_store %arg22[%205, %c0_99], %197 {strides = array<i32>} : memref<48x64xf32, #tpu.memory_space<vmem>>, vector<8x64xf32>,
    %c3_i32 = arith.constant 3 : i32
    %207 = arith.index_cast %c3_i32 : i32 to index
    %c0_100 = arith.constant 0 : index
    %c0_101 = arith.constant 0 : index
    %208 = vector.load %arg1[%207, %c0_100, %c0_101] : memref<6x8x48xf32, #tpu.memory_space<vmem>>, vector<1x8x48xf32>
    %209 = vector.shape_cast %208 : vector<1x8x48xf32> to vector<8x48xf32>
    %c0_102 = arith.constant 0 : index
    %c0_103 = arith.constant 0 : index
    %210 = vector.load %arg18[%c0_102, %c0_103] : memref<8x32xf32, #tpu.memory_space<vmem>>, vector<8x32xf32>
    %c0_104 = arith.constant 0 : index
    %c0_105 = arith.constant 0 : index
    %211 = vector.load %arg19[%c0_104, %c0_105] : memref<8x32xf32, #tpu.memory_space<vmem>>, vector<8x32xf32>
    %c0_106 = arith.constant 0 : index
    %c0_107 = arith.constant 0 : index
    %212 = vector.load %arg20[%c0_106, %c0_107] : memref<8x64xf32, #tpu.memory_space<vmem>>, vector<8x64xf32>
    %213 = tpu.concatenate %209, %212, %210 in 1 : vector<8x48xf32>, vector<8x64xf32>, vector<8x32xf32> -> vector<8x144xf32>
    %cst_108 = arith.constant dense<0.000000e+00> : vector<8x128xf32>
    %214 = tpu.matmul %213, %8, %cst_108 {dimension_numbers = #tpu.dot_dimension_numbers<[1], [0], [0], [1], [0, 0, 1, 1], [], []>} : vector<8x144xf32>, vector<144x128xf32>, vector<8x128xf32> -> vector<8x128xf32>
    %215 = vector.broadcast %9 : vector<1x128xf32> to vector<8x128xf32>
    %216 = arith.addf %214, %215 : vector<8x128xf32>
    %217 = vector.extract_strided_slice %216 {offsets = [0, 0], sizes = [8, 32], strides = [1, 1]} : vector<8x128xf32> to vector<8x32xf32>
    %218 = arith.negf %217 : vector<8x32xf32>
    %219 = math.exp %218 : vector<8x32xf32>
    %cst_109 = arith.constant 1.000000e+00 : f32
    %220 = vector.broadcast %cst_109 : f32 to vector<8x32xf32>
    %221 = arith.addf %220, %219 : vector<8x32xf32>
    %222 = arith.divf %220, %221 : vector<8x32xf32>
    %223 = vector.extract_strided_slice %216 {offsets = [0, 32], sizes = [8, 32], strides = [1, 1]} : vector<8x128xf32> to vector<8x32xf32>
    %224 = arith.negf %223 : vector<8x32xf32>
    %225 = math.exp %224 : vector<8x32xf32>
    %cst_110 = arith.constant 1.000000e+00 : f32
    %226 = vector.broadcast %cst_110 : f32 to vector<8x32xf32>
    %227 = arith.addf %226, %225 : vector<8x32xf32>
    %228 = arith.divf %226, %227 : vector<8x32xf32>
    %229 = vector.extract_strided_slice %216 {offsets = [0, 64], sizes = [8, 32], strides = [1, 1]} : vector<8x128xf32> to vector<8x32xf32>
    %230 = math.tanh %229 : vector<8x32xf32>
    %231 = vector.extract_strided_slice %216 {offsets = [0, 96], sizes = [8, 32], strides = [1, 1]} : vector<8x128xf32> to vector<8x32xf32>
    %232 = arith.negf %231 : vector<8x32xf32>
    %233 = math.exp %232 : vector<8x32xf32>
    %cst_111 = arith.constant 1.000000e+00 : f32
    %234 = vector.broadcast %cst_111 : f32 to vector<8x32xf32>
    %235 = arith.addf %234, %233 : vector<8x32xf32>
    %236 = arith.divf %234, %235 : vector<8x32xf32>
    %237 = arith.mulf %228, %211 : vector<8x32xf32>
    %238 = arith.mulf %222, %230 : vector<8x32xf32>
    %239 = arith.addf %237, %238 : vector<8x32xf32>
    %240 = math.tanh %239 : vector<8x32xf32>
    %241 = arith.mulf %236, %240 : vector<8x32xf32>
    %cst_112 = arith.constant dense<0.000000e+00> : vector<8x32xf32>
    %242 = tpu.matmul %241, %10, %cst_112 {dimension_numbers = #tpu.dot_dimension_numbers<[1], [0], [0], [1], [0, 0, 1, 1], [], []>} : vector<8x32xf32>, vector<32x32xf32>, vector<8x32xf32> -> vector<8x32xf32>
    %243 = vector.shape_cast %242 : vector<8x32xf32> to vector<1x8x32xf32>
    %244 = vector.broadcast %243 : vector<1x8x32xf32> to vector<10x8x32xf32>
    %245 = arith.addf %244, %7 : vector<10x8x32xf32>
    %246 = math.tanh %245 : vector<10x8x32xf32>
    %247 = arith.mulf %246, %14 : vector<10x8x32xf32>
    %cst_113 = arith.constant dense<0.000000e+00> : vector<10x8xf32>
    %248 = vector.multi_reduction <add>, %247, %cst_113 [2] : vector<10x8x32xf32> to vector<10x8xf32>
    %249 = vector.shape_cast %248 : vector<10x8xf32> to vector<10x8x1xf32>
    %cst_114 = arith.constant dense<0xFF800000> : vector<8x1xf32>
    %250 = vector.multi_reduction <maximumf>, %249, %cst_114 [0] : vector<10x8x1xf32> to vector<8x1xf32>
    %251 = vector.shape_cast %250 : vector<8x1xf32> to vector<1x8x1xf32>
    %252 = vector.broadcast %251 : vector<1x8x1xf32> to vector<10x8x1xf32>
    %253 = arith.subf %249, %252 : vector<10x8x1xf32>
    %254 = math.exp %253 : vector<10x8x1xf32>
    %cst_115 = arith.constant dense<0.000000e+00> : vector<8x1xf32>
    %255 = vector.multi_reduction <add>, %254, %cst_115 [0] : vector<10x8x1xf32> to vector<8x1xf32>
    %256 = vector.shape_cast %255 : vector<8x1xf32> to vector<1x8x1xf32>
    %257 = vector.broadcast %256 : vector<1x8x1xf32> to vector<10x8x1xf32>
    %258 = arith.divf %254, %257 : vector<10x8x1xf32>
    %259 = vector.broadcast %258 : vector<10x8x1xf32> to vector<10x8x64xf32>
    %260 = arith.mulf %259, %6 : vector<10x8x64xf32>
    %cst_116 = arith.constant dense<0.000000e+00> : vector<8x64xf32>
    %261 = vector.multi_reduction <add>, %260, %cst_116 [0] : vector<10x8x64xf32> to vector<8x64xf32>
    %c0_117 = arith.constant 0 : index
    %c0_118 = arith.constant 0 : index
    %262 = vector.load %arg18[%c0_117, %c0_118] : memref<8x32xf32, #tpu.memory_space<vmem>>, vector<8x32xf32>
    tpu.vector_store %arg18[%c0_117, %c0_118], %241 {strides = array<i32>} : memref<8x32xf32, #tpu.memory_space<vmem>>, vector<8x32xf32>,
    %c0_119 = arith.constant 0 : index
    %c0_120 = arith.constant 0 : index
    %263 = vector.load %arg19[%c0_119, %c0_120] : memref<8x32xf32, #tpu.memory_space<vmem>>, vector<8x32xf32>
    tpu.vector_store %arg19[%c0_119, %c0_120], %239 {strides = array<i32>} : memref<8x32xf32, #tpu.memory_space<vmem>>, vector<8x32xf32>,
    %c0_121 = arith.constant 0 : index
    %c0_122 = arith.constant 0 : index
    %264 = vector.load %arg20[%c0_121, %c0_122] : memref<8x64xf32, #tpu.memory_space<vmem>>, vector<8x64xf32>
    tpu.vector_store %arg20[%c0_121, %c0_122], %261 {strides = array<i32>} : memref<8x64xf32, #tpu.memory_space<vmem>>, vector<8x64xf32>,
    %c8_i32_123 = arith.constant 8 : i32
    %265 = arith.muli %c3_i32, %c8_i32_123 : i32
    %266 = tpu.assume_multiple %265, 8 : i32
    %267 = arith.index_cast %266 : i32 to index
    %c0_124 = arith.constant 0 : index
    %268 = vector.load %arg21[%267, %c0_124] : memref<48x32xf32, #tpu.memory_space<vmem>>, vector<8x32xf32>
    tpu.vector_store %arg21[%267, %c0_124], %241 {strides = array<i32>} : memref<48x32xf32, #tpu.memory_space<vmem>>, vector<8x32xf32>,
    %269 = arith.index_cast %266 : i32 to index
    %c0_125 = arith.constant 0 : index
    %270 = vector.load %arg22[%269, %c0_125] : memref<48x64xf32, #tpu.memory_space<vmem>>, vector<8x64xf32>
    tpu.vector_store %arg22[%269, %c0_125], %261 {strides = array<i32>} : memref<48x64xf32, #tpu.memory_space<vmem>>, vector<8x64xf32>,
    %c4_i32 = arith.constant 4 : i32
    %271 = arith.index_cast %c4_i32 : i32 to index
    %c0_126 = arith.constant 0 : index
    %c0_127 = arith.constant 0 : index
    %272 = vector.load %arg1[%271, %c0_126, %c0_127] : memref<6x8x48xf32, #tpu.memory_space<vmem>>, vector<1x8x48xf32>
    %273 = vector.shape_cast %272 : vector<1x8x48xf32> to vector<8x48xf32>
    %c0_128 = arith.constant 0 : index
    %c0_129 = arith.constant 0 : index
    %274 = vector.load %arg18[%c0_128, %c0_129] : memref<8x32xf32, #tpu.memory_space<vmem>>, vector<8x32xf32>
    %c0_130 = arith.constant 0 : index
    %c0_131 = arith.constant 0 : index
    %275 = vector.load %arg19[%c0_130, %c0_131] : memref<8x32xf32, #tpu.memory_space<vmem>>, vector<8x32xf32>
    %c0_132 = arith.constant 0 : index
    %c0_133 = arith.constant 0 : index
    %276 = vector.load %arg20[%c0_132, %c0_133] : memref<8x64xf32, #tpu.memory_space<vmem>>, vector<8x64xf32>
    %277 = tpu.concatenate %273, %276, %274 in 1 : vector<8x48xf32>, vector<8x64xf32>, vector<8x32xf32> -> vector<8x144xf32>
    %cst_134 = arith.constant dense<0.000000e+00> : vector<8x128xf32>
    %278 = tpu.matmul %277, %8, %cst_134 {dimension_numbers = #tpu.dot_dimension_numbers<[1], [0], [0], [1], [0, 0, 1, 1], [], []>} : vector<8x144xf32>, vector<144x128xf32>, vector<8x128xf32> -> vector<8x128xf32>
    %279 = vector.broadcast %9 : vector<1x128xf32> to vector<8x128xf32>
    %280 = arith.addf %278, %279 : vector<8x128xf32>
    %281 = vector.extract_strided_slice %280 {offsets = [0, 0], sizes = [8, 32], strides = [1, 1]} : vector<8x128xf32> to vector<8x32xf32>
    %282 = arith.negf %281 : vector<8x32xf32>
    %283 = math.exp %282 : vector<8x32xf32>
    %cst_135 = arith.constant 1.000000e+00 : f32
    %284 = vector.broadcast %cst_135 : f32 to vector<8x32xf32>
    %285 = arith.addf %284, %283 : vector<8x32xf32>
    %286 = arith.divf %284, %285 : vector<8x32xf32>
    %287 = vector.extract_strided_slice %280 {offsets = [0, 32], sizes = [8, 32], strides = [1, 1]} : vector<8x128xf32> to vector<8x32xf32>
    %288 = arith.negf %287 : vector<8x32xf32>
    %289 = math.exp %288 : vector<8x32xf32>
    %cst_136 = arith.constant 1.000000e+00 : f32
    %290 = vector.broadcast %cst_136 : f32 to vector<8x32xf32>
    %291 = arith.addf %290, %289 : vector<8x32xf32>
    %292 = arith.divf %290, %291 : vector<8x32xf32>
    %293 = vector.extract_strided_slice %280 {offsets = [0, 64], sizes = [8, 32], strides = [1, 1]} : vector<8x128xf32> to vector<8x32xf32>
    %294 = math.tanh %293 : vector<8x32xf32>
    %295 = vector.extract_strided_slice %280 {offsets = [0, 96], sizes = [8, 32], strides = [1, 1]} : vector<8x128xf32> to vector<8x32xf32>
    %296 = arith.negf %295 : vector<8x32xf32>
    %297 = math.exp %296 : vector<8x32xf32>
    %cst_137 = arith.constant 1.000000e+00 : f32
    %298 = vector.broadcast %cst_137 : f32 to vector<8x32xf32>
    %299 = arith.addf %298, %297 : vector<8x32xf32>
    %300 = arith.divf %298, %299 : vector<8x32xf32>
    %301 = arith.mulf %292, %275 : vector<8x32xf32>
    %302 = arith.mulf %286, %294 : vector<8x32xf32>
    %303 = arith.addf %301, %302 : vector<8x32xf32>
    %304 = math.tanh %303 : vector<8x32xf32>
    %305 = arith.mulf %300, %304 : vector<8x32xf32>
    %cst_138 = arith.constant dense<0.000000e+00> : vector<8x32xf32>
    %306 = tpu.matmul %305, %10, %cst_138 {dimension_numbers = #tpu.dot_dimension_numbers<[1], [0], [0], [1], [0, 0, 1, 1], [], []>} : vector<8x32xf32>, vector<32x32xf32>, vector<8x32xf32> -> vector<8x32xf32>
    %307 = vector.shape_cast %306 : vector<8x32xf32> to vector<1x8x32xf32>
    %308 = vector.broadcast %307 : vector<1x8x32xf32> to vector<10x8x32xf32>
    %309 = arith.addf %308, %7 : vector<10x8x32xf32>
    %310 = math.tanh %309 : vector<10x8x32xf32>
    %311 = arith.mulf %310, %14 : vector<10x8x32xf32>
    %cst_139 = arith.constant dense<0.000000e+00> : vector<10x8xf32>
    %312 = vector.multi_reduction <add>, %311, %cst_139 [2] : vector<10x8x32xf32> to vector<10x8xf32>
    %313 = vector.shape_cast %312 : vector<10x8xf32> to vector<10x8x1xf32>
    %cst_140 = arith.constant dense<0xFF800000> : vector<8x1xf32>
    %314 = vector.multi_reduction <maximumf>, %313, %cst_140 [0] : vector<10x8x1xf32> to vector<8x1xf32>
    %315 = vector.shape_cast %314 : vector<8x1xf32> to vector<1x8x1xf32>
    %316 = vector.broadcast %315 : vector<1x8x1xf32> to vector<10x8x1xf32>
    %317 = arith.subf %313, %316 : vector<10x8x1xf32>
    %318 = math.exp %317 : vector<10x8x1xf32>
    %cst_141 = arith.constant dense<0.000000e+00> : vector<8x1xf32>
    %319 = vector.multi_reduction <add>, %318, %cst_141 [0] : vector<10x8x1xf32> to vector<8x1xf32>
    %320 = vector.shape_cast %319 : vector<8x1xf32> to vector<1x8x1xf32>
    %321 = vector.broadcast %320 : vector<1x8x1xf32> to vector<10x8x1xf32>
    %322 = arith.divf %318, %321 : vector<10x8x1xf32>
    %323 = vector.broadcast %322 : vector<10x8x1xf32> to vector<10x8x64xf32>
    %324 = arith.mulf %323, %6 : vector<10x8x64xf32>
    %cst_142 = arith.constant dense<0.000000e+00> : vector<8x64xf32>
    %325 = vector.multi_reduction <add>, %324, %cst_142 [0] : vector<10x8x64xf32> to vector<8x64xf32>
    %c0_143 = arith.constant 0 : index
    %c0_144 = arith.constant 0 : index
    %326 = vector.load %arg18[%c0_143, %c0_144] : memref<8x32xf32, #tpu.memory_space<vmem>>, vector<8x32xf32>
    tpu.vector_store %arg18[%c0_143, %c0_144], %305 {strides = array<i32>} : memref<8x32xf32, #tpu.memory_space<vmem>>, vector<8x32xf32>,
    %c0_145 = arith.constant 0 : index
    %c0_146 = arith.constant 0 : index
    %327 = vector.load %arg19[%c0_145, %c0_146] : memref<8x32xf32, #tpu.memory_space<vmem>>, vector<8x32xf32>
    tpu.vector_store %arg19[%c0_145, %c0_146], %303 {strides = array<i32>} : memref<8x32xf32, #tpu.memory_space<vmem>>, vector<8x32xf32>,
    %c0_147 = arith.constant 0 : index
    %c0_148 = arith.constant 0 : index
    %328 = vector.load %arg20[%c0_147, %c0_148] : memref<8x64xf32, #tpu.memory_space<vmem>>, vector<8x64xf32>
    tpu.vector_store %arg20[%c0_147, %c0_148], %325 {strides = array<i32>} : memref<8x64xf32, #tpu.memory_space<vmem>>, vector<8x64xf32>,
    %c8_i32_149 = arith.constant 8 : i32
    %329 = arith.muli %c4_i32, %c8_i32_149 : i32
    %330 = tpu.assume_multiple %329, 8 : i32
    %331 = arith.index_cast %330 : i32 to index
    %c0_150 = arith.constant 0 : index
    %332 = vector.load %arg21[%331, %c0_150] : memref<48x32xf32, #tpu.memory_space<vmem>>, vector<8x32xf32>
    tpu.vector_store %arg21[%331, %c0_150], %305 {strides = array<i32>} : memref<48x32xf32, #tpu.memory_space<vmem>>, vector<8x32xf32>,
    %333 = arith.index_cast %330 : i32 to index
    %c0_151 = arith.constant 0 : index
    %334 = vector.load %arg22[%333, %c0_151] : memref<48x64xf32, #tpu.memory_space<vmem>>, vector<8x64xf32>
    tpu.vector_store %arg22[%333, %c0_151], %325 {strides = array<i32>} : memref<48x64xf32, #tpu.memory_space<vmem>>, vector<8x64xf32>,
    %c5_i32 = arith.constant 5 : i32
    %335 = arith.index_cast %c5_i32 : i32 to index
    %c0_152 = arith.constant 0 : index
    %c0_153 = arith.constant 0 : index
    %336 = vector.load %arg1[%335, %c0_152, %c0_153] : memref<6x8x48xf32, #tpu.memory_space<vmem>>, vector<1x8x48xf32>
    %337 = vector.shape_cast %336 : vector<1x8x48xf32> to vector<8x48xf32>
    %c0_154 = arith.constant 0 : index
    %c0_155 = arith.constant 0 : index
    %338 = vector.load %arg18[%c0_154, %c0_155] : memref<8x32xf32, #tpu.memory_space<vmem>>, vector<8x32xf32>
    %c0_156 = arith.constant 0 : index
    %c0_157 = arith.constant 0 : index
    %339 = vector.load %arg19[%c0_156, %c0_157] : memref<8x32xf32, #tpu.memory_space<vmem>>, vector<8x32xf32>
    %c0_158 = arith.constant 0 : index
    %c0_159 = arith.constant 0 : index
    %340 = vector.load %arg20[%c0_158, %c0_159] : memref<8x64xf32, #tpu.memory_space<vmem>>, vector<8x64xf32>
    %341 = tpu.concatenate %337, %340, %338 in 1 : vector<8x48xf32>, vector<8x64xf32>, vector<8x32xf32> -> vector<8x144xf32>
    %cst_160 = arith.constant dense<0.000000e+00> : vector<8x128xf32>
    %342 = tpu.matmul %341, %8, %cst_160 {dimension_numbers = #tpu.dot_dimension_numbers<[1], [0], [0], [1], [0, 0, 1, 1], [], []>} : vector<8x144xf32>, vector<144x128xf32>, vector<8x128xf32> -> vector<8x128xf32>
    %343 = vector.broadcast %9 : vector<1x128xf32> to vector<8x128xf32>
    %344 = arith.addf %342, %343 : vector<8x128xf32>
    %345 = vector.extract_strided_slice %344 {offsets = [0, 0], sizes = [8, 32], strides = [1, 1]} : vector<8x128xf32> to vector<8x32xf32>
    %346 = arith.negf %345 : vector<8x32xf32>
    %347 = math.exp %346 : vector<8x32xf32>
    %cst_161 = arith.constant 1.000000e+00 : f32
    %348 = vector.broadcast %cst_161 : f32 to vector<8x32xf32>
    %349 = arith.addf %348, %347 : vector<8x32xf32>
    %350 = arith.divf %348, %349 : vector<8x32xf32>
    %351 = vector.extract_strided_slice %344 {offsets = [0, 32], sizes = [8, 32], strides = [1, 1]} : vector<8x128xf32> to vector<8x32xf32>
    %352 = arith.negf %351 : vector<8x32xf32>
    %353 = math.exp %352 : vector<8x32xf32>
    %cst_162 = arith.constant 1.000000e+00 : f32
    %354 = vector.broadcast %cst_162 : f32 to vector<8x32xf32>
    %355 = arith.addf %354, %353 : vector<8x32xf32>
    %356 = arith.divf %354, %355 : vector<8x32xf32>
    %357 = vector.extract_strided_slice %344 {offsets = [0, 64], sizes = [8, 32], strides = [1, 1]} : vector<8x128xf32> to vector<8x32xf32>
    %358 = math.tanh %357 : vector<8x32xf32>
    %359 = vector.extract_strided_slice %344 {offsets = [0, 96], sizes = [8, 32], strides = [1, 1]} : vector<8x128xf32> to vector<8x32xf32>
    %360 = arith.negf %359 : vector<8x32xf32>
    %361 = math.exp %360 : vector<8x32xf32>
    %cst_163 = arith.constant 1.000000e+00 : f32
    %362 = vector.broadcast %cst_163 : f32 to vector<8x32xf32>
    %363 = arith.addf %362, %361 : vector<8x32xf32>
    %364 = arith.divf %362, %363 : vector<8x32xf32>
    %365 = arith.mulf %356, %339 : vector<8x32xf32>
    %366 = arith.mulf %350, %358 : vector<8x32xf32>
    %367 = arith.addf %365, %366 : vector<8x32xf32>
    %368 = math.tanh %367 : vector<8x32xf32>
    %369 = arith.mulf %364, %368 : vector<8x32xf32>
    %cst_164 = arith.constant dense<0.000000e+00> : vector<8x32xf32>
    %370 = tpu.matmul %369, %10, %cst_164 {dimension_numbers = #tpu.dot_dimension_numbers<[1], [0], [0], [1], [0, 0, 1, 1], [], []>} : vector<8x32xf32>, vector<32x32xf32>, vector<8x32xf32> -> vector<8x32xf32>
    %371 = vector.shape_cast %370 : vector<8x32xf32> to vector<1x8x32xf32>
    %372 = vector.broadcast %371 : vector<1x8x32xf32> to vector<10x8x32xf32>
    %373 = arith.addf %372, %7 : vector<10x8x32xf32>
    %374 = math.tanh %373 : vector<10x8x32xf32>
    %375 = arith.mulf %374, %14 : vector<10x8x32xf32>
    %cst_165 = arith.constant dense<0.000000e+00> : vector<10x8xf32>
    %376 = vector.multi_reduction <add>, %375, %cst_165 [2] : vector<10x8x32xf32> to vector<10x8xf32>
    %377 = vector.shape_cast %376 : vector<10x8xf32> to vector<10x8x1xf32>
    %cst_166 = arith.constant dense<0xFF800000> : vector<8x1xf32>
    %378 = vector.multi_reduction <maximumf>, %377, %cst_166 [0] : vector<10x8x1xf32> to vector<8x1xf32>
    %379 = vector.shape_cast %378 : vector<8x1xf32> to vector<1x8x1xf32>
    %380 = vector.broadcast %379 : vector<1x8x1xf32> to vector<10x8x1xf32>
    %381 = arith.subf %377, %380 : vector<10x8x1xf32>
    %382 = math.exp %381 : vector<10x8x1xf32>
    %cst_167 = arith.constant dense<0.000000e+00> : vector<8x1xf32>
    %383 = vector.multi_reduction <add>, %382, %cst_167 [0] : vector<10x8x1xf32> to vector<8x1xf32>
    %384 = vector.shape_cast %383 : vector<8x1xf32> to vector<1x8x1xf32>
    %385 = vector.broadcast %384 : vector<1x8x1xf32> to vector<10x8x1xf32>
    %386 = arith.divf %382, %385 : vector<10x8x1xf32>
    %387 = vector.broadcast %386 : vector<10x8x1xf32> to vector<10x8x64xf32>
    %388 = arith.mulf %387, %6 : vector<10x8x64xf32>
    %cst_168 = arith.constant dense<0.000000e+00> : vector<8x64xf32>
    %389 = vector.multi_reduction <add>, %388, %cst_168 [0] : vector<10x8x64xf32> to vector<8x64xf32>
    %c0_169 = arith.constant 0 : index
    %c0_170 = arith.constant 0 : index
    %390 = vector.load %arg18[%c0_169, %c0_170] : memref<8x32xf32, #tpu.memory_space<vmem>>, vector<8x32xf32>
    tpu.vector_store %arg18[%c0_169, %c0_170], %369 {strides = array<i32>} : memref<8x32xf32, #tpu.memory_space<vmem>>, vector<8x32xf32>,
    %c0_171 = arith.constant 0 : index
    %c0_172 = arith.constant 0 : index
    %391 = vector.load %arg19[%c0_171, %c0_172] : memref<8x32xf32, #tpu.memory_space<vmem>>, vector<8x32xf32>
    tpu.vector_store %arg19[%c0_171, %c0_172], %367 {strides = array<i32>} : memref<8x32xf32, #tpu.memory_space<vmem>>, vector<8x32xf32>,
    %c0_173 = arith.constant 0 : index
    %c0_174 = arith.constant 0 : index
    %392 = vector.load %arg20[%c0_173, %c0_174] : memref<8x64xf32, #tpu.memory_space<vmem>>, vector<8x64xf32>
    tpu.vector_store %arg20[%c0_173, %c0_174], %389 {strides = array<i32>} : memref<8x64xf32, #tpu.memory_space<vmem>>, vector<8x64xf32>,
    %c8_i32_175 = arith.constant 8 : i32
    %393 = arith.muli %c5_i32, %c8_i32_175 : i32
    %394 = tpu.assume_multiple %393, 8 : i32
    %395 = arith.index_cast %394 : i32 to index
    %c0_176 = arith.constant 0 : index
    %396 = vector.load %arg21[%395, %c0_176] : memref<48x32xf32, #tpu.memory_space<vmem>>, vector<8x32xf32>
    tpu.vector_store %arg21[%395, %c0_176], %369 {strides = array<i32>} : memref<48x32xf32, #tpu.memory_space<vmem>>, vector<8x32xf32>,
    %397 = arith.index_cast %394 : i32 to index
    %c0_177 = arith.constant 0 : index
    %398 = vector.load %arg22[%397, %c0_177] : memref<48x64xf32, #tpu.memory_space<vmem>>, vector<8x64xf32>
    tpu.vector_store %arg22[%397, %c0_177], %389 {strides = array<i32>} : memref<48x64xf32, #tpu.memory_space<vmem>>, vector<8x64xf32>,
    %c6_i32 = arith.constant 6 : i32
    %c0_178 = arith.constant 0 : index
    %c0_179 = arith.constant 0 : index
    %399 = vector.load %arg18[%c0_178, %c0_179] : memref<8x32xf32, #tpu.memory_space<vmem>>, vector<8x32xf32>
    %c0_180 = arith.constant 0 : index
    %c0_181 = arith.constant 0 : index
    %400 = vector.load %arg16[%c0_180, %c0_181] : memref<8x32xf32, #tpu.memory_space<vmem>>, vector<8x32xf32>
    tpu.vector_store %arg16[%c0_180, %c0_181], %399 {strides = array<i32>} : memref<8x32xf32, #tpu.memory_space<vmem>>, vector<8x32xf32>,
    %c0_182 = arith.constant 0 : index
    %c0_183 = arith.constant 0 : index
    %401 = vector.load %arg19[%c0_182, %c0_183] : memref<8x32xf32, #tpu.memory_space<vmem>>, vector<8x32xf32>
    %c0_184 = arith.constant 0 : index
    %c0_185 = arith.constant 0 : index
    %402 = vector.load %arg17[%c0_184, %c0_185] : memref<8x32xf32, #tpu.memory_space<vmem>>, vector<8x32xf32>
    tpu.vector_store %arg17[%c0_184, %c0_185], %401 {strides = array<i32>} : memref<8x32xf32, #tpu.memory_space<vmem>>, vector<8x32xf32>,
    %c0_186 = arith.constant 0 : index
    %c0_187 = arith.constant 0 : index
    %403 = vector.load %arg21[%c0_186, %c0_187] : memref<48x32xf32, #tpu.memory_space<vmem>>, vector<48x32xf32>
    %c0_188 = arith.constant 0 : index
    %c0_189 = arith.constant 0 : index
    %404 = vector.load %arg22[%c0_188, %c0_189] : memref<48x64xf32, #tpu.memory_space<vmem>>, vector<48x64xf32>
    %c0_190 = arith.constant 0 : index
    %c0_191 = arith.constant 0 : index
    %405 = vector.load %arg10[%c0_190, %c0_191] : memref<32x32xf32, #tpu.memory_space<vmem>>, vector<32x32xf32>
    %cst_192 = arith.constant dense<0.000000e+00> : vector<48x32xf32>
    %406 = tpu.matmul %403, %405, %cst_192 {dimension_numbers = #tpu.dot_dimension_numbers<[1], [0], [0], [1], [0, 0, 1, 1], [], []>} : vector<48x32xf32>, vector<32x32xf32>, vector<48x32xf32> -> vector<48x32xf32>
    %c0_193 = arith.constant 0 : index
    %c0_194 = arith.constant 0 : index
    %407 = vector.load %arg11[%c0_193, %c0_194] : memref<64x32xf32, #tpu.memory_space<vmem>>, vector<64x32xf32>
    %cst_195 = arith.constant dense<0.000000e+00> : vector<48x32xf32>
    %408 = tpu.matmul %404, %407, %cst_195 {dimension_numbers = #tpu.dot_dimension_numbers<[1], [0], [0], [1], [0, 0, 1, 1], [], []>} : vector<48x64xf32>, vector<64x32xf32>, vector<48x32xf32> -> vector<48x32xf32>
    %409 = arith.addf %406, %408 : vector<48x32xf32>
    %c0_196 = arith.constant 0 : index
    %c0_197 = arith.constant 0 : index
    %410 = vector.load %arg12[%c0_196, %c0_197] : memref<1x32xf32, #tpu.memory_space<vmem>>, vector<1x32xf32>
    %411 = vector.broadcast %410 : vector<1x32xf32> to vector<48x32xf32>
    %412 = arith.addf %409, %411 : vector<48x32xf32>
    %c0_198 = arith.constant 0 : index
    %c0_199 = arith.constant 0 : index
    %413 = vector.load %arg13[%c0_198, %c0_199] : memref<32x128xf32, #tpu.memory_space<vmem>>, vector<32x128xf32>
    %cst_200 = arith.constant dense<0.000000e+00> : vector<48x128xf32>
    %414 = tpu.matmul %412, %413, %cst_200 {dimension_numbers = #tpu.dot_dimension_numbers<[1], [0], [0], [1], [0, 0, 1, 1], [], []>} : vector<48x32xf32>, vector<32x128xf32>, vector<48x128xf32> -> vector<48x128xf32>
    %c0_201 = arith.constant 0 : index
    %c0_202 = arith.constant 0 : index
    %415 = vector.load %arg14[%c0_201, %c0_202] : memref<1x128xf32, #tpu.memory_space<vmem>>, vector<1x128xf32>
    %416 = vector.broadcast %415 : vector<1x128xf32> to vector<48x128xf32>
    %417 = arith.addf %414, %416 : vector<48x128xf32>
    %cst_203 = arith.constant dense<0xFF800000> : vector<48xf32>
    %418 = vector.multi_reduction <maximumf>, %417, %cst_203 [1] : vector<48x128xf32> to vector<48xf32>
    %419 = vector.shape_cast %418 : vector<48xf32> to vector<48x1xf32>
    %420 = vector.broadcast %419 : vector<48x1xf32> to vector<48x128xf32>
    %421 = arith.subf %417, %420 : vector<48x128xf32>
    %422 = math.exp %421 : vector<48x128xf32>
    %cst_204 = arith.constant dense<0.000000e+00> : vector<48xf32>
    %423 = vector.multi_reduction <add>, %422, %cst_204 [1] : vector<48x128xf32> to vector<48xf32>
    %424 = vector.shape_cast %423 : vector<48xf32> to vector<48x1xf32>
    %425 = math.log %424 : vector<48x1xf32>
    %426 = vector.broadcast %425 : vector<48x1xf32> to vector<48x128xf32>
    %427 = arith.subf %421, %426 : vector<48x128xf32>
    %c0_205 = arith.constant 0 : index
    %c0_206 = arith.constant 0 : index
    %428 = vector.load %arg15[%c0_205, %c0_206] : memref<48x128xf32, #tpu.memory_space<vmem>>, vector<48x128xf32>
    tpu.vector_store %arg15[%c0_205, %c0_206], %427 {strides = array<i32>} : memref<48x128xf32, #tpu.memory_space<vmem>>, vector<48x128xf32>,
    return
  }
  func.func @transform_0(%arg0: i32) -> (i32, i32, i32) {
    %c0_i32 = arith.constant 0 : i32
    %c0_i32_0 = arith.constant 0 : i32
    %c0_i32_1 = arith.constant 0 : i32
    %c0_i32_2 = arith.constant 0 : i32
    return %c0_i32, %c0_i32_0, %c0_i32_1 : i32, i32, i32
  }
  func.func @transform_1(%arg0: i32) -> (i32, i32) {
    %c0_i32 = arith.constant 0 : i32
    %c0_i32_0 = arith.constant 0 : i32
    %c0_i32_1 = arith.constant 0 : i32
    return %c0_i32, %c0_i32_0 : i32, i32
  }
  func.func @transform_2(%arg0: i32) -> (i32, i32) {
    %c0_i32 = arith.constant 0 : i32
    %c0_i32_0 = arith.constant 0 : i32
    %c0_i32_1 = arith.constant 0 : i32
    return %c0_i32, %c0_i32_0 : i32, i32
  }
  func.func @transform_3(%arg0: i32) -> (i32, i32, i32) {
    %c0_i32 = arith.constant 0 : i32
    %c0_i32_0 = arith.constant 0 : i32
    %c0_i32_1 = arith.constant 0 : i32
    %c0_i32_2 = arith.constant 0 : i32
    return %c0_i32, %c0_i32_0, %c0_i32_1 : i32, i32, i32
  }
  func.func @transform_4(%arg0: i32) -> (i32, i32, i32) {
    %c0_i32 = arith.constant 0 : i32
    %c0_i32_0 = arith.constant 0 : i32
    %c0_i32_1 = arith.constant 0 : i32
    %c0_i32_2 = arith.constant 0 : i32
    return %c0_i32, %c0_i32_0, %c0_i32_1 : i32, i32, i32
  }
  func.func @transform_5(%arg0: i32) -> (i32, i32) {
    %c0_i32 = arith.constant 0 : i32
    %c0_i32_0 = arith.constant 0 : i32
    %c0_i32_1 = arith.constant 0 : i32
    return %c0_i32, %c0_i32_0 : i32, i32
  }
  func.func @transform_6(%arg0: i32) -> (i32, i32) {
    %c0_i32 = arith.constant 0 : i32
    %c0_i32_0 = arith.constant 0 : i32
    %c0_i32_1 = arith.constant 0 : i32
    return %c0_i32, %c0_i32_0 : i32, i32
  }
  func.func @transform_7(%arg0: i32) -> (i32, i32) {
    %c0_i32 = arith.constant 0 : i32
    %c0_i32_0 = arith.constant 0 : i32
    %c0_i32_1 = arith.constant 0 : i32
    return %c0_i32, %c0_i32_0 : i32, i32
  }
  func.func @transform_8(%arg0: i32) -> (i32, i32) {
    %c0_i32 = arith.constant 0 : i32
    %c0_i32_0 = arith.constant 0 : i32
    %c0_i32_1 = arith.constant 0 : i32
    return %c0_i32, %c0_i32_0 : i32, i32
  }
  func.func @transform_9(%arg0: i32) -> (i32, i32) {
    %c0_i32 = arith.constant 0 : i32
    %c0_i32_0 = arith.constant 0 : i32
    %c0_i32_1 = arith.constant 0 : i32
    return %c0_i32, %c0_i32_0 : i32, i32
  }
  func.func @transform_10(%arg0: i32) -> (i32, i32) {
    %c0_i32 = arith.constant 0 : i32
    %c0_i32_0 = arith.constant 0 : i32
    %c0_i32_1 = arith.constant 0 : i32
    return %c0_i32, %c0_i32_0 : i32, i32
  }
  func.func @transform_11(%arg0: i32) -> (i32, i32) {
    %c0_i32 = arith.constant 0 : i32
    %c0_i32_0 = arith.constant 0 : i32
    %c0_i32_1 = arith.constant 0 : i32
    return %c0_i32, %c0_i32_0 : i32, i32
  }
  func.func @transform_12(%arg0: i32) -> (i32, i32) {
    %c0_i32 = arith.constant 0 : i32
    %c0_i32_0 = arith.constant 0 : i32
    %c0_i32_1 = arith.constant 0 : i32
    return %c0_i32, %c0_i32_0 : i32, i32
  }
  func.func @transform_13(%arg0: i32) -> (i32, i32) {
    %c0_i32 = arith.constant 0 : i32
    %c0_i32_0 = arith.constant 0 : i32
    %c0_i32_1 = arith.constant 0 : i32
    return %c0_i32, %c0_i32_0 : i32, i32
  }
  func.func @transform_14(%arg0: i32) -> (i32, i32) {
    %c0_i32 = arith.constant 0 : i32
    %c0_i32_0 = arith.constant 0 : i32
    %c0_i32_1 = arith.constant 0 : i32
    return %c0_i32, %c0_i32_0 : i32, i32
  }
  func.func @transform_15(%arg0: i32) -> (i32, i32) {
    %c0_i32 = arith.constant 0 : i32
    %c0_i32_0 = arith.constant 0 : i32
    %c0_i32_1 = arith.constant 0 : i32
    return %c0_i32, %c0_i32_0 : i32, i32
  }
  func.func @transform_16(%arg0: i32) -> (i32, i32) {
    %c0_i32 = arith.constant 0 : i32
    %c0_i32_0 = arith.constant 0 : i32
    %c0_i32_1 = arith.constant 0 : i32
    return %c0_i32, %c0_i32_0 : i32, i32
  }
}

</mosaic_0001>

<bundles_post_ra>
// kernel: bahdanau_attn_decoder_forward.1
= control target key start
LH: loop header
LB: loop body
LE: loop exit
PB: predicated region body
PF: predicated region fallthrough
CT: control target
= control target key end

     0   :  { %s4779_s0 = inlined_call_operand.vmem [shape: f32[6,8,48], index: 0, kind: input, shape index: {}]   ;;  %s4780_s1 = inlined_call_operand.vmem [shape: f32[8,32], index: 1, kind: input, shape index: {}, may-alias: {1,2}]   ;;  %s4781_s2 = inlined_call_operand.vmem [shape: f32[8,32], index: 2, kind: input, shape index: {}, may-alias: {1,2}]   ;;  %s4782_s3 = inlined_call_operand.vmem [shape: f32[10,8,64], index: 3, kind: input, shape index: {}]   ;;  %s4783_s4 = inlined_call_operand.vmem [shape: f32[10,8,32], index: 4, kind: input, shape index: {}]   ;;  %s4784_s5 = inlined_call_operand.vmem [shape: f32[144,128], index: 5, kind: input, shape index: {}]   ;;  %s4785_s6 = inlined_call_operand.vmem [shape: f32[1,128], index: 6, kind: input, shape index: {}]   ;;  %s4786_s7 = inlined_call_operand.vmem [shape: f32[32,32], index: 7, kind: input, shape index: {}]   ;;  %s4787_s8 = inlined_call_operand.vmem [shape: f32[1,32], index: 8, kind: input, shape index: {}]   ;;  %s4788_s9 = inlined_call_operand.vmem [shape: f32[32,32], index: 9, kind: input, shape index: {}]   ;;  %s4789_s10 = inlined_call_operand.vmem [shape: f32[64,32], index: 10, kind: input, shape index: {}]   ;;  %s4790_s11 = inlined_call_operand.vmem [shape: f32[1,32], index: 11, kind: input, shape index: {}]   ;;  %s4791_s12 = inlined_call_operand.vmem [shape: f32[32,128], index: 12, kind: input, shape index: {}]   ;;  %s4792_s13 = inlined_call_operand.vmem [shape: f32[1,128], index: 13, kind: input, shape index: {}]   ;;  %s4793_s14 = inlined_call_operand.hbm [shape: f32[48,128], index: 14, kind: output, shape index: {0}]   ;;  %s4794_s15 = inlined_call_operand.hbm [shape: f32[8,32], index: 15, kind: output, shape index: {1}]   ;;  %s4795_s16 = inlined_call_operand.hbm [shape: f32[8,32], index: 16, kind: output, shape index: {2}]  }
   0x1   :  { %4797 = sst [smem:[#allocation14_spill]] %s4779_s0 }
   0x2   :  { %22 = vsyncpa [#allocation8], 0  ;;  %vm57_vm0 = vcmask 523264   ;;  %v52_v0 = vld [vmem:[%s4780_s1] sm:$0xff]  ;;  %vm53_vm1 = vcmask 261120   ;;  %v3615_v1 = vmov 0.0  }
   0x3   :  { %58 = vst.msk [vmem:[#allocation4] sm:$0xff] %vm57_vm0, %v3615_v1  ;;  %v79_v2 = vld [vmem:[%s4784_s5] sm:$0xff]  ;;  %v80_v3 = vld [vmem:[%s4784_s5 + $0x8] sm:$0xff]  ;;  %v81_v4 = vld [vmem:[%s4784_s5 + $0x10] sm:$0xff]  ;;  %v3616_v5 = vmov 0.0|0.0  }
   0x4   :  { %54 = vst.msk [vmem:[#allocation2] sm:$0xff] %vm53_vm1, %v52_v0  ;;  %2949 = vmatprep.subr.bf16.mxu0 %v3616_v5  ;;  %v3729_v6 = vpack.c.bf16 %v80_v3, %v79_v2  ;;  %v82_v7 = vld [vmem:[%s4784_s5 + $0x18] sm:$0xff]  ;;  %2976 = vmatprep.subr.bf16.mxu1 %v3616_v5  ;;  %v83_v9 = vld [vmem:[%s4784_s5 + $0x20] sm:$0xff]  ;;  %v84_v10 = vld [vmem:[%s4784_s5 + $0x28] sm:$0xff] }
   0x5   :  { %v3736_v8 = vpack.c.bf16 %v82_v7, %v81_v4 }
   0x6   :  { %2951 = vmatpush1.bf16.msra.mxu0 %v3729_v6 }
   0x7   :  { %2952 = vmatprep.subr.bf16.mxu0 %v3616_v5 }
   0x8   :  { %23 = vsyncpa [#allocation10], 0  ;;  %v3746_v12 = vpack.c.bf16 %v84_v10, %v83_v9  ;;  %s3617_s19 = smov 48   ;;  %v85_v13 = vld [vmem:[%s4784_s5 + $0x30] sm:$0xff]  ;;  %v86_v14 = vld [vmem:[%s4784_s5 + $0x38] sm:$0xff]  ;;  %s3618_s24 = smov 112  }
   0x9   :  { %v3757_v16 = vpack.c.bf16 %v86_v14, %v85_v13  ;;  %v87_v17 = vld [vmem:[%s4784_s5 + $0x40] sm:$0xff]  ;;  %v88_v18 = vld [vmem:[%s4784_s5 + $0x48] sm:$0xff]  ;;  %v89_v20 = vld [vmem:[%s4784_s5 + $0x50] sm:$0xff]  ;;  %s4798_s17 = sld [smem:[#allocation14_spill]]  ;;  %vm121_vm2 = vcmask 392192   ;;  %vm131_vm3 = vcmask 130048  }
   0xa   :  { %v112_v11 = vld [vmem:[#allocation4] sm:$0xff]  ;;  %2954 = vmatpush1.bf16.msra.mxu0 %v3736_v8  ;;  %v3768_v19 = vpack.c.bf16 %v88_v18, %v87_v17  ;;  %v90_v21 = vld [vmem:[%s4784_s5 + $0x58] sm:$0xff]  ;;  %v91_v23 = vld [vmem:[%s4784_s5 + $0x60] sm:$0xff]  ;;  %vm123_vm4 = vcmask 916480   ;;  %s3619_s22 = smov 64   ;;  %s3620_s23 = smov 32  }
   0xb   :  { %114 = vrot.lane.b32.xlu0 %v112_v11, %s3617_s19  ;;  %2955 = vmatprep.subr.bf16.mxu0 %v3616_v5  ;;  %v110_v15 = vld [vmem:[#allocation2] sm:$0xff]  ;;  %v3778_v22 = vpack.c.bf16 %v90_v21, %v89_v20  ;;  %v92_v24 = vld [vmem:[%s4784_s5 + $0x68] sm:$0xff]  ;;  %v93_v26 = vld [vmem:[%s4784_s5 + $0x70] sm:$0xff]  ;;  %vm3621_vm5 = vmmov 0   ;;  %s3622_s26 = smov 96  }
   0xc   :  { %v3788_v25 = vpack.c.bf16 %v92_v24, %v91_v23  ;;  %v94_v27 = vld [vmem:[%s4784_s5 + $0x78] sm:$0xff]  ;;  %v95_v29 = vld [vmem:[%s4784_s5 + $0x80] sm:$0xff]  ;;  %v96_v30 = vld [vmem:[%s4784_s5 + $0x88] sm:$0xff]  ;;  %2832 = vmatprep.mubr.msk.f32.mxu1 %vm3621_vm5, %v3615_v1 }
   0xd   :  { %v3798_v28 = vpack.c.bf16 %v94_v27, %v93_v26  ;;  %v3808_v31 = vpack.c.bf16 %v96_v30, %v95_v29  ;;  %v55_v37 = vld [vmem:[%s4781_s2] sm:$0xff]  ;;  %v99_v55 = vld [vmem:[%s4786_s7 + $0x8] sm:$0xff]  ;;  %v100_v56 = vld [vmem:[%s4786_s7 + $0x10] sm:$0xff] }
   0xe   :  { %2957 = vmatpush1.bf16.msra.mxu0 %v3746_v12  ;;  %56 = vst.msk [vmem:[#allocation3] sm:$0xff] %vm53_vm1, %v55_v37  ;;  %v3844_v38 = vld [vmem:[%s4785_s6] ss:$0 sm:$0xff]  ;;  %v101_v58 = vld [vmem:[%s4786_s7 + $0x18] sm:$0xff]  ;;  %v3901_v0 = vld [vmem:[%s4783_s4 + $0x8] sm:$0xff] }
   0xf   :  { %118 = vrot.lane.b32.xlu0 %v110_v15, %s3618_s24  ;;  %2958 = vmatprep.subr.bf16.mxu0 %v3616_v5  ;;  %v109_v33 = vld [vmem:[%s4798_s17] sm:$0xff]  ;;  %v3870_v59 = vpack.c.bf16 %v101_v58, %v100_v56  ;;  %v3916_v4 = vld [vmem:[%s4783_s4 + $0x28] sm:$0xff]  ;;  %v3921_v9 = vld [vmem:[%s4783_s4 + $0x10] sm:$0xff] }
  0x10   :  { %v98_v54 = vld [vmem:[%s4786_s7] sm:$0xff]  ;;  %v3929_v15 = vld [vmem:[%s4783_s4 + $0x18] sm:$0xff]  ;;  %v3937_v21 = vld [vmem:[%s4783_s4 + $0x30] sm:$0xff] }
  0x11   :  { %v3862_v57 = vpack.c.bf16 %v99_v55, %v98_v54  ;;  %v3906_v2 = vld [vmem:[%s4783_s4] sm:$0xff]  ;;  %v3942_v23 = vld [vmem:[%s4783_s4 + $0x38] sm:$0xff]  ;;  %v3954_v29 = vld [vmem:[%s4783_s4 + $0x48] sm:$0xff] }
  0x12   :  { %2960 = vmatpush1.bf16.msra.mxu0 %v3757_v16  ;;  %v3911_v3 = vld [vmem:[%s4783_s4 + $0x20] sm:$0xff] }
  0x13   :  { %2961 = vmatprep.subr.bf16.mxu0 %v3616_v5  ;;  %2978 = vmatpush3.bf16.msra.mxu1 %v3862_v57  ;;  %v3949_v27 = vld [vmem:[%s4783_s4 + $0x40] sm:$0xff] }
  0x14   :  { %2979 = vmatprep.subr.bf16.mxu1 %v3616_v5  ;;  %v3959_v30 = vld [vmem:[%s4787_s8] ss:$0 sm:$0xff] }
  0x15   :  { %v111_v43 = vld [vmem:[#allocation3] sm:$0xff] }
  0x16   :  { %2963 = vmatpush1.bf16.msra.mxu0 %v3768_v19 }
  0x17   :  { %2964 = vmatprep.subr.bf16.mxu0 %v3616_v5  ;;  %2981 = vmatpush3.bf16.msra.mxu1 %v3870_v59 }
  0x18   :  { %2982 = vmatprep.subr.bf16.mxu1 %v3616_v5 }
  0x1a   :  { %2966 = vmatpush1.bf16.msra.mxu0 %v3778_v22 }
  0x1b   :  { %2967 = vmatprep.subr.bf16.mxu0 %v3616_v5 }
  0x1e   :  { %2969 = vmatpush1.bf16.msra.mxu0 %v3788_v25 }
  0x1f   :  { %2970 = vmatprep.subr.bf16.mxu0 %v3616_v5 }
  0x22   :  { %2972 = vmatpush1.bf16.msra.mxu0 %v3798_v28 }
  0x23   :  { %2973 = vmatprep.subr.bf16.mxu0 %v3616_v5 }
  0x26   :  { %2975 = vmatpush1.bf16.msra.mxu0 %v3808_v31 }
  0x27   :  { %3015 = vmatprep.subr.bf16.mxu0 %v3616_v5 }
  0x7d   :  { %v115_v32 = vpop.permute.xlu0 %114 }
  0x7e   :  { %v122_v34 = vsel %vm121_vm2, %v109_v33, %v115_v32 }
  0x81   :  { %v119_v35 = vpop.permute.xlu0 %118 }
  0x82   :  { %2717 = vmatprep.mubr.msk.f32.mxu0 %vm131_vm3, %v119_v35  ;;  %v124_v36 = vsel %vm123_vm4, %v122_v34, %v119_v35 }
  0x83   :  { %199 = vmatmul.mubr.f32.vlgmr.msra.gmra.mrb[0].mxu0 %v124_v36 }
  0x84   :  { %3017 = vmatpush1.bf16.msra.mxu0 %v3729_v6 }
  0x85   :  { %3018 = vmatprep.subr.bf16.mxu0 %v3616_v5 }
  0x88   :  { %3020 = vmatpush1.bf16.msra.mxu0 %v3736_v8 }
  0x89   :  { %3021 = vmatprep.subr.bf16.mxu0 %v3616_v5 }
  0x8c   :  { %3023 = vmatpush1.bf16.msra.mxu0 %v3746_v12 }
  0x8d   :  { %3024 = vmatprep.subr.bf16.mxu0 %v3616_v5 }
  0x90   :  { %3026 = vmatpush1.bf16.msra.mxu0 %v3757_v16 }
  0x91   :  { %3027 = vmatprep.subr.bf16.mxu0 %v3616_v5 }
  0x94   :  { %3029 = vmatpush1.bf16.msra.mxu0 %v3768_v19 }
  0x95   :  { %3030 = vmatprep.subr.bf16.mxu0 %v3616_v5 }
  0x98   :  { %3032 = vmatpush1.bf16.msra.mxu0 %v3778_v22 }
  0x99   :  { %3033 = vmatprep.subr.bf16.mxu0 %v3616_v5 }
  0x9c   :  { %3035 = vmatpush1.bf16.msra.mxu0 %v3788_v25 }
  0x9d   :  { %3036 = vmatprep.subr.bf16.mxu0 %v3616_v5 }
  0xa0   :  { %3038 = vmatpush1.bf16.msra.mxu0 %v3798_v28 }
  0xa1   :  { %3039 = vmatprep.subr.bf16.mxu0 %v3616_v5 }
  0xa4   :  { %3041 = vmatpush1.bf16.msra.mxu0 %v3808_v31 }
  0xa5   :  { %3075 = vmatprep.subr.bf16.mxu0 %v3616_v5 }
 0x156   :  { %v200_v39 = vpop.f32.mrb[0].mxu0 }
 0x157   :  { %v201_v40 = vadd.f32 %v3844_v38, %v200_v39  ;;  %v202_v41 = vpop.f32.mrb[1].mxu0 }
 0x159   :  { %3198 = vtanh.f32 %v201_v40  ;;  %v2718_v44 = vmul.f32 -1.442695, %v201_v40 }
 0x15b   :  { %3200 = vpow2.f32 %v2718_v44 }
 0x163   :  { %v3199_v42 = vpop.eup %3198 }
 0x164   :  { %217 = vrot.lane.b32.xlu1 %v3199_v42, %s3619_s22 }
 0x165   :  { %v3201_v45 = vpop.eup %3200 }
 0x166   :  { %v207_v46 = vadd.f32 1.0, %v3201_v45 }
 0x168   :  { %212 = vrot.lane.b32.xlu1 %v111_v43, %s3620_s23  ;;  %3202 = vrcp.f32 %v207_v46 }
 0x172   :  { %v3203_v47 = vpop.eup %3202 }
 0x1d6   :  { %v218_v48 = vpop.permute.xlu1 %217 }
 0x1d7   :  { %v220_v49 = vmul.f32 %v3203_v47, %v218_v48 }
 0x1d9   :  { %222 = vrot.lane.b32.xlu0 %v220_v49, %s3620_s23 }
 0x1da   :  { %v213_v50 = vpop.permute.xlu1 %212 }
 0x1db   :  { %v215_v51 = vmul.f32 %v3203_v47, %v213_v50 }
 0x24b   :  { %v223_v52 = vpop.permute.xlu0 %222 }
 0x24c   :  { %v3850_v53 = vadd.f32 %v223_v52, %v215_v51 }
 0x24e   :  { %3204 = vtanh.f32 %v3850_v53 }
 0x258   :  { %v3205_v60 = vpop.eup %3204 }
 0x259   :  { %228 = vrot.lane.b32.xlu1 %v3205_v60, %s3619_s22 }
 0x2cb   :  { %v229_v61 = vpop.permute.xlu1 %228 }
 0x2cc   :  { %v231_v62 = vmul.f32 %v3203_v47, %v229_v61 }
 0x2ce   :  { %233 = vrot.lane.b32.xlu0 %v231_v62, %s3620_s23 }
 0x340   :  { %v234_v63 = vpop.permute.xlu0 %233 }
 0x341   :  { %456 = vst.msk [vmem:[#allocation2] sm:$0xff] %vm53_vm1, %v234_v63  ;;  %463 = vst.msk [vmem:[#allocation5] sm:$0xff] %vm53_vm1, %v234_v63  ;;  %2833 = vmatmul.mubr.msk.f32.vlgmr.msra.gmra.mrb[0].mxu1 %vm53_vm1, %v234_v63 }
 0x342   :  { %2984 = vmatpush1.bf16.msra.mxu1 %v3729_v6 }
 0x343   :  { %2985 = vmatprep.subr.bf16.mxu1 %v3616_v5 }
 0x346   :  { %2987 = vmatpush1.bf16.msra.mxu1 %v3736_v8 }
 0x347   :  { %2988 = vmatprep.subr.bf16.mxu1 %v3616_v5 }
 0x34a   :  { %2990 = vmatpush1.bf16.msra.mxu1 %v3746_v12 }
 0x34b   :  { %2991 = vmatprep.subr.bf16.mxu1 %v3616_v5 }
 0x34e   :  { %2993 = vmatpush1.bf16.msra.mxu1 %v3757_v16 }
 0x34f   :  { %2994 = vmatprep.subr.bf16.mxu1 %v3616_v5 }
 0x352   :  { %2996 = vmatpush1.bf16.msra.mxu1 %v3768_v19 }
 0x353   :  { %2997 = vmatprep.subr.bf16.mxu1 %v3616_v5 }
 0x356   :  { %2999 = vmatpush1.bf16.msra.mxu1 %v3778_v22 }
 0x357   :  { %3000 = vmatprep.subr.bf16.mxu1 %v3616_v5 }
 0x35a   :  { %3002 = vmatpush1.bf16.msra.mxu1 %v3788_v25 }
 0x35b   :  { %3003 = vmatprep.subr.bf16.mxu1 %v3616_v5 }
 0x35e   :  { %3005 = vmatpush1.bf16.msra.mxu1 %v3798_v28 }
 0x35f   :  { %3006 = vmatprep.subr.bf16.mxu1 %v3616_v5 }
 0x362   :  { %3008 = vmatpush1.bf16.msra.mxu1 %v3808_v31 }
 0x363   :  { %3009 = vmatprep.subr.bf16.mxu1 %v3616_v5 }
 0x414   :  { %v303_v7 = vpop.f32.mrb[0].mxu1 }
 0x415   :  { %v2834_v10 = vpop.f32.mrb[1].mxu1  ;;  %v308_v11 = vadd.f32 %v303_v7, %v3901_v0  ;;  %v307_v13 = vadd.f32 %v303_v7, %v3906_v2  ;;  %v311_v14 = vadd.f32 %v303_v7, %v3911_v3  ;;  %v312_v17 = vadd.f32 %v303_v7, %v3916_v4 }
 0x416   :  { %v309_v18 = vadd.f32 %v303_v7, %v3921_v9  ;;  %v310_v20 = vadd.f32 %v303_v7, %v3929_v15  ;;  %v313_v24 = vadd.f32 %v303_v7, %v3937_v21  ;;  %v314_v26 = vadd.f32 %v303_v7, %v3942_v23 }
 0x417   :  { %3206 = vtanh.f32 %v308_v11  ;;  %v315_v32 = vadd.f32 %v303_v7, %v3949_v27  ;;  %v316_v33 = vadd.f32 %v303_v7, %v3954_v29 }
 0x418   :  { %3208 = vtanh.f32 %v307_v13 }
 0x419   :  { %3210 = vtanh.f32 %v311_v14  ;;  %v467_v14 = vld [vmem:[#allocation2] sm:$0xff] }
 0x41a   :  { %3212 = vtanh.f32 %v312_v17 }
 0x41b   :  { %3214 = vtanh.f32 %v309_v18 }
 0x41c   :  { %3216 = vtanh.f32 %v310_v20 }
 0x41d   :  { %3218 = vtanh.f32 %v313_v24 }
 0x41e   :  { %3220 = vtanh.f32 %v314_v26 }
 0x41f   :  { %3222 = vtanh.f32 %v315_v32 }
 0x420   :  { %3224 = vtanh.f32 %v316_v33 }
 0x421   :  { %v3207_v34 = vpop.eup %3206 }
 0x422   :  { %v3209_v35 = vpop.eup %3208  ;;  %v328_v36 = vmul.f32 %v3207_v34, %v3959_v30 }
 0x423   :  { %v3211_v37 = vpop.eup %3210  ;;  %v327_v39 = vmul.f32 %v3209_v35, %v3959_v30 }
 0x424   :  { %v3213_v40 = vpop.eup %3212  ;;  %v340_v41 = vsel %vm53_vm1, %v328_v36, 0.0  ;;  %v331_v42 = vmul.f32 %v3211_v37, %v3959_v30 }
 0x425   :  { %v3215_v43 = vpop.eup %3214  ;;  %341 = vadd.xlane.f32.xlu0 %v340_v41  ;;  %v337_v44 = vsel %vm53_vm1, %v327_v39, 0.0  ;;  %v332_v45 = vmul.f32 %v3213_v40, %v3959_v30 }
 0x426   :  { %v3217_v46 = vpop.eup %3216  ;;  %338 = vadd.xlane.f32.xlu1 %v337_v44  ;;  %v349_v47 = vsel %vm53_vm1, %v331_v42, 0.0  ;;  %v329_v48 = vmul.f32 %v3215_v43, %v3959_v30 }
 0x427   :  { %v3219_v49 = vpop.eup %3218  ;;  %v352_v50 = vsel %vm53_vm1, %v332_v45, 0.0  ;;  %v330_v51 = vmul.f32 %v3217_v46, %v3959_v30 }
 0x428   :  { %v3221_v52 = vpop.eup %3220  ;;  %v343_v54 = vsel %vm53_vm1, %v329_v48, 0.0  ;;  %v333_v55 = vmul.f32 %v3219_v49, %v3959_v30 }
 0x429   :  { %350 = vadd.xlane.f32.xlu0 %v349_v47  ;;  %v3223_v56 = vpop.eup %3222  ;;  %v346_v58 = vsel %vm53_vm1, %v330_v51, 0.0  ;;  %v334_v60 = vmul.f32 %v3221_v52, %v3959_v30 }
 0x42a   :  { %353 = vadd.xlane.f32.xlu1 %v352_v50  ;;  %v3225_v61 = vpop.eup %3224  ;;  %v355_v62 = vsel %vm53_vm1, %v333_v55, 0.0  ;;  %v335_v63 = vmul.f32 %v3223_v56, %v3959_v30 }
 0x42b   :  { %v358_v7 = vsel %vm53_vm1, %v334_v60, 0.0  ;;  %v336_v10 = vmul.f32 %v3225_v61, %v3959_v30 }
 0x42c   :  { %v361_v11 = vsel %vm53_vm1, %v335_v63, 0.0 }
 0x42d   :  { %344 = vadd.xlane.f32.xlu0 %v343_v54  ;;  %v364_v13 = vsel %vm53_vm1, %v336_v10, 0.0 }
 0x42e   :  { %347 = vadd.xlane.f32.xlu1 %v346_v58 }
 0x431   :  { %356 = vadd.xlane.f32.xlu0 %v355_v62 }
 0x432   :  { %359 = vadd.xlane.f32.xlu1 %v358_v7 }
 0x435   :  { %362 = vadd.xlane.f32.xlu0 %v361_v11 }
 0x436   :  { %365 = vadd.xlane.f32.xlu1 %v364_v13 }
 0x447   :  { %475 = vrot.lane.b32.xlu1 %v467_v14, %s3618_s24 }
 0x44b   :  { %458 = vrot.lane.b32.xlu1 %v3850_v53, %s3622_s26 }
 0x4b2   :  { %v342_v17 = vpop.xlane.xlu0 %341 }
 0x4b3   :  { %v339_v18 = vpop.xlane.xlu1 %338 }
 0x4b6   :  { %v351_v20 = vpop.xlane.xlu0 %350 }
 0x4b7   :  { %v354_v24 = vpop.xlane.xlu1 %353  ;;  %v367_v35 = vmax.f32 %v339_v18, %v351_v20 }
 0x4b8   :  { %v368_v36 = vmax.f32 %v342_v17, %v354_v24 }
 0x4ba   :  { %v345_v26 = vpop.xlane.xlu0 %344 }
 0x4bb   :  { %v348_v32 = vpop.xlane.xlu1 %347 }
 0x4be   :  { %v357_v33 = vpop.xlane.xlu0 %356 }
 0x4bf   :  { %v360_v34 = vpop.xlane.xlu1 %359  ;;  %v369_v37 = vmax.f32 %v345_v26, %v357_v33 }
 0x4c0   :  { %v370_v39 = vmax.f32 %v348_v32, %v360_v34 }
 0x4c2   :  { %v363_v40 = vpop.xlane.xlu0 %362  ;;  %v374_v44 = vmax.f32 %v369_v37, %v370_v39 }
 0x4c3   :  { %v371_v41 = vmax.f32 %v367_v35, %v363_v40  ;;  %v366_v42 = vpop.xlane.xlu1 %365 }
 0x4c4   :  { %v372_v43 = vmax.f32 %v368_v36, %v366_v42 }
 0x4c6   :  { %v373_v45 = vmax.f32 %v371_v41, %v372_v43 }
 0x4c7   :  { %v3986_v46 = vpop.permute.xlu1 %475 }
 0x4c8   :  { %v375_v53 = vmax.f32 %v373_v45, %v374_v44  ;;  %2721 = vmatprep.mubr.msk.f32.mxu1 %vm131_vm3, %v3986_v46 }
 0x4ca   :  { %v376_v47 = vsub.f32 %v339_v18, %v375_v53  ;;  %v377_v48 = vsub.f32 %v342_v17, %v375_v53  ;;  %v378_v49 = vsub.f32 %v345_v26, %v375_v53  ;;  %v379_v50 = vsub.f32 %v348_v32, %v375_v53 }
 0x4cb   :  { %v459_v51 = vpop.permute.xlu1 %458  ;;  %v380_v55 = vsub.f32 %v351_v20, %v375_v53  ;;  %v381_v58 = vsub.f32 %v354_v24, %v375_v53  ;;  %v382_v61 = vsub.f32 %v357_v33, %v375_v53  ;;  %v383_v63 = vsub.f32 %v360_v34, %v375_v53 }
 0x4cc   :  { %v386_v52 = vmul.f32 1.442695, %v376_v47  ;;  %v388_v54 = vmul.f32 1.442695, %v377_v48  ;;  %461 = vst.msk [vmem:[#allocation3] sm:$0xff] %vm53_vm1, %v459_v51  ;;  %v384_v11 = vsub.f32 %v363_v40, %v375_v53  ;;  %v385_v14 = vsub.f32 %v366_v42, %v375_v53  ;;  %v3995_v51 = vld [vmem:[%s4782_s3] sm:$0xff] }
 0x4cd   :  { %v390_v56 = vmul.f32 1.442695, %v378_v49  ;;  %v392_v60 = vmul.f32 1.442695, %v379_v50  ;;  %v394_v62 = vmul.f32 1.442695, %v380_v55 }
 0x4ce   :  { %3226 = vpow2.f32 %v386_v52  ;;  %v396_v7 = vmul.f32 1.442695, %v381_v58  ;;  %v398_v13 = vmul.f32 1.442695, %v382_v61  ;;  %v400_v17 = vmul.f32 1.442695, %v383_v63 }
 0x4cf   :  { %3228 = vpow2.f32 %v388_v54  ;;  %v402_v24 = vmul.f32 1.442695, %v384_v11  ;;  %v404_v33 = vmul.f32 1.442695, %v385_v14  ;;  %v4000_v52 = vld [vmem:[%s4782_s3 + $0x8] sm:$0xff]  ;;  %v4005_v54 = vld [vmem:[%s4782_s3 + $0x10] sm:$0xff] }
 0x4d0   :  { %3230 = vpow2.f32 %v390_v56  ;;  %v4010_v61 = vld [vmem:[%s4782_s3 + $0x18] sm:$0xff]  ;;  %v4018_v11 = vld [vmem:[%s4782_s3 + $0x20] sm:$0xff] }
 0x4d1   :  { %3232 = vpow2.f32 %v392_v60 }
 0x4d2   :  { %3234 = vpow2.f32 %v394_v62 }
 0x4d3   :  { %v468_v10 = vld [vmem:[#allocation3] sm:$0xff]  ;;  %3236 = vpow2.f32 %v396_v7 }
 0x4d4   :  { %560 = vrot.lane.b32.xlu1 %v468_v10, %s3620_s23  ;;  %3238 = vpow2.f32 %v398_v13 }
 0x4d5   :  { %3240 = vpow2.f32 %v400_v17 }
 0x4d6   :  { %3242 = vpow2.f32 %v402_v24 }
 0x4d7   :  { %3244 = vpow2.f32 %v404_v33 }
 0x4d8   :  { %v3227_v18 = vpop.eup %3226 }
 0x4d9   :  { %v3229_v20 = vpop.eup %3228 }
 0x4da   :  { %v406_v26 = vadd.f32 %v3229_v20, %v3227_v18  ;;  %v3231_v32 = vpop.eup %3230 }
 0x4db   :  { %v3233_v35 = vpop.eup %3232 }
 0x4dc   :  { %v407_v34 = vadd.f32 %v3231_v32, %v406_v26  ;;  %v3235_v37 = vpop.eup %3234 }
 0x4dd   :  { %v3237_v40 = vpop.eup %3236 }
 0x4de   :  { %v408_v36 = vadd.f32 %v3233_v35, %v407_v34  ;;  %v3239_v42 = vpop.eup %3238  ;;  %v4033_v34 = vld [vmem:[%s4782_s3 + $0x30] sm:$0xff] }
 0x4df   :  { %v3241_v44 = vpop.eup %3240 }
 0x4e0   :  { %v409_v39 = vadd.f32 %v3235_v37, %v408_v36  ;;  %v3243_v53 = vpop.eup %3242 }
 0x4e1   :  { %v3245_v48 = vpop.eup %3244 }
 0x4e2   :  { %v410_v41 = vadd.f32 %v3237_v40, %v409_v39 }
 0x4e4   :  { %v411_v43 = vadd.f32 %v3239_v42, %v410_v41 }
 0x4e6   :  { %v412_v45 = vadd.f32 %v3241_v44, %v411_v43 }
 0x4e8   :  { %v413_v47 = vadd.f32 %v3243_v53, %v412_v45 }
 0x4ea   :  { %v414_v49 = vadd.f32 %v3245_v48, %v413_v47  ;;  %v4047_v47 = vld [vmem:[%s4782_s3 + $0x40] sm:$0xff] }
 0x4ec   :  { %3246 = vrcp.f32 %v414_v49 }
 0x4f6   :  { %v3247_v50 = vpop.eup %3246 }
 0x4f7   :  { %v416_v55 = vmul.f32 %v3247_v50, %v3227_v18  ;;  %v417_v56 = vmul.f32 %v3247_v50, %v3229_v20  ;;  %v418_v58 = vmul.f32 %v3247_v50, %v3231_v32  ;;  %v419_v60 = vmul.f32 %v3247_v50, %v3233_v35  ;;  %v4026_v20 = vld [vmem:[%s4782_s3 + $0x28] sm:$0xff] }
 0x4f8   :  { %v420_v7 = vmul.f32 %v3247_v50, %v3235_v37  ;;  %v421_v13 = vmul.f32 %v3247_v50, %v3237_v40  ;;  %v422_v26 = vmul.f32 %v3247_v50, %v3239_v42  ;;  %v423_v36 = vmul.f32 %v3247_v50, %v3241_v44  ;;  %v4040_v40 = vld [vmem:[%s4782_s3 + $0x38] sm:$0xff] }
 0x4f9   :  { %v426_v62 = vmul.f32 %v416_v55, %v3995_v51  ;;  %v427_v63 = vmul.f32 %v417_v56, %v4000_v52  ;;  %v428_v10 = vmul.f32 %v418_v58, %v4005_v54  ;;  %v429_v14 = vmul.f32 %v419_v60, %v4010_v61  ;;  %v4054_v58 = vld [vmem:[%s4782_s3 + $0x48] sm:$0xff] }
 0x4fa   :  { %v430_v32 = vmul.f32 %v420_v7, %v4018_v11  ;;  %v431_v37 = vmul.f32 %v421_v13, %v4026_v20  ;;  %v424_v42 = vmul.f32 %v3247_v50, %v3243_v53  ;;  %v432_v43 = vmul.f32 %v422_v26, %v4033_v34 }
 0x4fb   :  { %v436_v17 = vsel %vm57_vm0, %v426_v62, 0.0  ;;  %v437_v18 = vsel %vm57_vm0, %v427_v63, 0.0  ;;  %v439_v33 = vsel %vm57_vm0, %v428_v10, 0.0  ;;  %v441_v39 = vsel %vm57_vm0, %v429_v14, 0.0 }
 0x4fc   :  { %v438_v24 = vadd.f32 %v437_v18, %v436_v17  ;;  %v443_v45 = vsel %vm57_vm0, %v430_v32, 0.0  ;;  %v425_v49 = vmul.f32 %v3247_v50, %v3245_v48  ;;  %v433_v55 = vmul.f32 %v423_v36, %v4040_v40 }
 0x4fd   :  { %v445_v56 = vsel %vm57_vm0, %v431_v37, 0.0  ;;  %v434_v60 = vmul.f32 %v424_v42, %v4047_v47  ;;  %v447_v62 = vsel %vm57_vm0, %v432_v43, 0.0 }
 0x4fe   :  { %v440_v35 = vadd.f32 %v439_v33, %v438_v24  ;;  %v435_v7 = vmul.f32 %v425_v49, %v4054_v58  ;;  %v449_v10 = vsel %vm57_vm0, %v433_v55, 0.0  ;;  %v2720_v24 = vld [vmem:[%s4798_s17 + $0x8] sm:$0xff] }
 0x4ff   :  { %v451_v50 = vsel %vm57_vm0, %v434_v60, 0.0 }
 0x500   :  { %v442_v41 = vadd.f32 %v441_v39, %v440_v35  ;;  %v453_v14 = vsel %vm57_vm0, %v435_v7, 0.0 }
 0x502   :  { %v444_v44 = vadd.f32 %v443_v45, %v442_v41 }
 0x504   :  { %v446_v53 = vadd.f32 %v445_v56, %v444_v44 }
 0x506   :  { %v448_v63 = vadd.f32 %v447_v62, %v446_v53 }
 0x508   :  { %v450_v48 = vadd.f32 %v449_v10, %v448_v63 }
 0x50a   :  { %v452_v13 = vadd.f32 %v451_v50, %v450_v48 }
 0x50c   :  { %v454_v17 = vadd.f32 %v453_v14, %v452_v13 }
 0x50e   :  { %462 = vst.msk [vmem:[#allocation4] sm:$0xff] %vm57_vm0, %v454_v17  ;;  %464 = vst.msk [vmem:[#allocation6] sm:$0xff] %vm57_vm0, %v454_v17 }
 0x515   :  { %v469_v18 = vld [vmem:[#allocation4] sm:$0xff] }
 0x516   :  { %471 = vrot.lane.b32.xlu0 %v469_v18, %s3617_s19 }
 0x546   :  { %v561_v49 = vpop.permute.xlu1 %560 }
 0x588   :  { %v472_v26 = vpop.permute.xlu0 %471 }
 0x589   :  { %v478_v32 = vsel %vm121_vm2, %v2720_v24, %v472_v26 }
 0x58a   :  { %v479_v33 = vsel %vm123_vm4, %v478_v32, %v3986_v46 }
 0x58b   :  { %547 = vmatmul.mubr.f32.vlgmr.msra.gmra.mrb[2].mxu1 %v479_v33 }
 0x58c   :  { %3011 = vmatpush3.bf16.msra.mxu1 %v3862_v57  ;;  %2843 = vmatprep.mubr.msk.f32.mxu1 %vm3621_vm5, %v3615_v1 }
 0x58d   :  { %3012 = vmatprep.subr.bf16.mxu1 %v3616_v5 }
 0x590   :  { %3014 = vmatpush3.bf16.msra.mxu1 %v3870_v59 }
 0x591   :  { %3042 = vmatprep.subr.bf16.mxu1 %v3616_v5 }
 0x65e   :  { %v548_v35 = vpop.f32.mrb[2].mxu1 }
 0x65f   :  { %v549_v36 = vadd.f32 %v3844_v38, %v548_v35  ;;  %v550_v37 = vpop.f32.mrb[3].mxu1 }
 0x661   :  { %3248 = vtanh.f32 %v549_v36  ;;  %v2722_v46 = vmul.f32 -1.442695, %v549_v36 }
 0x663   :  { %3250 = vpow2.f32 %v2722_v46 }
 0x66b   :  { %v3249_v39 = vpop.eup %3248 }
 0x66c   :  { %565 = vrot.lane.b32.xlu0 %v3249_v39, %s3619_s22 }
 0x66d   :  { %v3251_v41 = vpop.eup %3250 }
 0x66e   :  { %v555_v42 = vadd.f32 1.0, %v3251_v41 }
 0x670   :  { %3252 = vrcp.f32 %v555_v42 }
 0x67a   :  { %v3253_v43 = vpop.eup %3252 }
 0x67b   :  { %v563_v55 = vmul.f32 %v3253_v43, %v561_v49 }
 0x6de   :  { %v566_v45 = vpop.permute.xlu0 %565 }
 0x6df   :  { %v568_v44 = vmul.f32 %v3253_v43, %v566_v45 }
 0x6e1   :  { %570 = vrot.lane.b32.xlu0 %v568_v44, %s3620_s23 }
 0x753   :  { %v571_v56 = vpop.permute.xlu0 %570 }
 0x754   :  { %v4080_v53 = vadd.f32 %v571_v56, %v563_v55 }
 0x756   :  { %3254 = vtanh.f32 %v4080_v53 }
 0x760   :  { %v3255_v60 = vpop.eup %3254 }
 0x761   :  { %576 = vrot.lane.b32.xlu1 %v3255_v60, %s3619_s22 }
 0x7d3   :  { %v577_v62 = vpop.permute.xlu1 %576 }
 0x7d4   :  { %v579_v63 = vmul.f32 %v3253_v43, %v577_v62 }
 0x7d6   :  { %581 = vrot.lane.b32.xlu0 %v579_v63, %s3620_s23 }
 0x848   :  { %v582_v7 = vpop.permute.xlu0 %581 }
 0x849   :  { %804 = vst.msk [vmem:[#allocation2] sm:$0xff] %vm53_vm1, %v582_v7  ;;  %812 = vst.msk [vmem:[#allocation5 + $0x8] sm:$0xff] %vm53_vm1, %v582_v7  ;;  %2844 = vmatmul.mubr.msk.f32.vlgmr.msra.gmra.mrb[4].mxu1 %vm53_vm1, %v582_v7 }
 0x84a   :  { %3044 = vmatpush3.bf16.msra.mxu1 %v3862_v57  ;;  %2854 = vmatprep.mubr.msk.f32.mxu1 %vm3621_vm5, %v3615_v1 }
 0x84b   :  { %3045 = vmatprep.subr.bf16.mxu1 %v3616_v5 }
 0x84e   :  { %3047 = vmatpush3.bf16.msra.mxu1 %v3870_v59 }
 0x84f   :  { %3048 = vmatprep.subr.bf16.mxu1 %v3616_v5 }
 0x91c   :  { %v651_v10 = vpop.f32.mrb[4].mxu1 }
 0x91d   :  { %v2845_v48 = vpop.f32.mrb[5].mxu1  ;;  %v656_v50 = vadd.f32 %v651_v10, %v3901_v0  ;;  %v655_v13 = vadd.f32 %v651_v10, %v3906_v2  ;;  %v659_v14 = vadd.f32 %v651_v10, %v3911_v3  ;;  %v660_v17 = vadd.f32 %v651_v10, %v3916_v4 }
 0x91e   :  { %v657_v18 = vadd.f32 %v651_v10, %v3921_v9  ;;  %v658_v24 = vadd.f32 %v651_v10, %v3929_v15  ;;  %v661_v26 = vadd.f32 %v651_v10, %v3937_v21  ;;  %v662_v32 = vadd.f32 %v651_v10, %v3942_v23 }
 0x91f   :  { %3256 = vtanh.f32 %v656_v50  ;;  %v663_v33 = vadd.f32 %v651_v10, %v3949_v27  ;;  %v664_v35 = vadd.f32 %v651_v10, %v3954_v29 }
 0x920   :  { %3258 = vtanh.f32 %v655_v13 }
 0x921   :  { %3260 = vtanh.f32 %v659_v14 }
 0x922   :  { %3262 = vtanh.f32 %v660_v17 }
 0x923   :  { %3264 = vtanh.f32 %v657_v18 }
 0x924   :  { %3266 = vtanh.f32 %v658_v24 }
 0x925   :  { %3268 = vtanh.f32 %v661_v26 }
 0x926   :  { %3270 = vtanh.f32 %v662_v32 }
 0x927   :  { %3272 = vtanh.f32 %v663_v33 }
 0x928   :  { %3274 = vtanh.f32 %v664_v35 }
 0x929   :  { %v3257_v36 = vpop.eup %3256 }
 0x92a   :  { %v3259_v37 = vpop.eup %3258  ;;  %v676_v39 = vmul.f32 %v3257_v36, %v3959_v30 }
 0x92b   :  { %v3261_v46 = vpop.eup %3260  ;;  %v675_v41 = vmul.f32 %v3259_v37, %v3959_v30 }
 0x92c   :  { %v3263_v42 = vpop.eup %3262  ;;  %v688_v43 = vsel %vm53_vm1, %v676_v39, 0.0  ;;  %v679_v45 = vmul.f32 %v3261_v46, %v3959_v30  ;;  %v817_v39 = vld [vmem:[#allocation2] sm:$0xff] }
 0x92d   :  { %v3265_v44 = vpop.eup %3264  ;;  %689 = vadd.xlane.f32.xlu0 %v688_v43  ;;  %v685_v49 = vsel %vm53_vm1, %v675_v41, 0.0  ;;  %v680_v55 = vmul.f32 %v3263_v42, %v3959_v30 }
 0x92e   :  { %v3267_v56 = vpop.eup %3266  ;;  %686 = vadd.xlane.f32.xlu1 %v685_v49  ;;  %v697_v60 = vsel %vm53_vm1, %v679_v45, 0.0  ;;  %v677_v62 = vmul.f32 %v3265_v44, %v3959_v30 }
 0x92f   :  { %v3269_v63 = vpop.eup %3268  ;;  %v700_v7 = vsel %vm53_vm1, %v680_v55, 0.0  ;;  %v678_v10 = vmul.f32 %v3267_v56, %v3959_v30 }
 0x930   :  { %v3271_v48 = vpop.eup %3270  ;;  %v691_v50 = vsel %vm53_vm1, %v677_v62, 0.0  ;;  %v681_v13 = vmul.f32 %v3269_v63, %v3959_v30 }
 0x931   :  { %698 = vadd.xlane.f32.xlu0 %v697_v60  ;;  %v3273_v14 = vpop.eup %3272  ;;  %v694_v17 = vsel %vm53_vm1, %v678_v10, 0.0  ;;  %v682_v18 = vmul.f32 %v3271_v48, %v3959_v30 }
 0x932   :  { %701 = vadd.xlane.f32.xlu1 %v700_v7  ;;  %v3275_v24 = vpop.eup %3274  ;;  %v703_v26 = vsel %vm53_vm1, %v681_v13, 0.0  ;;  %v683_v32 = vmul.f32 %v3273_v14, %v3959_v30 }
 0x933   :  { %v706_v33 = vsel %vm53_vm1, %v682_v18, 0.0  ;;  %v684_v35 = vmul.f32 %v3275_v24, %v3959_v30 }
 0x934   :  { %v709_v36 = vsel %vm53_vm1, %v683_v32, 0.0 }
 0x935   :  { %692 = vadd.xlane.f32.xlu0 %v691_v50  ;;  %v712_v37 = vsel %vm53_vm1, %v684_v35, 0.0 }
 0x936   :  { %695 = vadd.xlane.f32.xlu1 %v694_v17 }
 0x939   :  { %704 = vadd.xlane.f32.xlu0 %v703_v26 }
 0x93a   :  { %707 = vadd.xlane.f32.xlu1 %v706_v33 }
 0x93d   :  { %710 = vadd.xlane.f32.xlu0 %v709_v36 }
 0x93e   :  { %713 = vadd.xlane.f32.xlu1 %v712_v37 }
 0x94f   :  { %825 = vrot.lane.b32.xlu1 %v817_v39, %s3618_s24 }
 0x953   :  { %806 = vrot.lane.b32.xlu1 %v4080_v53, %s3622_s26 }
 0x9ba   :  { %v690_v46 = vpop.xlane.xlu0 %689 }
 0x9bb   :  { %v687_v41 = vpop.xlane.xlu1 %686 }
 0x9be   :  { %v699_v42 = vpop.xlane.xlu0 %698 }
 0x9bf   :  { %v702_v43 = vpop.xlane.xlu1 %701  ;;  %v715_v56 = vmax.f32 %v687_v41, %v699_v42 }
 0x9c0   :  { %v716_v60 = vmax.f32 %v690_v46, %v702_v43 }
 0x9c2   :  { %v693_v45 = vpop.xlane.xlu0 %692 }
 0x9c3   :  { %v696_v44 = vpop.xlane.xlu1 %695 }
 0x9c6   :  { %v705_v49 = vpop.xlane.xlu0 %704 }
 0x9c7   :  { %v708_v55 = vpop.xlane.xlu1 %707  ;;  %v717_v62 = vmax.f32 %v693_v45, %v705_v49 }
 0x9c8   :  { %v718_v63 = vmax.f32 %v696_v44, %v708_v55 }
 0x9ca   :  { %v711_v7 = vpop.xlane.xlu0 %710  ;;  %v722_v13 = vmax.f32 %v717_v62, %v718_v63 }
 0x9cb   :  { %v719_v10 = vmax.f32 %v715_v56, %v711_v7  ;;  %v714_v48 = vpop.xlane.xlu1 %713 }
 0x9cc   :  { %v720_v50 = vmax.f32 %v716_v60, %v714_v48 }
 0x9ce   :  { %v721_v14 = vmax.f32 %v719_v10, %v720_v50 }
 0x9cf   :  { %v4127_v17 = vpop.permute.xlu1 %825 }
 0x9d0   :  { %v723_v53 = vmax.f32 %v721_v14, %v722_v13  ;;  %2725 = vmatprep.mubr.msk.f32.mxu0 %vm131_vm3, %v4127_v17 }
 0x9d2   :  { %v724_v18 = vsub.f32 %v687_v41, %v723_v53  ;;  %v725_v24 = vsub.f32 %v690_v46, %v723_v53  ;;  %v726_v26 = vsub.f32 %v693_v45, %v723_v53  ;;  %v727_v32 = vsub.f32 %v696_v44, %v723_v53 }
 0x9d3   :  { %v807_v33 = vpop.permute.xlu1 %806  ;;  %v728_v37 = vsub.f32 %v699_v42, %v723_v53  ;;  %v729_v56 = vsub.f32 %v702_v43, %v723_v53  ;;  %v730_v62 = vsub.f32 %v705_v49, %v723_v53  ;;  %v731_v10 = vsub.f32 %v708_v55, %v723_v53 }
 0x9d4   :  { %v734_v35 = vmul.f32 1.442695, %v724_v18  ;;  %v736_v36 = vmul.f32 1.442695, %v725_v24  ;;  %809 = vst.msk [vmem:[#allocation3] sm:$0xff] %vm53_vm1, %v807_v33  ;;  %v732_v45 = vsub.f32 %v711_v7, %v723_v53  ;;  %v733_v50 = vsub.f32 %v714_v48, %v723_v53 }
 0x9d5   :  { %v738_v39 = vmul.f32 1.442695, %v726_v26  ;;  %v740_v60 = vmul.f32 1.442695, %v727_v32  ;;  %v742_v63 = vmul.f32 1.442695, %v728_v37 }
 0x9d6   :  { %3276 = vpow2.f32 %v734_v35  ;;  %v744_v41 = vmul.f32 1.442695, %v729_v56  ;;  %v746_v44 = vmul.f32 1.442695, %v730_v62  ;;  %v748_v42 = vmul.f32 1.442695, %v731_v10 }
 0x9d7   :  { %3278 = vpow2.f32 %v736_v36  ;;  %v750_v43 = vmul.f32 1.442695, %v732_v45  ;;  %v752_v24 = vmul.f32 1.442695, %v733_v50 }
 0x9d8   :  { %3280 = vpow2.f32 %v738_v39 }
 0x9d9   :  { %3282 = vpow2.f32 %v740_v60 }
 0x9da   :  { %3284 = vpow2.f32 %v742_v63 }
 0x9db   :  { %v818_v46 = vld [vmem:[#allocation3] sm:$0xff]  ;;  %3286 = vpow2.f32 %v744_v41 }
 0x9dc   :  { %910 = vrot.lane.b32.xlu1 %v818_v46, %s3620_s23  ;;  %3288 = vpow2.f32 %v746_v44 }
 0x9dd   :  { %3290 = vpow2.f32 %v748_v42 }
 0x9de   :  { %3292 = vpow2.f32 %v750_v43 }
 0x9df   :  { %3294 = vpow2.f32 %v752_v24 }
 0x9e0   :  { %v3277_v13 = vpop.eup %3276 }
 0x9e1   :  { %v3279_v14 = vpop.eup %3278 }
 0x9e2   :  { %v754_v18 = vadd.f32 %v3279_v14, %v3277_v13  ;;  %v3281_v49 = vpop.eup %3280 }
 0x9e3   :  { %v3283_v26 = vpop.eup %3282 }
 0x9e4   :  { %v755_v55 = vadd.f32 %v3281_v49, %v754_v18  ;;  %v3285_v33 = vpop.eup %3284 }
 0x9e5   :  { %v3287_v35 = vpop.eup %3286 }
 0x9e6   :  { %v756_v32 = vadd.f32 %v3283_v26, %v755_v55  ;;  %v3289_v48 = vpop.eup %3288 }
 0x9e7   :  { %v3291_v37 = vpop.eup %3290 }
 0x9e8   :  { %v757_v7 = vadd.f32 %v3285_v33, %v756_v32  ;;  %v3293_v56 = vpop.eup %3292 }
 0x9e9   :  { %v3295_v62 = vpop.eup %3294 }
 0x9ea   :  { %v758_v36 = vadd.f32 %v3287_v35, %v757_v7 }
 0x9ec   :  { %v759_v53 = vadd.f32 %v3289_v48, %v758_v36 }
 0x9ee   :  { %v760_v39 = vadd.f32 %v3291_v37, %v759_v53 }
 0x9f0   :  { %v761_v60 = vadd.f32 %v3293_v56, %v760_v39 }
 0x9f2   :  { %v762_v63 = vadd.f32 %v3295_v62, %v761_v60 }
 0x9f4   :  { %3296 = vrcp.f32 %v762_v63 }
 0x9fe   :  { %v3297_v10 = vpop.eup %3296 }
 0x9ff   :  { %v764_v41 = vmul.f32 %v3297_v10, %v3277_v13  ;;  %v765_v46 = vmul.f32 %v3297_v10, %v3279_v14  ;;  %v766_v45 = vmul.f32 %v3297_v10, %v3281_v49  ;;  %v767_v44 = vmul.f32 %v3297_v10, %v3283_v26 }
 0xa00   :  { %v768_v43 = vmul.f32 %v3297_v10, %v3285_v33  ;;  %v769_v24 = vmul.f32 %v3297_v10, %v3287_v35  ;;  %v770_v53 = vmul.f32 %v3297_v10, %v3289_v48  ;;  %v771_v26 = vmul.f32 %v3297_v10, %v3291_v37 }
 0xa01   :  { %v774_v50 = vmul.f32 %v764_v41, %v3995_v51  ;;  %v775_v42 = vmul.f32 %v765_v46, %v4000_v52  ;;  %v776_v18 = vmul.f32 %v766_v45, %v4005_v54  ;;  %v777_v55 = vmul.f32 %v767_v44, %v4010_v61 }
 0xa02   :  { %v778_v13 = vmul.f32 %v768_v43, %v4018_v11  ;;  %v779_v39 = vmul.f32 %v769_v24, %v4026_v20  ;;  %v772_v35 = vmul.f32 %v3297_v10, %v3293_v56  ;;  %v780_v63 = vmul.f32 %v770_v53, %v4033_v34 }
 0xa03   :  { %v784_v32 = vsel %vm57_vm0, %v774_v50, 0.0  ;;  %v785_v7 = vsel %vm57_vm0, %v775_v42, 0.0  ;;  %v787_v14 = vsel %vm57_vm0, %v776_v18, 0.0  ;;  %v789_v33 = vsel %vm57_vm0, %v777_v55, 0.0 }
 0xa04   :  { %v786_v36 = vadd.f32 %v785_v7, %v784_v32  ;;  %v791_v41 = vsel %vm57_vm0, %v778_v13, 0.0  ;;  %v773_v45 = vmul.f32 %v3297_v10, %v3295_v62  ;;  %v781_v48 = vmul.f32 %v771_v26, %v4040_v40 }
 0xa05   :  { %v793_v44 = vsel %vm57_vm0, %v779_v39, 0.0  ;;  %v782_v42 = vmul.f32 %v772_v35, %v4047_v47  ;;  %v795_v37 = vsel %vm57_vm0, %v780_v63, 0.0 }
 0xa06   :  { %v788_v49 = vadd.f32 %v787_v14, %v786_v36  ;;  %v783_v18 = vmul.f32 %v773_v45, %v4054_v58  ;;  %v797_v56 = vsel %vm57_vm0, %v781_v48, 0.0  ;;  %v2724_v36 = vld [vmem:[%s4798_s17 + $0x10] sm:$0xff] }
 0xa07   :  { %v799_v55 = vsel %vm57_vm0, %v782_v42, 0.0 }
 0xa08   :  { %v790_v60 = vadd.f32 %v789_v33, %v788_v49  ;;  %v801_v62 = vsel %vm57_vm0, %v783_v18, 0.0 }
 0xa0a   :  { %v792_v46 = vadd.f32 %v791_v41, %v790_v60 }
 0xa0c   :  { %v794_v50 = vadd.f32 %v793_v44, %v792_v46 }
 0xa0e   :  { %v796_v43 = vadd.f32 %v795_v37, %v794_v50 }
 0xa10   :  { %v798_v24 = vadd.f32 %v797_v56, %v796_v43 }
 0xa12   :  { %v800_v32 = vadd.f32 %v799_v55, %v798_v24 }
 0xa14   :  { %v802_v10 = vadd.f32 %v801_v62, %v800_v32 }
 0xa16   :  { %810 = vst.msk [vmem:[#allocation4] sm:$0xff] %vm57_vm0, %v802_v10  ;;  %814 = vst.msk [vmem:[#allocation6 + $0x8] sm:$0xff] %vm57_vm0, %v802_v10 }
 0xa1d   :  { %v819_v7 = vld [vmem:[#allocation4] sm:$0xff] }
 0xa1e   :  { %821 = vrot.lane.b32.xlu0 %v819_v7, %s3617_s19 }
 0xa4e   :  { %v911_v45 = vpop.permute.xlu1 %910 }
 0xa90   :  { %v822_v53 = vpop.permute.xlu0 %821 }
 0xa91   :  { %v828_v13 = vsel %vm121_vm2, %v2724_v36, %v822_v53 }
 0xa92   :  { %v829_v14 = vsel %vm123_vm4, %v828_v13, %v4127_v17 }
 0xa93   :  { %897 = vmatmul.mubr.f32.vlgmr.msra.gmra.mrb[2].mxu0 %v829_v14 }
 0xa94   :  { %3077 = vmatpush3.bf16.msra.mxu0 %v3862_v57  ;;  %2865 = vmatprep.mubr.msk.f32.mxu0 %vm3621_vm5, %v3615_v1 }
 0xa95   :  { %3078 = vmatprep.subr.bf16.mxu0 %v3616_v5 }
 0xa98   :  { %3080 = vmatpush3.bf16.msra.mxu0 %v3870_v59 }
 0xa99   :  { %3081 = vmatprep.subr.bf16.mxu0 %v3616_v5 }
 0xb66   :  { %v898_v49 = vpop.f32.mrb[2].mxu0 }
 0xb67   :  { %v899_v26 = vadd.f32 %v3844_v38, %v898_v49  ;;  %v900_v39 = vpop.f32.mrb[3].mxu0 }
 0xb69   :  { %3298 = vtanh.f32 %v899_v26  ;;  %v2726_v17 = vmul.f32 -1.442695, %v899_v26 }
 0xb6b   :  { %3300 = vpow2.f32 %v2726_v17 }
 0xb73   :  { %v3299_v33 = vpop.eup %3298 }
 0xb74   :  { %915 = vrot.lane.b32.xlu0 %v3299_v33, %s3619_s22 }
 0xb75   :  { %v3301_v60 = vpop.eup %3300 }
 0xb76   :  { %v905_v35 = vadd.f32 1.0, %v3301_v60 }
 0xb78   :  { %3302 = vrcp.f32 %v905_v35 }
 0xb82   :  { %v3303_v63 = vpop.eup %3302 }
 0xb83   :  { %v913_v48 = vmul.f32 %v3303_v63, %v911_v45 }
 0xbe6   :  { %v916_v41 = vpop.permute.xlu0 %915 }
 0xbe7   :  { %v918_v46 = vmul.f32 %v3303_v63, %v916_v41 }
 0xbe9   :  { %920 = vrot.lane.b32.xlu0 %v918_v46, %s3620_s23 }
 0xc5b   :  { %v921_v44 = vpop.permute.xlu0 %920 }
 0xc5c   :  { %v4171_v50 = vadd.f32 %v921_v44, %v913_v48  ;;  %v4223_v44 = vld [vmem:[%s4787_s8] ss:$0 sm:$0xff] }
 0xc5e   :  { %3304 = vtanh.f32 %v4171_v50 }
 0xc68   :  { %v3305_v38 = vpop.eup %3304 }
 0xc69   :  { %926 = vrot.lane.b32.xlu1 %v3305_v38, %s3619_s22 }
 0xcdb   :  { %v927_v42 = vpop.permute.xlu1 %926 }
 0xcdc   :  { %v929_v37 = vmul.f32 %v3303_v63, %v927_v42 }
 0xcde   :  { %931 = vrot.lane.b32.xlu0 %v929_v37, %s3620_s23 }
 0xd50   :  { %v932_v43 = vpop.permute.xlu0 %931 }
 0xd51   :  { %1154 = vst.msk [vmem:[#allocation2] sm:$0xff] %vm53_vm1, %v932_v43  ;;  %1162 = vst.msk [vmem:[#allocation5 + $0x10] sm:$0xff] %vm53_vm1, %v932_v43  ;;  %2855 = vmatmul.mubr.msk.f32.vlgmr.msra.gmra.mrb[6].mxu1 %vm53_vm1, %v932_v43 }
 0xd52   :  { %3050 = vmatpush1.bf16.msra.mxu1 %v3729_v6 }
 0xd53   :  { %3051 = vmatprep.subr.bf16.mxu1 %v3616_v5 }
 0xd56   :  { %3053 = vmatpush1.bf16.msra.mxu1 %v3736_v8 }
 0xd57   :  { %3054 = vmatprep.subr.bf16.mxu1 %v3616_v5 }
 0xd5a   :  { %3056 = vmatpush1.bf16.msra.mxu1 %v3746_v12 }
 0xd5b   :  { %3057 = vmatprep.subr.bf16.mxu1 %v3616_v5 }
 0xd5e   :  { %3059 = vmatpush1.bf16.msra.mxu1 %v3757_v16 }
 0xd5f   :  { %3060 = vmatprep.subr.bf16.mxu1 %v3616_v5 }
 0xd62   :  { %3062 = vmatpush1.bf16.msra.mxu1 %v3768_v19 }
 0xd63   :  { %3063 = vmatprep.subr.bf16.mxu1 %v3616_v5 }
 0xd66   :  { %3065 = vmatpush1.bf16.msra.mxu1 %v3778_v22 }
 0xd67   :  { %3066 = vmatprep.subr.bf16.mxu1 %v3616_v5 }
 0xd6a   :  { %3068 = vmatpush1.bf16.msra.mxu1 %v3788_v25 }
 0xd6b   :  { %3069 = vmatprep.subr.bf16.mxu1 %v3616_v5 }
 0xd6e   :  { %3071 = vmatpush1.bf16.msra.mxu1 %v3798_v28 }
 0xd6f   :  { %3072 = vmatprep.subr.bf16.mxu1 %v3616_v5 }
 0xd72   :  { %3074 = vmatpush1.bf16.msra.mxu1 %v3808_v31 }
 0xd73   :  { %3108 = vmatprep.subr.bf16.mxu1 %v3616_v5 }
 0xe24   :  { %v1001_v18 = vpop.f32.mrb[6].mxu1 }
 0xe25   :  { %v2856_v56 = vpop.f32.mrb[7].mxu1  ;;  %v1006_v24 = vadd.f32 %v1001_v18, %v3901_v0  ;;  %v1005_v55 = vadd.f32 %v1001_v18, %v3906_v2  ;;  %v1009_v32 = vadd.f32 %v1001_v18, %v3911_v3  ;;  %v1010_v62 = vadd.f32 %v1001_v18, %v3916_v4 }
 0xe26   :  { %v1007_v10 = vadd.f32 %v1001_v18, %v3921_v9  ;;  %v1008_v7 = vadd.f32 %v1001_v18, %v3929_v15  ;;  %v1011_v36 = vadd.f32 %v1001_v18, %v3937_v21  ;;  %v1012_v0 = vadd.f32 %v1001_v18, %v3942_v23 }
 0xe27   :  { %3306 = vtanh.f32 %v1006_v24  ;;  %v1013_v2 = vadd.f32 %v1001_v18, %v3949_v27  ;;  %v1014_v3 = vadd.f32 %v1001_v18, %v3954_v29 }
 0xe28   :  { %3308 = vtanh.f32 %v1005_v55  ;;  %v1167_v55 = vld [vmem:[#allocation2] sm:$0xff] }
 0xe29   :  { %3310 = vtanh.f32 %v1009_v32 }
 0xe2a   :  { %3312 = vtanh.f32 %v1010_v62 }
 0xe2b   :  { %3314 = vtanh.f32 %v1007_v10 }
 0xe2c   :  { %3316 = vtanh.f32 %v1008_v7 }
 0xe2d   :  { %3318 = vtanh.f32 %v1011_v36 }
 0xe2e   :  { %3320 = vtanh.f32 %v1012_v0 }
 0xe2f   :  { %3322 = vtanh.f32 %v1013_v2 }
 0xe30   :  { %3324 = vtanh.f32 %v1014_v3 }
 0xe31   :  { %v3307_v4 = vpop.eup %3306 }
 0xe32   :  { %v3309_v53 = vpop.eup %3308  ;;  %v1026_v9 = vmul.f32 %v3307_v4, %v3959_v30 }
 0xe33   :  { %v3311_v13 = vpop.eup %3310  ;;  %v1025_v15 = vmul.f32 %v3309_v53, %v3959_v30 }
 0xe34   :  { %v3313_v14 = vpop.eup %3312  ;;  %v1038_v21 = vsel %vm53_vm1, %v1026_v9, 0.0  ;;  %v1029_v49 = vmul.f32 %v3311_v13, %v3959_v30 }
 0xe35   :  { %v3315_v23 = vpop.eup %3314  ;;  %1039 = vadd.xlane.f32.xlu0 %v1038_v21  ;;  %v1035_v27 = vsel %vm53_vm1, %v1025_v15, 0.0  ;;  %v1030_v29 = vmul.f32 %v3313_v14, %v3959_v30 }
 0xe36   :  { %v3317_v26 = vpop.eup %3316  ;;  %1036 = vadd.xlane.f32.xlu1 %v1035_v27  ;;  %v1047_v39 = vsel %vm53_vm1, %v1029_v49, 0.0  ;;  %v1027_v33 = vmul.f32 %v3315_v23, %v3959_v30 }
 0xe37   :  { %v3319_v17 = vpop.eup %3318  ;;  %v1050_v60 = vsel %vm53_vm1, %v1030_v29, 0.0  ;;  %v1028_v35 = vmul.f32 %v3317_v26, %v3959_v30 }
 0xe38   :  { %v3321_v63 = vpop.eup %3320  ;;  %v1041_v41 = vsel %vm53_vm1, %v1027_v33, 0.0  ;;  %v1031_v46 = vmul.f32 %v3319_v17, %v3959_v30 }
 0xe39   :  { %1048 = vadd.xlane.f32.xlu0 %v1047_v39  ;;  %v3323_v45 = vpop.eup %3322  ;;  %v1044_v48 = vsel %vm53_vm1, %v1028_v35, 0.0  ;;  %v1032_v38 = vmul.f32 %v4223_v44, %v3321_v63 }
 0xe3a   :  { %1051 = vadd.xlane.f32.xlu1 %v1050_v60  ;;  %v3325_v42 = vpop.eup %3324  ;;  %v1053_v37 = vsel %vm53_vm1, %v1031_v46, 0.0  ;;  %v1033_v43 = vmul.f32 %v4223_v44, %v3323_v45 }
 0xe3b   :  { %v1056_v30 = vsel %vm53_vm1, %v1032_v38, 0.0  ;;  %v1034_v18 = vmul.f32 %v4223_v44, %v3325_v42 }
 0xe3c   :  { %v1059_v56 = vsel %vm53_vm1, %v1033_v43, 0.0 }
 0xe3d   :  { %1042 = vadd.xlane.f32.xlu0 %v1041_v41  ;;  %v1062_v24 = vsel %vm53_vm1, %v1034_v18, 0.0 }
 0xe3e   :  { %1045 = vadd.xlane.f32.xlu1 %v1044_v48 }
 0xe41   :  { %1054 = vadd.xlane.f32.xlu0 %v1053_v37 }
 0xe42   :  { %1057 = vadd.xlane.f32.xlu1 %v1056_v30 }
 0xe45   :  { %1060 = vadd.xlane.f32.xlu0 %v1059_v56 }
 0xe46   :  { %1063 = vadd.xlane.f32.xlu1 %v1062_v24 }
 0xe57   :  { %1175 = vrot.lane.b32.xlu1 %v1167_v55, %s3618_s24 }
 0xe5b   :  { %1156 = vrot.lane.b32.xlu1 %v4171_v50, %s3622_s26 }
 0xec2   :  { %v1040_v32 = vpop.xlane.xlu0 %1039 }
 0xec3   :  { %v1037_v62 = vpop.xlane.xlu1 %1036 }
 0xec6   :  { %v1049_v10 = vpop.xlane.xlu0 %1048 }
 0xec7   :  { %v1052_v7 = vpop.xlane.xlu1 %1051  ;;  %v1065_v4 = vmax.f32 %v1037_v62, %v1049_v10 }
 0xec8   :  { %v1066_v53 = vmax.f32 %v1040_v32, %v1052_v7 }
 0xeca   :  { %v1043_v36 = vpop.xlane.xlu0 %1042 }
 0xecb   :  { %v1046_v0 = vpop.xlane.xlu1 %1045 }
 0xece   :  { %v1055_v2 = vpop.xlane.xlu0 %1054 }
 0xecf   :  { %v1058_v3 = vpop.xlane.xlu1 %1057  ;;  %v1067_v9 = vmax.f32 %v1043_v36, %v1055_v2 }
 0xed0   :  { %v1068_v13 = vmax.f32 %v1046_v0, %v1058_v3 }
 0xed2   :  { %v1061_v15 = vpop.xlane.xlu0 %1060  ;;  %v1072_v23 = vmax.f32 %v1067_v9, %v1068_v13 }
 0xed3   :  { %v1069_v14 = vmax.f32 %v1065_v4, %v1061_v15  ;;  %v1064_v21 = vpop.xlane.xlu1 %1063 }
 0xed4   :  { %v1070_v49 = vmax.f32 %v1066_v53, %v1064_v21 }
 0xed6   :  { %v1071_v27 = vmax.f32 %v1069_v14, %v1070_v49 }
 0xed7   :  { %v4235_v29 = vpop.permute.xlu1 %1175 }
 0xed8   :  { %v1073_v50 = vmax.f32 %v1071_v27, %v1072_v23  ;;  %2729 = vmatprep.mubr.msk.f32.mxu1 %vm131_vm3, %v4235_v29 }
 0xeda   :  { %v1074_v26 = vsub.f32 %v1037_v62, %v1073_v50  ;;  %v1075_v39 = vsub.f32 %v1040_v32, %v1073_v50  ;;  %v1076_v33 = vsub.f32 %v1043_v36, %v1073_v50  ;;  %v1077_v17 = vsub.f32 %v1046_v0, %v1073_v50 }
 0xedb   :  { %v1157_v60 = vpop.permute.xlu1 %1156  ;;  %v1078_v41 = vsub.f32 %v1049_v10, %v1073_v50  ;;  %v1079_v45 = vsub.f32 %v1052_v7, %v1073_v50  ;;  %v1080_v38 = vsub.f32 %v1055_v2, %v1073_v50  ;;  %v1081_v37 = vsub.f32 %v1058_v3, %v1073_v50 }
 0xedc   :  { %v1084_v35 = vmul.f32 1.442695, %v1074_v26  ;;  %v1086_v63 = vmul.f32 1.442695, %v1075_v39  ;;  %1159 = vst.msk [vmem:[#allocation3] sm:$0xff] %vm53_vm1, %v1157_v60  ;;  %v1082_v18 = vsub.f32 %v1061_v15, %v1073_v50  ;;  %v1083_v24 = vsub.f32 %v1064_v21, %v1073_v50 }
 0xedd   :  { %v1088_v46 = vmul.f32 1.442695, %v1076_v33  ;;  %v1090_v48 = vmul.f32 1.442695, %v1077_v17  ;;  %v1092_v42 = vmul.f32 1.442695, %v1078_v41 }
 0xede   :  { %3326 = vpow2.f32 %v1084_v35  ;;  %v1094_v43 = vmul.f32 1.442695, %v1079_v45  ;;  %v1096_v56 = vmul.f32 1.442695, %v1080_v38  ;;  %v1098_v55 = vmul.f32 1.442695, %v1081_v37 }
 0xedf   :  { %3328 = vpow2.f32 %v1086_v63  ;;  %v1100_v10 = vmul.f32 1.442695, %v1082_v18  ;;  %v1102_v0 = vmul.f32 1.442695, %v1083_v24 }
 0xee0   :  { %3330 = vpow2.f32 %v1088_v46 }
 0xee1   :  { %3332 = vpow2.f32 %v1090_v48 }
 0xee2   :  { %3334 = vpow2.f32 %v1092_v42 }
 0xee3   :  { %v1168_v30 = vld [vmem:[#allocation3] sm:$0xff]  ;;  %3336 = vpow2.f32 %v1094_v43 }
 0xee4   :  { %1260 = vrot.lane.b32.xlu1 %v1168_v30, %s3620_s23  ;;  %3338 = vpow2.f32 %v1096_v56 }
 0xee5   :  { %3340 = vpow2.f32 %v1098_v55 }
 0xee6   :  { %3342 = vpow2.f32 %v1100_v10 }
 0xee7   :  { %3344 = vpow2.f32 %v1102_v0 }
 0xee8   :  { %v3327_v32 = vpop.eup %3326 }
 0xee9   :  { %v3329_v62 = vpop.eup %3328 }
 0xeea   :  { %v1104_v7 = vadd.f32 %v3329_v62, %v3327_v32  ;;  %v3331_v36 = vpop.eup %3330 }
 0xeeb   :  { %v3333_v3 = vpop.eup %3332 }
 0xeec   :  { %v1105_v2 = vadd.f32 %v3331_v36, %v1104_v7  ;;  %v3335_v53 = vpop.eup %3334 }
 0xeed   :  { %v3337_v13 = vpop.eup %3336 }
 0xeee   :  { %v1106_v4 = vadd.f32 %v3333_v3, %v1105_v2  ;;  %v3339_v14 = vpop.eup %3338 }
 0xeef   :  { %v3341_v49 = vpop.eup %3340 }
 0xef0   :  { %v1107_v9 = vadd.f32 %v3335_v53, %v1106_v4  ;;  %v3343_v27 = vpop.eup %3342 }
 0xef1   :  { %v3345_v26 = vpop.eup %3344 }
 0xef2   :  { %v1108_v15 = vadd.f32 %v3337_v13, %v1107_v9 }
 0xef4   :  { %v1109_v21 = vadd.f32 %v3339_v14, %v1108_v15 }
 0xef6   :  { %v1110_v23 = vadd.f32 %v3341_v49, %v1109_v21 }
 0xef8   :  { %v1111_v50 = vadd.f32 %v3343_v27, %v1110_v23 }
 0xefa   :  { %v1112_v39 = vadd.f32 %v3345_v26, %v1111_v50  ;;  %v4279_v50 = vld [vmem:[%s4785_s6] ss:$0 sm:$0xff] }
 0xefc   :  { %3346 = vrcp.f32 %v1112_v39 }
 0xf06   :  { %v3347_v33 = vpop.eup %3346 }
 0xf07   :  { %v1114_v17 = vmul.f32 %v3347_v33, %v3327_v32  ;;  %v1115_v60 = vmul.f32 %v3347_v33, %v3329_v62  ;;  %v1116_v35 = vmul.f32 %v3347_v33, %v3331_v36  ;;  %v1117_v63 = vmul.f32 %v3347_v33, %v3333_v3 }
 0xf08   :  { %v1118_v45 = vmul.f32 %v3347_v33, %v3335_v53  ;;  %v1119_v38 = vmul.f32 %v3347_v33, %v3337_v13  ;;  %v1120_v18 = vmul.f32 %v3347_v33, %v3339_v14  ;;  %v1122_v62 = vmul.f32 %v3347_v33, %v3343_v27 }
 0xf09   :  { %v1124_v41 = vmul.f32 %v1114_v17, %v3995_v51  ;;  %v1125_v46 = vmul.f32 %v1115_v60, %v4000_v52  ;;  %v1126_v48 = vmul.f32 %v1116_v35, %v4005_v54  ;;  %v1127_v42 = vmul.f32 %v1117_v63, %v4010_v61 }
 0xf0a   :  { %v1128_v56 = vmul.f32 %v1118_v45, %v4018_v11  ;;  %v1121_v51 = vmul.f32 %v3347_v33, %v3341_v49  ;;  %v1129_v52 = vmul.f32 %v1119_v38, %v4026_v20  ;;  %v1130_v61 = vmul.f32 %v1120_v18, %v4033_v34 }
 0xf0b   :  { %v1134_v37 = vsel %vm57_vm0, %v1124_v41, 0.0  ;;  %v1135_v43 = vsel %vm57_vm0, %v1125_v46, 0.0  ;;  %v1137_v24 = vsel %vm57_vm0, %v1126_v48, 0.0  ;;  %v1139_v32 = vsel %vm57_vm0, %v1127_v42, 0.0 }
 0xf0c   :  { %v1136_v30 = vadd.f32 %v1135_v43, %v1134_v37  ;;  %v1141_v10 = vsel %vm57_vm0, %v1128_v56, 0.0  ;;  %v1123_v36 = vmul.f32 %v3347_v33, %v3345_v26  ;;  %v1131_v0 = vmul.f32 %v1121_v51, %v4040_v40  ;;  %v4319_v51 = vld [vmem:[%s4783_s4] sm:$0xff] }
 0xf0d   :  { %v1143_v11 = vsel %vm57_vm0, %v1129_v52, 0.0  ;;  %v1132_v3 = vmul.f32 %v1122_v62, %v4047_v47  ;;  %v1145_v4 = vsel %vm57_vm0, %v1130_v61, 0.0  ;;  %v2728_v47 = vld [vmem:[%s4798_s17 + $0x18] sm:$0xff]  ;;  %v4331_v62 = vld [vmem:[%s4783_s4 + $0x28] sm:$0xff] }
 0xf0e   :  { %v1138_v55 = vadd.f32 %v1137_v24, %v1136_v30  ;;  %v1133_v53 = vmul.f32 %v1123_v36, %v4054_v58  ;;  %v1147_v9 = vsel %vm57_vm0, %v1131_v0, 0.0  ;;  %v4313_v24 = vld [vmem:[%s4783_s4 + $0x8] sm:$0xff]  ;;  %v4343_v36 = vld [vmem:[%s4783_s4 + $0x18] sm:$0xff] }
 0xf0f   :  { %v1149_v34 = vsel %vm57_vm0, %v1132_v3, 0.0  ;;  %v4355_v3 = vld [vmem:[%s4783_s4 + $0x38] sm:$0xff] }
 0xf10   :  { %v1140_v54 = vadd.f32 %v1139_v32, %v1138_v55  ;;  %v1151_v14 = vsel %vm57_vm0, %v1133_v53, 0.0  ;;  %v4325_v32 = vld [vmem:[%s4783_s4 + $0x20] sm:$0xff] }
 0xf12   :  { %v1142_v7 = vadd.f32 %v1141_v10, %v1140_v54  ;;  %v4337_v10 = vld [vmem:[%s4783_s4 + $0x10] sm:$0xff] }
 0xf14   :  { %v1144_v2 = vadd.f32 %v1143_v11, %v1142_v7  ;;  %v4349_v11 = vld [vmem:[%s4783_s4 + $0x30] sm:$0xff] }
 0xf16   :  { %v1146_v20 = vadd.f32 %v1145_v4, %v1144_v2 }
 0xf18   :  { %v1148_v13 = vadd.f32 %v1147_v9, %v1146_v20  ;;  %v4361_v20 = vld [vmem:[%s4783_s4 + $0x40] sm:$0xff]  ;;  %v4367_v9 = vld [vmem:[%s4783_s4 + $0x48] sm:$0xff] }
 0xf1a   :  { %v1150_v15 = vadd.f32 %v1149_v34, %v1148_v13 }
 0xf1c   :  { %v1152_v21 = vadd.f32 %v1151_v14, %v1150_v15 }
 0xf1e   :  { %1160 = vst.msk [vmem:[#allocation4] sm:$0xff] %vm57_vm0, %v1152_v21  ;;  %1164 = vst.msk [vmem:[#allocation6 + $0x10] sm:$0xff] %vm57_vm0, %v1152_v21 }
 0xf25   :  { %v1169_v40 = vld [vmem:[#allocation4] sm:$0xff] }
 0xf26   :  { %1171 = vrot.lane.b32.xlu0 %v1169_v40, %s3617_s19 }
 0xf56   :  { %v1261_v46 = vpop.permute.xlu1 %1260 }
 0xf98   :  { %v1172_v58 = vpop.permute.xlu0 %1171 }
 0xf99   :  { %v1178_v49 = vsel %vm121_vm2, %v2728_v47, %v1172_v58 }
 0xf9a   :  { %v1179_v23 = vsel %vm123_vm4, %v1178_v49, %v4235_v29 }
 0xf9b   :  { %1247 = vmatmul.mubr.f32.vlgmr.msra.gmra.mrb[8].mxu1 %v1179_v23 }
 0xf9c   :  { %3110 = vmatpush3.bf16.msra.mxu1 %v3862_v57  ;;  %2876 = vmatprep.mubr.msk.f32.mxu1 %vm3621_vm5, %v3615_v1 }
 0xf9d   :  { %3111 = vmatprep.subr.bf16.mxu1 %v3616_v5 }
 0xfa0   :  { %3113 = vmatpush3.bf16.msra.mxu1 %v3870_v59 }
 0xfa1   :  { %3114 = vmatprep.subr.bf16.mxu1 %v3616_v5 }
0x106e   :  { %v1248_v27 = vpop.f32.mrb[8].mxu1 }
0x106f   :  { %v1249_v29 = vadd.f32 %v4279_v50, %v1248_v27  ;;  %v1250_v26 = vpop.f32.mrb[9].mxu1 }
0x1071   :  { %3348 = vtanh.f32 %v1249_v29  ;;  %v2730_v33 = vmul.f32 -1.442695, %v1249_v29 }
0x1073   :  { %3350 = vpow2.f32 %v2730_v33 }
0x107b   :  { %v3349_v39 = vpop.eup %3348 }
0x107c   :  { %1265 = vrot.lane.b32.xlu0 %v3349_v39, %s3619_s22 }
0x107d   :  { %v3351_v17 = vpop.eup %3350 }
0x107e   :  { %v1255_v60 = vadd.f32 1.0, %v3351_v17 }
0x1080   :  { %3352 = vrcp.f32 %v1255_v60 }
0x108a   :  { %v3353_v35 = vpop.eup %3352 }
0x108b   :  { %v1263_v45 = vmul.f32 %v3353_v35, %v1261_v46 }
0x10ee   :  { %v1266_v63 = vpop.permute.xlu0 %1265 }
0x10ef   :  { %v1268_v41 = vmul.f32 %v3353_v35, %v1266_v63 }
0x10f1   :  { %1270 = vrot.lane.b32.xlu0 %v1268_v41, %s3620_s23 }
0x1163   :  { %v1271_v48 = vpop.permute.xlu0 %1270 }
0x1164   :  { %v4284_v38 = vadd.f32 %v1271_v48, %v1263_v45 }
0x1166   :  { %3354 = vtanh.f32 %v4284_v38 }
0x1170   :  { %v3355_v42 = vpop.eup %3354 }
0x1171   :  { %1276 = vrot.lane.b32.xlu1 %v3355_v42, %s3619_s22 }
0x11e3   :  { %v1277_v37 = vpop.permute.xlu1 %1276 }
0x11e4   :  { %v1279_v43 = vmul.f32 %v3353_v35, %v1277_v37 }
0x11e6   :  { %1281 = vrot.lane.b32.xlu0 %v1279_v43, %s3620_s23 }
0x1258   :  { %v1282_v30 = vpop.permute.xlu0 %1281 }
0x1259   :  { %1504 = vst.msk [vmem:[#allocation2] sm:$0xff] %vm53_vm1, %v1282_v30  ;;  %1512 = vst.msk [vmem:[#allocation5 + $0x18] sm:$0xff] %vm53_vm1, %v1282_v30  ;;  %2866 = vmatmul.mubr.msk.f32.vlgmr.msra.gmra.mrb[4].mxu0 %vm53_vm1, %v1282_v30 }
0x125a   :  { %3083 = vmatpush1.bf16.msra.mxu0 %v3729_v6 }
0x125b   :  { %3084 = vmatprep.subr.bf16.mxu0 %v3616_v5 }
0x125e   :  { %3086 = vmatpush1.bf16.msra.mxu0 %v3736_v8 }
0x125f   :  { %3087 = vmatprep.subr.bf16.mxu0 %v3616_v5 }
0x1262   :  { %3089 = vmatpush1.bf16.msra.mxu0 %v3746_v12 }
0x1263   :  { %3090 = vmatprep.subr.bf16.mxu0 %v3616_v5 }
0x1266   :  { %3092 = vmatpush1.bf16.msra.mxu0 %v3757_v16 }
0x1267   :  { %3093 = vmatprep.subr.bf16.mxu0 %v3616_v5 }
0x126a   :  { %3095 = vmatpush1.bf16.msra.mxu0 %v3768_v19 }
0x126b   :  { %3096 = vmatprep.subr.bf16.mxu0 %v3616_v5 }
0x126e   :  { %3098 = vmatpush1.bf16.msra.mxu0 %v3778_v22 }
0x126f   :  { %3099 = vmatprep.subr.bf16.mxu0 %v3616_v5 }
0x1272   :  { %3101 = vmatpush1.bf16.msra.mxu0 %v3788_v25 }
0x1273   :  { %3102 = vmatprep.subr.bf16.mxu0 %v3616_v5 }
0x1276   :  { %3104 = vmatpush1.bf16.msra.mxu0 %v3798_v28 }
0x1277   :  { %3105 = vmatprep.subr.bf16.mxu0 %v3616_v5 }
0x127a   :  { %3107 = vmatpush1.bf16.msra.mxu0 %v3808_v31 }
0x127b   :  { %3141 = vmatprep.subr.bf16.mxu0 %v3616_v5 }
0x132c   :  { %v1351_v18 = vpop.f32.mrb[4].mxu0 }
0x132d   :  { %v2867_v56 = vpop.f32.mrb[5].mxu0  ;;  %v1356_v55 = vadd.f32 %v4313_v24, %v1351_v18  ;;  %v1355_v52 = vadd.f32 %v4319_v51, %v1351_v18  ;;  %v1359_v54 = vadd.f32 %v4325_v32, %v1351_v18  ;;  %v1360_v61 = vadd.f32 %v4331_v62, %v1351_v18 }
0x132e   :  { %v1357_v7 = vadd.f32 %v4337_v10, %v1351_v18  ;;  %v1358_v0 = vadd.f32 %v4343_v36, %v1351_v18  ;;  %v1361_v2 = vadd.f32 %v4349_v11, %v1351_v18  ;;  %v1362_v4 = vadd.f32 %v4355_v3, %v1351_v18 }
0x132f   :  { %3356 = vtanh.f32 %v1356_v55  ;;  %v1363_v53 = vadd.f32 %v4361_v20, %v1351_v18  ;;  %v1364_v13 = vadd.f32 %v4367_v9, %v1351_v18 }
0x1330   :  { %3358 = vtanh.f32 %v1355_v52 }
0x1331   :  { %3360 = vtanh.f32 %v1359_v54  ;;  %v1517_v54 = vld [vmem:[#allocation2] sm:$0xff] }
0x1332   :  { %3362 = vtanh.f32 %v1360_v61 }
0x1333   :  { %3364 = vtanh.f32 %v1357_v7 }
0x1334   :  { %3366 = vtanh.f32 %v1358_v0 }
0x1335   :  { %3368 = vtanh.f32 %v1361_v2 }
0x1336   :  { %3370 = vtanh.f32 %v1362_v4 }
0x1337   :  { %3372 = vtanh.f32 %v1363_v53 }
0x1338   :  { %3374 = vtanh.f32 %v1364_v13 }
0x1339   :  { %v3357_v34 = vpop.eup %3356 }
0x133a   :  { %v3359_v15 = vpop.eup %3358  ;;  %v1376_v14 = vmul.f32 %v4223_v44, %v3357_v34 }
0x133b   :  { %v3361_v21 = vpop.eup %3360  ;;  %v1375_v40 = vmul.f32 %v4223_v44, %v3359_v15 }
0x133c   :  { %v3363_v47 = vpop.eup %3362  ;;  %v1388_v58 = vsel %vm53_vm1, %v1376_v14, 0.0  ;;  %v1379_v49 = vmul.f32 %v4223_v44, %v3361_v21 }
0x133d   :  { %v3365_v23 = vpop.eup %3364  ;;  %1389 = vadd.xlane.f32.xlu0 %v1388_v58  ;;  %v1385_v27 = vsel %vm53_vm1, %v1375_v40, 0.0  ;;  %v1380_v29 = vmul.f32 %v4223_v44, %v3363_v47 }
0x133e   :  { %v3367_v26 = vpop.eup %3366  ;;  %1386 = vadd.xlane.f32.xlu1 %v1385_v27  ;;  %v1397_v39 = vsel %vm53_vm1, %v1379_v49, 0.0  ;;  %v1377_v33 = vmul.f32 %v4223_v44, %v3365_v23 }
0x133f   :  { %v3369_v17 = vpop.eup %3368  ;;  %v1400_v60 = vsel %vm53_vm1, %v1380_v29, 0.0  ;;  %v1378_v35 = vmul.f32 %v4223_v44, %v3367_v26 }
0x1340   :  { %v3371_v63 = vpop.eup %3370  ;;  %v1391_v41 = vsel %vm53_vm1, %v1377_v33, 0.0  ;;  %v1381_v46 = vmul.f32 %v4223_v44, %v3369_v17 }
0x1341   :  { %1398 = vadd.xlane.f32.xlu0 %v1397_v39  ;;  %v3373_v45 = vpop.eup %3372  ;;  %v1394_v48 = vsel %vm53_vm1, %v1378_v35, 0.0  ;;  %v1382_v42 = vmul.f32 %v4223_v44, %v3371_v63 }
0x1342   :  { %1401 = vadd.xlane.f32.xlu1 %v1400_v60  ;;  %v3375_v37 = vpop.eup %3374  ;;  %v1403_v43 = vsel %vm53_vm1, %v1381_v46, 0.0  ;;  %v1383_v30 = vmul.f32 %v4223_v44, %v3373_v45 }
0x1343   :  { %v1406_v18 = vsel %vm53_vm1, %v1382_v42, 0.0  ;;  %v1384_v56 = vmul.f32 %v4223_v44, %v3375_v37 }
0x1344   :  { %v1409_v55 = vsel %vm53_vm1, %v1383_v30, 0.0 }
0x1345   :  { %1392 = vadd.xlane.f32.xlu0 %v1391_v41  ;;  %v1412_v52 = vsel %vm53_vm1, %v1384_v56, 0.0 }
0x1346   :  { %1395 = vadd.xlane.f32.xlu1 %v1394_v48 }
0x1349   :  { %1404 = vadd.xlane.f32.xlu0 %v1403_v43 }
0x134a   :  { %1407 = vadd.xlane.f32.xlu1 %v1406_v18 }
0x134d   :  { %1410 = vadd.xlane.f32.xlu0 %v1409_v55 }
0x134e   :  { %1413 = vadd.xlane.f32.xlu1 %v1412_v52 }
0x135f   :  { %1525 = vrot.lane.b32.xlu1 %v1517_v54, %s3618_s24 }
0x1363   :  { %1506 = vrot.lane.b32.xlu1 %v4284_v38, %s3622_s26 }
0x13ca   :  { %v1390_v61 = vpop.xlane.xlu0 %1389 }
0x13cb   :  { %v1387_v7 = vpop.xlane.xlu1 %1386 }
0x13ce   :  { %v1399_v0 = vpop.xlane.xlu0 %1398 }
0x13cf   :  { %v1402_v2 = vpop.xlane.xlu1 %1401  ;;  %v1415_v15 = vmax.f32 %v1387_v7, %v1399_v0 }
0x13d0   :  { %v1416_v14 = vmax.f32 %v1390_v61, %v1402_v2 }
0x13d2   :  { %v1393_v4 = vpop.xlane.xlu0 %1392 }
0x13d3   :  { %v1396_v53 = vpop.xlane.xlu1 %1395 }
0x13d6   :  { %v1405_v13 = vpop.xlane.xlu0 %1404 }
0x13d7   :  { %v1408_v34 = vpop.xlane.xlu1 %1407  ;;  %v1417_v21 = vmax.f32 %v1393_v4, %v1405_v13 }
0x13d8   :  { %v1418_v40 = vmax.f32 %v1396_v53, %v1408_v34 }
0x13da   :  { %v1411_v47 = vpop.xlane.xlu0 %1410  ;;  %v1422_v27 = vmax.f32 %v1417_v21, %v1418_v40 }
0x13db   :  { %v1419_v58 = vmax.f32 %v1415_v15, %v1411_v47  ;;  %v1414_v49 = vpop.xlane.xlu1 %1413 }
0x13dc   :  { %v1420_v23 = vmax.f32 %v1416_v14, %v1414_v49 }
0x13de   :  { %v1421_v29 = vmax.f32 %v1419_v58, %v1420_v23 }
0x13df   :  { %v4393_v26 = vpop.permute.xlu1 %1525 }
0x13e0   :  { %v1423_v38 = vmax.f32 %v1421_v29, %v1422_v27  ;;  %2733 = vmatprep.mubr.msk.f32.mxu0 %vm131_vm3, %v4393_v26 }
0x13e2   :  { %v1424_v39 = vsub.f32 %v1387_v7, %v1423_v38  ;;  %v1425_v33 = vsub.f32 %v1390_v61, %v1423_v38  ;;  %v1426_v17 = vsub.f32 %v1393_v4, %v1423_v38  ;;  %v1427_v60 = vsub.f32 %v1396_v53, %v1423_v38 }
0x13e3   :  { %v1507_v35 = vpop.permute.xlu1 %1506  ;;  %v1428_v46 = vsub.f32 %v1399_v0, %v1423_v38  ;;  %v1429_v48 = vsub.f32 %v1402_v2, %v1423_v38  ;;  %v1430_v37 = vsub.f32 %v1405_v13, %v1423_v38  ;;  %v1431_v30 = vsub.f32 %v1408_v34, %v1423_v38 }
0x13e4   :  { %v1434_v63 = vmul.f32 1.442695, %v1424_v39  ;;  %v1436_v41 = vmul.f32 1.442695, %v1425_v33  ;;  %1509 = vst.msk [vmem:[#allocation3] sm:$0xff] %vm53_vm1, %v1507_v35  ;;  %v1432_v55 = vsub.f32 %v1411_v47, %v1423_v38  ;;  %v1433_v54 = vsub.f32 %v1414_v49, %v1423_v38 }
0x13e5   :  { %v1438_v45 = vmul.f32 1.442695, %v1426_v17  ;;  %v1440_v42 = vmul.f32 1.442695, %v1427_v60  ;;  %v1442_v43 = vmul.f32 1.442695, %v1428_v46 }
0x13e6   :  { %3376 = vpow2.f32 %v1434_v63  ;;  %v1444_v18 = vmul.f32 1.442695, %v1429_v48  ;;  %v1446_v52 = vmul.f32 1.442695, %v1430_v37  ;;  %v1448_v61 = vmul.f32 1.442695, %v1431_v30 }
0x13e7   :  { %3378 = vpow2.f32 %v1436_v41  ;;  %v1450_v2 = vmul.f32 1.442695, %v1432_v55  ;;  %v1452_v13 = vmul.f32 1.442695, %v1433_v54  ;;  %v4414_v30 = vld [vmem:[%s4782_s3 + $0x10] sm:$0xff]  ;;  %v4420_v55 = vld [vmem:[%s4782_s3 + $0x18] sm:$0xff] }
0x13e8   :  { %3380 = vpow2.f32 %v1438_v45  ;;  %v4402_v45 = vld [vmem:[%s4782_s3] sm:$0xff] }
0x13e9   :  { %3382 = vpow2.f32 %v1440_v42  ;;  %v4408_v42 = vld [vmem:[%s4782_s3 + $0x8] sm:$0xff] }
0x13ea   :  { %3384 = vpow2.f32 %v1442_v43 }
0x13eb   :  { %v1518_v56 = vld [vmem:[#allocation3] sm:$0xff]  ;;  %3386 = vpow2.f32 %v1444_v18 }
0x13ec   :  { %1610 = vrot.lane.b32.xlu1 %v1518_v56, %s3620_s23  ;;  %3388 = vpow2.f32 %v1446_v52 }
0x13ed   :  { %3390 = vpow2.f32 %v1448_v61 }
0x13ee   :  { %3392 = vpow2.f32 %v1450_v2  ;;  %v4428_v2 = vld [vmem:[%s4782_s3 + $0x20] sm:$0xff] }
0x13ef   :  { %3394 = vpow2.f32 %v1452_v13 }
0x13f0   :  { %v3377_v7 = vpop.eup %3376 }
0x13f1   :  { %v3379_v0 = vpop.eup %3378 }
0x13f2   :  { %v1454_v4 = vadd.f32 %v3379_v0, %v3377_v7  ;;  %v3381_v53 = vpop.eup %3380 }
0x13f3   :  { %v3383_v15 = vpop.eup %3382 }
0x13f4   :  { %v1455_v34 = vadd.f32 %v3381_v53, %v1454_v4  ;;  %v3385_v21 = vpop.eup %3384 }
0x13f5   :  { %v3387_v47 = vpop.eup %3386 }
0x13f6   :  { %v1456_v14 = vadd.f32 %v3383_v15, %v1455_v34  ;;  %v3389_v49 = vpop.eup %3388 }
0x13f7   :  { %v3391_v27 = vpop.eup %3390 }
0x13f8   :  { %v1457_v40 = vadd.f32 %v3385_v21, %v1456_v14  ;;  %v3393_v38 = vpop.eup %3392 }
0x13f9   :  { %v3395_v33 = vpop.eup %3394 }
0x13fa   :  { %v1458_v58 = vadd.f32 %v3387_v47, %v1457_v40 }
0x13fc   :  { %v1459_v23 = vadd.f32 %v3389_v49, %v1458_v58  ;;  %v4442_v58 = vld [vmem:[%s4782_s3 + $0x30] sm:$0xff] }
0x13fe   :  { %v1460_v29 = vadd.f32 %v3391_v27, %v1459_v23 }
0x1400   :  { %v1461_v39 = vadd.f32 %v3393_v38, %v1460_v29 }
0x1402   :  { %v1462_v17 = vadd.f32 %v3395_v33, %v1461_v39  ;;  %v4449_v39 = vld [vmem:[%s4782_s3 + $0x38] sm:$0xff] }
0x1404   :  { %3396 = vrcp.f32 %v1462_v17 }
0x140e   :  { %v3397_v60 = vpop.eup %3396 }
0x140f   :  { %v1464_v35 = vmul.f32 %v3397_v60, %v3377_v7  ;;  %v1465_v63 = vmul.f32 %v3397_v60, %v3379_v0  ;;  %v1466_v41 = vmul.f32 %v3397_v60, %v3381_v53  ;;  %v1467_v46 = vmul.f32 %v3397_v60, %v3383_v15  ;;  %v4435_v15 = vld [vmem:[%s4782_s3 + $0x28] sm:$0xff] }
0x1410   :  { %v1468_v43 = vmul.f32 %v3397_v60, %v3385_v21  ;;  %v1469_v56 = vmul.f32 %v3397_v60, %v3387_v47  ;;  %v1470_v0 = vmul.f32 %v3397_v60, %v3389_v49  ;;  %v1471_v34 = vmul.f32 %v3397_v60, %v3391_v27 }
0x1411   :  { %v1474_v48 = vmul.f32 %v4402_v45, %v1464_v35  ;;  %v1475_v37 = vmul.f32 %v4408_v42, %v1465_v63  ;;  %v1476_v18 = vmul.f32 %v4414_v30, %v1466_v41  ;;  %v1477_v52 = vmul.f32 %v4420_v55, %v1467_v46  ;;  %v4456_v63 = vld [vmem:[%s4782_s3 + $0x40] sm:$0xff] }
0x1412   :  { %v1478_v4 = vmul.f32 %v4428_v2, %v1468_v43  ;;  %v1479_v14 = vmul.f32 %v4435_v15, %v1469_v56  ;;  %v1472_v47 = vmul.f32 %v3397_v60, %v3393_v38  ;;  %v1480_v49 = vmul.f32 %v4442_v58, %v1470_v0 }
0x1413   :  { %v1484_v54 = vsel %vm57_vm0, %v1474_v48, 0.0  ;;  %v1485_v61 = vsel %vm57_vm0, %v1475_v37, 0.0  ;;  %v1487_v53 = vsel %vm57_vm0, %v1476_v18, 0.0  ;;  %v1489_v21 = vsel %vm57_vm0, %v1477_v52, 0.0 }
0x1414   :  { %v1486_v7 = vadd.f32 %v1485_v61, %v1484_v54  ;;  %v1491_v23 = vsel %vm57_vm0, %v1478_v4, 0.0  ;;  %v1473_v29 = vmul.f32 %v3397_v60, %v3395_v33  ;;  %v1481_v17 = vmul.f32 %v4449_v39, %v1471_v34  ;;  %v4463_v60 = vld [vmem:[%s4782_s3 + $0x48] sm:$0xff] }
0x1415   :  { %v1493_v38 = vsel %vm57_vm0, %v1479_v14, 0.0  ;;  %v1482_v41 = vmul.f32 %v4456_v63, %v1472_v47  ;;  %v1495_v46 = vsel %vm57_vm0, %v1480_v49, 0.0 }
0x1416   :  { %v1488_v13 = vadd.f32 %v1487_v53, %v1486_v7  ;;  %v1483_v48 = vmul.f32 %v4463_v60, %v1473_v29  ;;  %v1497_v37 = vsel %vm57_vm0, %v1481_v17, 0.0  ;;  %v2732_v7 = vld [vmem:[%s4798_s17 + $0x20] sm:$0xff] }
0x1417   :  { %v1499_v18 = vsel %vm57_vm0, %v1482_v41, 0.0 }
0x1418   :  { %v1490_v40 = vadd.f32 %v1489_v21, %v1488_v13  ;;  %v1501_v52 = vsel %vm57_vm0, %v1483_v48, 0.0 }
0x141a   :  { %v1492_v27 = vadd.f32 %v1491_v23, %v1490_v40 }
0x141c   :  { %v1494_v35 = vadd.f32 %v1493_v38, %v1492_v27 }
0x141e   :  { %v1496_v33 = vadd.f32 %v1495_v46, %v1494_v35 }
0x1420   :  { %v1498_v43 = vadd.f32 %v1497_v37, %v1496_v33 }
0x1422   :  { %v1500_v56 = vadd.f32 %v1499_v18, %v1498_v43 }
0x1424   :  { %v1502_v54 = vadd.f32 %v1501_v52, %v1500_v56 }
0x1426   :  { %1510 = vst.msk [vmem:[#allocation4] sm:$0xff] %vm57_vm0, %v1502_v54  ;;  %1514 = vst.msk [vmem:[#allocation6 + $0x18] sm:$0xff] %vm57_vm0, %v1502_v54 }
0x142d   :  { %v1519_v61 = vld [vmem:[#allocation4] sm:$0xff] }
0x142e   :  { %1521 = vrot.lane.b32.xlu0 %v1519_v61, %s3617_s19 }
0x145e   :  { %v1611_v23 = vpop.permute.xlu1 %1610 }
0x14a0   :  { %v1522_v0 = vpop.permute.xlu0 %1521 }
0x14a1   :  { %v1528_v4 = vsel %vm121_vm2, %v2732_v7, %v1522_v0 }
0x14a2   :  { %v1529_v53 = vsel %vm123_vm4, %v1528_v4, %v4393_v26 }
0x14a3   :  { %1597 = vmatmul.mubr.f32.vlgmr.msra.gmra.mrb[6].mxu0 %v1529_v53 }
0x14a4   :  { %3143 = vmatpush3.bf16.msra.mxu0 %v3862_v57  ;;  %2887 = vmatprep.mubr.msk.f32.mxu0 %vm3621_vm5, %v3615_v1 }
0x14a5   :  { %3144 = vmatprep.subr.bf16.mxu0 %v3616_v5 }
0x14a8   :  { %3146 = vmatpush3.bf16.msra.mxu0 %v3870_v59 }
0x1576   :  { %v1598_v13 = vpop.f32.mrb[6].mxu0 }
0x1577   :  { %v1599_v34 = vadd.f32 %v4279_v50, %v1598_v13  ;;  %v1600_v14 = vpop.f32.mrb[7].mxu0 }
0x1579   :  { %3398 = vtanh.f32 %v1599_v34  ;;  %v2734_v40 = vmul.f32 -1.442695, %v1599_v34 }
0x157b   :  { %3400 = vpow2.f32 %v2734_v40 }
0x1583   :  { %v3399_v21 = vpop.eup %3398 }
0x1584   :  { %1615 = vrot.lane.b32.xlu0 %v3399_v21, %s3619_s22 }
0x1585   :  { %v3401_v26 = vpop.eup %3400 }
0x1586   :  { %v1605_v47 = vadd.f32 1.0, %v3401_v26 }
0x1588   :  { %3402 = vrcp.f32 %v1605_v47 }
0x1592   :  { %v3403_v57 = vpop.eup %3402 }
0x1593   :  { %v1613_v59 = vmul.f32 %v3403_v57, %v1611_v23 }
0x15f6   :  { %v1616_v49 = vpop.permute.xlu0 %1615 }
0x15f7   :  { %v1618_v1 = vmul.f32 %v3403_v57, %v1616_v49 }
0x15f9   :  { %1620 = vrot.lane.b32.xlu0 %v1618_v1, %s3620_s23 }
0x166b   :  { %v1621_v27 = vpop.permute.xlu0 %1620 }
0x166c   :  { %v4486_v29 = vadd.f32 %v1621_v27, %v1613_v59 }
0x166e   :  { %3404 = vtanh.f32 %v4486_v29 }
0x1678   :  { %v3405_v17 = vpop.eup %3404 }
0x1679   :  { %1626 = vrot.lane.b32.xlu1 %v3405_v17, %s3619_s22 }
0x16eb   :  { %v1627_v38 = vpop.permute.xlu1 %1626 }
0x16ec   :  { %v1629_v35 = vmul.f32 %v3403_v57, %v1627_v38 }
0x16ee   :  { %1631 = vrot.lane.b32.xlu0 %v1629_v35, %s3620_s23 }
0x1760   :  { %v1632_v41 = vpop.permute.xlu0 %1631 }
0x1761   :  { %1854 = vst.msk [vmem:[#allocation2] sm:$0xff] %vm53_vm1, %v1632_v41  ;;  %1862 = vst.msk [vmem:[#allocation5 + $0x20] sm:$0xff] %vm53_vm1, %v1632_v41  ;;  %2877 = vmatmul.mubr.msk.f32.vlgmr.msra.gmra.mrb[10].mxu1 %vm53_vm1, %v1632_v41 }
0x1762   :  { %3116 = vmatpush1.bf16.msra.mxu1 %v3729_v6 }
0x1763   :  { %3117 = vmatprep.subr.bf16.mxu1 %v3616_v5 }
0x1766   :  { %3119 = vmatpush1.bf16.msra.mxu1 %v3736_v8 }
0x1767   :  { %3120 = vmatprep.subr.bf16.mxu1 %v3616_v5 }
0x176a   :  { %3122 = vmatpush1.bf16.msra.mxu1 %v3746_v12 }
0x176b   :  { %3123 = vmatprep.subr.bf16.mxu1 %v3616_v5 }
0x176e   :  { %3125 = vmatpush1.bf16.msra.mxu1 %v3757_v16 }
0x176f   :  { %3126 = vmatprep.subr.bf16.mxu1 %v3616_v5 }
0x1772   :  { %3128 = vmatpush1.bf16.msra.mxu1 %v3768_v19 }
0x1773   :  { %3129 = vmatprep.subr.bf16.mxu1 %v3616_v5 }
0x1776   :  { %3131 = vmatpush1.bf16.msra.mxu1 %v3778_v22 }
0x1777   :  { %3132 = vmatprep.subr.bf16.mxu1 %v3616_v5 }
0x177a   :  { %3134 = vmatpush1.bf16.msra.mxu1 %v3788_v25 }
0x177b   :  { %3135 = vmatprep.subr.bf16.mxu1 %v3616_v5 }
0x177e   :  { %3137 = vmatpush1.bf16.msra.mxu1 %v3798_v28 }
0x177f   :  { %3138 = vmatprep.subr.bf16.mxu1 %v3616_v5 }
0x1782   :  { %3140 = vmatpush1.bf16.msra.mxu1 %v3808_v31 }
0x1834   :  { %v1701_v6 = vpop.f32.mrb[10].mxu1 }
0x1835   :  { %v2878_v8 = vpop.f32.mrb[11].mxu1  ;;  %v1706_v12 = vadd.f32 %v4313_v24, %v1701_v6  ;;  %v1705_v16 = vadd.f32 %v4319_v51, %v1701_v6  ;;  %v1709_v19 = vadd.f32 %v4325_v32, %v1701_v6  ;;  %v1710_v22 = vadd.f32 %v4331_v62, %v1701_v6 }
0x1836   :  { %v1707_v25 = vadd.f32 %v4337_v10, %v1701_v6  ;;  %v1708_v28 = vadd.f32 %v4343_v36, %v1701_v6  ;;  %v1711_v5 = vadd.f32 %v4349_v11, %v1701_v6  ;;  %v1712_v31 = vadd.f32 %v4355_v3, %v1701_v6  ;;  %v1867_v8 = vld [vmem:[#allocation2] sm:$0xff] }
0x1837   :  { %3406 = vtanh.f32 %v1706_v12  ;;  %v1713_v46 = vadd.f32 %v4361_v20, %v1701_v6  ;;  %v1714_v33 = vadd.f32 %v4367_v9, %v1701_v6 }
0x1838   :  { %3408 = vtanh.f32 %v1705_v16 }
0x1839   :  { %3410 = vtanh.f32 %v1709_v19 }
0x183a   :  { %3412 = vtanh.f32 %v1710_v22 }
0x183b   :  { %3414 = vtanh.f32 %v1707_v25 }
0x183c   :  { %3416 = vtanh.f32 %v1708_v28 }
0x183d   :  { %3418 = vtanh.f32 %v1711_v5 }
0x183e   :  { %3420 = vtanh.f32 %v1712_v31 }
0x183f   :  { %3422 = vtanh.f32 %v1713_v46 }
0x1840   :  { %3424 = vtanh.f32 %v1714_v33 }
0x1841   :  { %v3407_v48 = vpop.eup %3406 }
0x1842   :  { %v3409_v37 = vpop.eup %3408  ;;  %v1726_v43 = vmul.f32 %v4223_v44, %v3407_v48 }
0x1843   :  { %v3411_v18 = vpop.eup %3410  ;;  %v1725_v56 = vmul.f32 %v4223_v44, %v3409_v37 }
0x1844   :  { %v3413_v52 = vpop.eup %3412  ;;  %v1738_v54 = vsel %vm53_vm1, %v1726_v43, 0.0  ;;  %v1729_v61 = vmul.f32 %v4223_v44, %v3411_v18 }
0x1845   :  { %v3415_v7 = vpop.eup %3414  ;;  %1739 = vadd.xlane.f32.xlu0 %v1738_v54  ;;  %v1735_v0 = vsel %vm53_vm1, %v1725_v56, 0.0  ;;  %v1730_v4 = vmul.f32 %v4223_v44, %v3413_v52 }
0x1846   :  { %v3417_v53 = vpop.eup %3416  ;;  %1736 = vadd.xlane.f32.xlu1 %v1735_v0  ;;  %v1747_v13 = vsel %vm53_vm1, %v1729_v61, 0.0  ;;  %v1727_v34 = vmul.f32 %v4223_v44, %v3415_v7 }
0x1847   :  { %v3419_v14 = vpop.eup %3418  ;;  %v1750_v21 = vsel %vm53_vm1, %v1730_v4, 0.0  ;;  %v1728_v40 = vmul.f32 %v4223_v44, %v3417_v53 }
0x1848   :  { %v3421_v26 = vpop.eup %3420  ;;  %v1741_v47 = vsel %vm53_vm1, %v1727_v34, 0.0  ;;  %v1731_v57 = vmul.f32 %v4223_v44, %v3419_v14 }
0x1849   :  { %1748 = vadd.xlane.f32.xlu0 %v1747_v13  ;;  %v3423_v49 = vpop.eup %3422  ;;  %v1744_v1 = vsel %vm53_vm1, %v1728_v40, 0.0  ;;  %v1732_v23 = vmul.f32 %v4223_v44, %v3421_v26 }
0x184a   :  { %1751 = vadd.xlane.f32.xlu1 %v1750_v21  ;;  %v3425_v59 = vpop.eup %3424  ;;  %v1753_v27 = vsel %vm53_vm1, %v1731_v57, 0.0  ;;  %v1733_v17 = vmul.f32 %v4223_v44, %v3423_v49 }
0x184b   :  { %v1756_v38 = vsel %vm53_vm1, %v1732_v23, 0.0  ;;  %v1734_v35 = vmul.f32 %v4223_v44, %v3425_v59 }
0x184c   :  { %v1759_v41 = vsel %vm53_vm1, %v1733_v17, 0.0 }
0x184d   :  { %1742 = vadd.xlane.f32.xlu0 %v1741_v47  ;;  %v1762_v6 = vsel %vm53_vm1, %v1734_v35, 0.0 }
0x184e   :  { %1745 = vadd.xlane.f32.xlu1 %v1744_v1 }
0x1851   :  { %1754 = vadd.xlane.f32.xlu0 %v1753_v27 }
0x1852   :  { %1757 = vadd.xlane.f32.xlu1 %v1756_v38 }
0x1855   :  { %1760 = vadd.xlane.f32.xlu0 %v1759_v41 }
0x1856   :  { %1763 = vadd.xlane.f32.xlu1 %v1762_v6 }
0x1867   :  { %1875 = vrot.lane.b32.xlu1 %v1867_v8, %s3618_s24 }
0x186b   :  { %1856 = vrot.lane.b32.xlu1 %v4486_v29, %s3622_s26 }
0x18d2   :  { %v1740_v12 = vpop.xlane.xlu0 %1739 }
0x18d3   :  { %v1737_v16 = vpop.xlane.xlu1 %1736 }
0x18d6   :  { %v1749_v19 = vpop.xlane.xlu0 %1748 }
0x18d7   :  { %v1752_v22 = vpop.xlane.xlu1 %1751  ;;  %v1765_v31 = vmax.f32 %v1737_v16, %v1749_v19 }
0x18d8   :  { %v1766_v46 = vmax.f32 %v1740_v12, %v1752_v22 }
0x18da   :  { %v1743_v25 = vpop.xlane.xlu0 %1742 }
0x18db   :  { %v1746_v28 = vpop.xlane.xlu1 %1745 }
0x18de   :  { %v1755_v44 = vpop.xlane.xlu0 %1754 }
0x18df   :  { %v1758_v5 = vpop.xlane.xlu1 %1757  ;;  %v1767_v33 = vmax.f32 %v1743_v25, %v1755_v44 }
0x18e0   :  { %v1768_v48 = vmax.f32 %v1746_v28, %v1758_v5 }
0x18e2   :  { %v1761_v37 = vpop.xlane.xlu0 %1760  ;;  %v1772_v52 = vmax.f32 %v1767_v33, %v1768_v48 }
0x18e3   :  { %v1769_v43 = vmax.f32 %v1765_v31, %v1761_v37  ;;  %v1764_v18 = vpop.xlane.xlu1 %1763 }
0x18e4   :  { %v1770_v56 = vmax.f32 %v1766_v46, %v1764_v18 }
0x18e6   :  { %v1771_v54 = vmax.f32 %v1769_v43, %v1770_v56 }
0x18e7   :  { %v4544_v61 = vpop.permute.xlu1 %1875 }
0x18e8   :  { %v1773_v29 = vmax.f32 %v1771_v54, %v1772_v52  ;;  %2737 = vmatprep.mubr.msk.f32.mxu1 %vm131_vm3, %v4544_v61 }
0x18ea   :  { %v1774_v7 = vsub.f32 %v1737_v16, %v1773_v29  ;;  %v1775_v0 = vsub.f32 %v1740_v12, %v1773_v29  ;;  %v1776_v4 = vsub.f32 %v1743_v25, %v1773_v29  ;;  %v1777_v53 = vsub.f32 %v1746_v28, %v1773_v29 }
0x18eb   :  { %v1857_v13 = vpop.permute.xlu1 %1856  ;;  %v1778_v21 = vsub.f32 %v1749_v19, %v1773_v29  ;;  %v1779_v26 = vsub.f32 %v1752_v22, %v1773_v29  ;;  %v1780_v57 = vsub.f32 %v1755_v44, %v1773_v29  ;;  %v1781_v1 = vsub.f32 %v1758_v5, %v1773_v29 }
0x18ec   :  { %v1784_v34 = vmul.f32 1.442695, %v1774_v7  ;;  %v1786_v14 = vmul.f32 1.442695, %v1775_v0  ;;  %1859 = vst.msk [vmem:[#allocation3] sm:$0xff] %vm53_vm1, %v1857_v13  ;;  %v1782_v27 = vsub.f32 %v1761_v37, %v1773_v29  ;;  %v1783_v38 = vsub.f32 %v1764_v18, %v1773_v29 }
0x18ed   :  { %v1788_v40 = vmul.f32 1.442695, %v1776_v4  ;;  %v1790_v47 = vmul.f32 1.442695, %v1777_v53  ;;  %v1792_v49 = vmul.f32 1.442695, %v1778_v21 }
0x18ee   :  { %3426 = vpow2.f32 %v1784_v34  ;;  %v1794_v23 = vmul.f32 1.442695, %v1779_v26  ;;  %v1796_v17 = vmul.f32 1.442695, %v1780_v57  ;;  %v1798_v35 = vmul.f32 1.442695, %v1781_v1 }
0x18ef   :  { %3428 = vpow2.f32 %v1786_v14  ;;  %v1800_v8 = vmul.f32 1.442695, %v1782_v27  ;;  %v1802_v19 = vmul.f32 1.442695, %v1783_v38 }
0x18f0   :  { %3430 = vpow2.f32 %v1788_v40 }
0x18f1   :  { %3432 = vpow2.f32 %v1790_v47 }
0x18f2   :  { %3434 = vpow2.f32 %v1792_v49 }
0x18f3   :  { %v1868_v59 = vld [vmem:[#allocation3] sm:$0xff]  ;;  %3436 = vpow2.f32 %v1794_v23 }
0x18f4   :  { %1960 = vrot.lane.b32.xlu1 %v1868_v59, %s3620_s23  ;;  %3438 = vpow2.f32 %v1796_v17 }
0x18f5   :  { %3440 = vpow2.f32 %v1798_v35 }
0x18f6   :  { %3442 = vpow2.f32 %v1800_v8 }
0x18f7   :  { %3444 = vpow2.f32 %v1802_v19 }
0x18f8   :  { %v3427_v41 = vpop.eup %3426 }
0x18f9   :  { %v3429_v6 = vpop.eup %3428 }
0x18fa   :  { %v1804_v12 = vadd.f32 %v3429_v6, %v3427_v41  ;;  %v3431_v16 = vpop.eup %3430 }
0x18fb   :  { %v3433_v25 = vpop.eup %3432 }
0x18fc   :  { %v1805_v22 = vadd.f32 %v3431_v16, %v1804_v12  ;;  %v3435_v44 = vpop.eup %3434 }
0x18fd   :  { %v3437_v31 = vpop.eup %3436 }
0x18fe   :  { %v1806_v28 = vadd.f32 %v3433_v25, %v1805_v22  ;;  %v3439_v33 = vpop.eup %3438 }
0x18ff   :  { %v3441_v37 = vpop.eup %3440 }
0x1900   :  { %v1807_v5 = vadd.f32 %v3435_v44, %v1806_v28  ;;  %v3443_v18 = vpop.eup %3442 }
0x1901   :  { %v3445_v52 = vpop.eup %3444 }
0x1902   :  { %v1808_v46 = vadd.f32 %v3437_v31, %v1807_v5 }
0x1904   :  { %v1809_v48 = vadd.f32 %v3439_v33, %v1808_v46 }
0x1906   :  { %v1810_v43 = vadd.f32 %v3441_v37, %v1809_v48 }
0x1908   :  { %v1811_v56 = vadd.f32 %v3443_v18, %v1810_v43 }
0x190a   :  { %v1812_v54 = vadd.f32 %v3445_v52, %v1811_v56 }
0x190c   :  { %3446 = vrcp.f32 %v1812_v54  ;;  %v2736_v54 = vld [vmem:[%s4798_s17 + $0x28] sm:$0xff] }
0x1916   :  { %v3447_v29 = vpop.eup %3446 }
0x1917   :  { %v1814_v7 = vmul.f32 %v3447_v29, %v3427_v41  ;;  %v1815_v0 = vmul.f32 %v3447_v29, %v3429_v6  ;;  %v1816_v4 = vmul.f32 %v3447_v29, %v3431_v16  ;;  %v1817_v53 = vmul.f32 %v3447_v29, %v3433_v25 }
0x1918   :  { %v1818_v14 = vmul.f32 %v3447_v29, %v3435_v44  ;;  %v1819_v40 = vmul.f32 %v3447_v29, %v3437_v31  ;;  %v1820_v1 = vmul.f32 %v3447_v29, %v3439_v33  ;;  %v1821_v17 = vmul.f32 %v3447_v29, %v3441_v37 }
0x1919   :  { %v1824_v13 = vmul.f32 %v4402_v45, %v1814_v7  ;;  %v1825_v34 = vmul.f32 %v4408_v42, %v1815_v0  ;;  %v1826_v21 = vmul.f32 %v4414_v30, %v1816_v4  ;;  %v1827_v26 = vmul.f32 %v4420_v55, %v1817_v53 }
0x191a   :  { %v1828_v23 = vmul.f32 %v4428_v2, %v1818_v14  ;;  %v1829_v38 = vmul.f32 %v4435_v15, %v1819_v40  ;;  %v1822_v6 = vmul.f32 %v3447_v29, %v3443_v18  ;;  %v1830_v8 = vmul.f32 %v4442_v58, %v1820_v1 }
0x191b   :  { %v1834_v47 = vsel %vm57_vm0, %v1824_v13, 0.0  ;;  %v1835_v57 = vsel %vm57_vm0, %v1825_v34, 0.0  ;;  %v1837_v59 = vsel %vm57_vm0, %v1826_v21, 0.0  ;;  %v1839_v35 = vsel %vm57_vm0, %v1827_v26, 0.0 }
0x191c   :  { %v1836_v49 = vadd.f32 %v1835_v57, %v1834_v47  ;;  %v1841_v12 = vsel %vm57_vm0, %v1828_v23, 0.0  ;;  %v1823_v19 = vmul.f32 %v3447_v29, %v3445_v52  ;;  %v1831_v22 = vmul.f32 %v4449_v39, %v1821_v17 }
0x191d   :  { %v1843_v25 = vsel %vm57_vm0, %v1829_v38, 0.0  ;;  %v1832_v44 = vmul.f32 %v4456_v63, %v1822_v6  ;;  %v1845_v5 = vsel %vm57_vm0, %v1830_v8, 0.0  ;;  %v2238_v6 = vld [vmem:[%s4789_s10 + $0x18] sm:$0xff] }
0x191e   :  { %v1838_v27 = vadd.f32 %v1837_v59, %v1836_v49  ;;  %v1833_v46 = vmul.f32 %v4463_v60, %v1823_v19  ;;  %v1847_v33 = vsel %vm57_vm0, %v1831_v22, 0.0  ;;  %v2236_v59 = vld [vmem:[%s4789_s10 + $0x8] sm:$0xff] }
0x191f   :  { %v1849_v37 = vsel %vm57_vm0, %v1832_v44, 0.0  ;;  %v2240_v19 = vld [vmem:[%s4789_s10 + $0x28] sm:$0xff]  ;;  %v2242_v44 = vld [vmem:[%s4789_s10 + $0x38] sm:$0xff] }
0x1920   :  { %v1840_v41 = vadd.f32 %v1839_v35, %v1838_v27  ;;  %v1851_v18 = vsel %vm57_vm0, %v1833_v46, 0.0  ;;  %v2225_v22 = vld [vmem:[#allocation6] sm:$0xff]  ;;  %v2226_v46 = vld [vmem:[#allocation6 + $0x8] sm:$0xff] }
0x1922   :  { %v1842_v16 = vadd.f32 %v1841_v12, %v1840_v41  ;;  %v2237_v41 = vld [vmem:[%s4789_s10 + $0x10] sm:$0xff] }
0x1923   :  { %v3151_v8 = vpack.c.bf16 %v2238_v6, %v2237_v41 }
0x1924   :  { %v1844_v28 = vadd.f32 %v1843_v25, %v1842_v16  ;;  %v2239_v16 = vld [vmem:[%s4789_s10 + $0x20] sm:$0xff] }
0x1925   :  { %v3155_v25 = vpack.c.bf16 %v2240_v19, %v2239_v16 }
0x1926   :  { %v1846_v31 = vadd.f32 %v1845_v5, %v1844_v28  ;;  %v2241_v28 = vld [vmem:[%s4789_s10 + $0x30] sm:$0xff] }
0x1927   :  { %v3159_v5 = vpack.c.bf16 %v2242_v44, %v2241_v28  ;;  %v2233_v28 = vld [vmem:[%s4788_s9 + $0x10] sm:$0xff] }
0x1928   :  { %v1848_v48 = vadd.f32 %v1847_v33, %v1846_v31  ;;  %v2227_v33 = vld [vmem:[#allocation6 + $0x10] sm:$0xff] }
0x192a   :  { %v1850_v43 = vadd.f32 %v1849_v37, %v1848_v48  ;;  %v2228_v48 = vld [vmem:[#allocation6 + $0x18] sm:$0xff] }
0x192c   :  { %v1852_v56 = vadd.f32 %v1851_v18, %v1850_v43 }
0x192e   :  { %1860 = vst.msk [vmem:[#allocation4] sm:$0xff] %vm57_vm0, %v1852_v56  ;;  %1864 = vst.msk [vmem:[#allocation6 + $0x20] sm:$0xff] %vm57_vm0, %v1852_v56 }
0x1935   :  { %v1869_v52 = vld [vmem:[#allocation4] sm:$0xff]  ;;  %v2229_v37 = vld [vmem:[#allocation6 + $0x20] sm:$0xff] }
0x1936   :  { %1871 = vrot.lane.b32.xlu0 %v1869_v52, %s3617_s19 }
0x19a8   :  { %v1872_v29 = vpop.permute.xlu0 %1871 }
0x19a9   :  { %v1878_v7 = vsel %vm121_vm2, %v2736_v54, %v1872_v29 }
0x19aa   :  { %v1879_v0 = vsel %vm123_vm4, %v1878_v7, %v4544_v61  ;;  %v1961_v61 = vpop.permute.xlu1 %1960 }
0x19ab   :  { %1947 = vmatmul.mubr.f32.vlgmr.msra.gmra.mrb[12].mxu1 %v1879_v0 }
0x1a7e   :  { %v1948_v4 = vpop.f32.mrb[12].mxu1 }
0x1a7f   :  { %v1949_v53 = vadd.f32 %v4279_v50, %v1948_v4  ;;  %v1950_v13 = vpop.f32.mrb[13].mxu1  ;;  %v2235_v50 = vld [vmem:[%s4789_s10] sm:$0xff] }
0x1a80   :  { %v3147_v27 = vpack.c.bf16 %v2236_v59, %v2235_v50 }
0x1a81   :  { %3448 = vtanh.f32 %v1949_v53  ;;  %v2738_v14 = vmul.f32 -1.442695, %v1949_v53 }
0x1a82   :  { %3148 = vmatprep.subr.bf16.mxu0 %v3147_v27 }
0x1a83   :  { %3450 = vpow2.f32 %v2738_v14 }
0x1a8b   :  { %v3449_v34 = vpop.eup %3448 }
0x1a8c   :  { %1965 = vrot.lane.b32.xlu0 %v3449_v34, %s3619_s22 }
0x1a8d   :  { %v3451_v21 = vpop.eup %3450 }
0x1a8e   :  { %v1955_v40 = vadd.f32 1.0, %v3451_v21 }
0x1a90   :  { %3452 = vrcp.f32 %v1955_v40 }
0x1a9a   :  { %v3453_v26 = vpop.eup %3452 }
0x1a9b   :  { %v1963_v49 = vmul.f32 %v3453_v26, %v1961_v61 }
0x1afe   :  { %v1966_v47 = vpop.permute.xlu0 %1965 }
0x1aff   :  { %v1968_v57 = vmul.f32 %v3453_v26, %v1966_v47 }
0x1b01   :  { %1970 = vrot.lane.b32.xlu0 %v1968_v57, %s3620_s23 }
0x1b73   :  { %v1971_v1 = vpop.permute.xlu0 %1970 }
0x1b74   :  { %v4582_v23 = vadd.f32 %v1971_v1, %v1963_v49 }
0x1b76   :  { %3454 = vtanh.f32 %v4582_v23 }
0x1b80   :  { %v3455_v17 = vpop.eup %3454 }
0x1b81   :  { %1976 = vrot.lane.b32.xlu1 %v3455_v17, %s3619_s22 }
0x1bf3   :  { %v1977_v38 = vpop.permute.xlu1 %1976 }
0x1bf4   :  { %v1979_v35 = vmul.f32 %v3453_v26, %v1977_v38 }
0x1bf6   :  { %1981 = vrot.lane.b32.xlu0 %v1979_v35, %s3620_s23 }
0x1c68   :  { %v1982_v12 = vpop.permute.xlu0 %1981 }
0x1c69   :  { %2204 = vst.msk [vmem:[#allocation2] sm:$0xff] %vm53_vm1, %v1982_v12  ;;  %2212 = vst.msk [vmem:[#allocation5 + $0x28] sm:$0xff] %vm53_vm1, %v1982_v12  ;;  %2888 = vmatmul.mubr.msk.f32.vlgmr.msra.gmra.mrb[8].mxu0 %vm53_vm1, %v1982_v12 }
0x1c6a   :  { %3150 = vmatpush3.bf16.msra.mxu0 %v3147_v27  ;;  %2906 = vmatprep.mubr.msk.f32.mxu0 %vm57_vm0, %v2225_v22  ;;  %v2231_v22 = vld [vmem:[%s4788_s9] sm:$0xff] }
0x1c6b   :  { %3152 = vmatprep.subr.bf16.mxu0 %v3151_v8 }
0x1c6e   :  { %3154 = vmatpush3.bf16.msra.mxu0 %v3151_v8 }
0x1c6f   :  { %3156 = vmatprep.subr.bf16.mxu0 %v3155_v25 }
0x1c70   :  { %v2215_v31 = vld [vmem:[#allocation2] sm:$0xff] }
0x1c71   :  { %2216 = vst.msk [vmem:[#allocation9] sm:$0xff] %vm53_vm1, %v2215_v31 }
0x1c72   :  { %3158 = vmatpush3.bf16.msra.mxu0 %v3155_v25  ;;  %v2232_v25 = vld [vmem:[%s4788_s9 + $0x8] sm:$0xff] }
0x1c73   :  { %3160 = vmatprep.subr.bf16.mxu0 %v3159_v5  ;;  %v3163_v44 = vpack.c.bf16 %v2232_v25, %v2231_v22 }
0x1c76   :  { %3162 = vmatpush3.bf16.msra.mxu0 %v3159_v5  ;;  %v2234_v5 = vld [vmem:[%s4788_s9 + $0x18] sm:$0xff] }
0x1c77   :  { %v3167_v31 = vpack.c.bf16 %v2234_v5, %v2233_v28  ;;  %3164 = vmatprep.subr.bf16.mxu0 %v3163_v44 }
0x1c79   :  { %2907 = vmatmul.mubr.msk.f32.vlgmr.msra.gmra.mrb[10].mxu0 %vm57_vm0, %v2226_v46  ;;  %v2482_v46 = vld [vmem:[%s4791_s12] sm:$0xff] }
0x1c7a   :  { %2909 = vmatprep.mubr.msk.f32.mxu0 %vm57_vm0, %v2227_v33  ;;  %3166 = vmatpush3.bf16.msra.mxu0 %v3163_v44  ;;  %v2483_v33 = vld [vmem:[%s4791_s12 + $0x8] sm:$0xff] }
0x1c7b   :  { %3168 = vmatprep.subr.bf16.mxu0 %v3167_v31 }
0x1c7d   :  { %2910 = vmatmul.mubr.msk.f32.gmra.mrb[12].mxu0 %vm57_vm0, %v2228_v48  ;;  %v3171_v48 = vpack.c.bf16 %v2483_v33, %v2482_v46 }
0x1c7e   :  { %2912 = vmatprep.mubr.msk.f32.mxu0 %vm57_vm0, %v2229_v37  ;;  %3170 = vmatpush3.bf16.msra.mxu0 %v3167_v31 }
0x1c7f   :  { %3172 = vmatprep.subr.bf16.mxu1 %v3171_v48 }
0x1c80   :  { %3174 = vmatpush3.bf16.msra.mxu1 %v3171_v48 }
0x1d3c   :  { %v2051_v43 = vpop.f32.mrb[8].mxu0 }
0x1d3d   :  { %v2889_v18 = vpop.f32.mrb[9].mxu0  ;;  %v2056_v56 = vadd.f32 %v4313_v24, %v2051_v43  ;;  %v2055_v52 = vadd.f32 %v4319_v51, %v2051_v43  ;;  %v2059_v54 = vadd.f32 %v4325_v32, %v2051_v43  ;;  %v2060_v29 = vadd.f32 %v4331_v62, %v2051_v43 }
0x1d3e   :  { %v2057_v7 = vadd.f32 %v4337_v10, %v2051_v43  ;;  %v2058_v0 = vadd.f32 %v4343_v36, %v2051_v43  ;;  %v2061_v4 = vadd.f32 %v4349_v11, %v2051_v43  ;;  %v2062_v24 = vadd.f32 %v4355_v3, %v2051_v43  ;;  %v3544_v10 = vld [vmem:[%s4787_s8] ss:$0 sm:$0xff] }
0x1d3f   :  { %3456 = vtanh.f32 %v2056_v56  ;;  %v2063_v51 = vadd.f32 %v4361_v20, %v2051_v43  ;;  %v2064_v32 = vadd.f32 %v4367_v9, %v2051_v43 }
0x1d40   :  { %3458 = vtanh.f32 %v2055_v52 }
0x1d41   :  { %3460 = vtanh.f32 %v2059_v54 }
0x1d42   :  { %3462 = vtanh.f32 %v2060_v29 }
0x1d43   :  { %3464 = vtanh.f32 %v2057_v7 }
0x1d44   :  { %3466 = vtanh.f32 %v2058_v0 }
0x1d45   :  { %3468 = vtanh.f32 %v2061_v4 }
0x1d46   :  { %3470 = vtanh.f32 %v2062_v24 }
0x1d47   :  { %3472 = vtanh.f32 %v2063_v51 }
0x1d48   :  { %3474 = vtanh.f32 %v2064_v32 }
0x1d49   :  { %v3457_v62 = vpop.eup %3456 }
0x1d4a   :  { %v3459_v53 = vpop.eup %3458  ;;  %v2076_v36 = vmul.f32 %v3544_v10, %v3457_v62 }
0x1d4b   :  { %v3461_v13 = vpop.eup %3460  ;;  %v2075_v34 = vmul.f32 %v3544_v10, %v3459_v53 }
0x1d4c   :  { %v3463_v11 = vpop.eup %3462  ;;  %v2088_v14 = vsel %vm53_vm1, %v2076_v36, 0.0  ;;  %v2079_v3 = vmul.f32 %v3544_v10, %v3461_v13 }
0x1d4d   :  { %v3465_v21 = vpop.eup %3464  ;;  %2089 = vadd.xlane.f32.xlu0 %v2088_v14  ;;  %v2085_v20 = vsel %vm53_vm1, %v2075_v34, 0.0  ;;  %v2080_v9 = vmul.f32 %v3544_v10, %v3463_v11 }
0x1d4e   :  { %v3467_v40 = vpop.eup %3466  ;;  %2086 = vadd.xlane.f32.xlu1 %v2085_v20  ;;  %v2097_v26 = vsel %vm53_vm1, %v2079_v3, 0.0  ;;  %v2077_v47 = vmul.f32 %v3544_v10, %v3465_v21 }
0x1d4f   :  { %v3469_v57 = vpop.eup %3468  ;;  %v2100_v61 = vsel %vm53_vm1, %v2080_v9, 0.0  ;;  %v2078_v49 = vmul.f32 %v3544_v10, %v3467_v40 }
0x1d50   :  { %v3471_v1 = vpop.eup %3470  ;;  %v2091_v50 = vsel %vm53_vm1, %v2077_v47, 0.0  ;;  %v2081_v59 = vmul.f32 %v3544_v10, %v3469_v57 }
0x1d51   :  { %2098 = vadd.xlane.f32.xlu0 %v2097_v26  ;;  %v3473_v27 = vpop.eup %3472  ;;  %v2094_v17 = vsel %vm53_vm1, %v2078_v49, 0.0  ;;  %v2082_v38 = vmul.f32 %v3544_v10, %v3471_v1 }
0x1d52   :  { %2101 = vadd.xlane.f32.xlu1 %v2100_v61  ;;  %v3475_v35 = vpop.eup %3474  ;;  %v2103_v41 = vsel %vm53_vm1, %v2081_v59, 0.0  ;;  %v2083_v6 = vmul.f32 %v3544_v10, %v3473_v27 }
0x1d53   :  { %v2106_v8 = vsel %vm53_vm1, %v2082_v38, 0.0  ;;  %v2084_v12 = vmul.f32 %v3544_v10, %v3475_v35 }
0x1d54   :  { %v2109_v16 = vsel %vm53_vm1, %v2083_v6, 0.0 }
0x1d55   :  { %2092 = vadd.xlane.f32.xlu0 %v2091_v50  ;;  %v2112_v19 = vsel %vm53_vm1, %v2084_v12, 0.0 }
0x1d56   :  { %2095 = vadd.xlane.f32.xlu1 %v2094_v17 }
0x1d59   :  { %2104 = vadd.xlane.f32.xlu0 %v2103_v41 }
0x1d5a   :  { %2107 = vadd.xlane.f32.xlu1 %v2106_v8 }
0x1d5d   :  { %2110 = vadd.xlane.f32.xlu0 %v2109_v16 }
0x1d5e   :  { %2113 = vadd.xlane.f32.xlu1 %v2112_v19 }
0x1dda   :  { %v2090_v37 = vpop.xlane.xlu0 %2089 }
0x1ddb   :  { %v2087_v43 = vpop.xlane.xlu1 %2086 }
0x1dde   :  { %v2099_v18 = vpop.xlane.xlu0 %2098 }
0x1ddf   :  { %v2102_v56 = vpop.xlane.xlu1 %2101  ;;  %v2115_v0 = vmax.f32 %v2087_v43, %v2099_v18 }
0x1de0   :  { %v2116_v4 = vmax.f32 %v2090_v37, %v2102_v56 }
0x1de2   :  { %v2093_v52 = vpop.xlane.xlu0 %2092 }
0x1de3   :  { %v2096_v54 = vpop.xlane.xlu1 %2095 }
0x1de6   :  { %v2105_v29 = vpop.xlane.xlu0 %2104 }
0x1de7   :  { %v2108_v7 = vpop.xlane.xlu1 %2107  ;;  %v2117_v24 = vmax.f32 %v2093_v52, %v2105_v29 }
0x1de8   :  { %v2118_v51 = vmax.f32 %v2096_v54, %v2108_v7 }
0x1dea   :  { %v2111_v32 = vpop.xlane.xlu0 %2110  ;;  %v2122_v36 = vmax.f32 %v2117_v24, %v2118_v51 }
0x1deb   :  { %v2119_v62 = vmax.f32 %v2115_v0, %v2111_v32  ;;  %v2114_v53 = vpop.xlane.xlu1 %2113 }
0x1dec   :  { %v2120_v10 = vmax.f32 %v2116_v4, %v2114_v53 }
0x1dee   :  { %v2121_v13 = vmax.f32 %v2119_v62, %v2120_v10 }
0x1df0   :  { %v2123_v34 = vmax.f32 %v2121_v13, %v2122_v36 }
0x1df2   :  { %v2124_v11 = vsub.f32 %v2087_v43, %v2123_v34  ;;  %v2125_v14 = vsub.f32 %v2090_v37, %v2123_v34  ;;  %v2126_v3 = vsub.f32 %v2093_v52, %v2123_v34  ;;  %v2127_v21 = vsub.f32 %v2096_v54, %v2123_v34 }
0x1df3   :  { %v2128_v40 = vsub.f32 %v2099_v18, %v2123_v34  ;;  %v2129_v47 = vsub.f32 %v2102_v56, %v2123_v34  ;;  %v2130_v61 = vsub.f32 %v2105_v29, %v2123_v34  ;;  %v2131_v1 = vsub.f32 %v2108_v7, %v2123_v34 }
0x1df4   :  { %v2134_v20 = vmul.f32 1.442695, %v2124_v11  ;;  %v2136_v9 = vmul.f32 1.442695, %v2125_v14  ;;  %v2138_v26 = vmul.f32 1.442695, %v2126_v3  ;;  %v2132_v59 = vsub.f32 %v2111_v32, %v2123_v34 }
0x1df5   :  { %v2140_v57 = vmul.f32 1.442695, %v2127_v21  ;;  %v2142_v49 = vmul.f32 1.442695, %v2128_v40  ;;  %v2144_v50 = vmul.f32 1.442695, %v2129_v47  ;;  %v2133_v17 = vsub.f32 %v2114_v53, %v2123_v34 }
0x1df6   :  { %3476 = vpow2.f32 %v2134_v20  ;;  %v2146_v27 = vmul.f32 1.442695, %v2130_v61  ;;  %v2148_v38 = vmul.f32 1.442695, %v2131_v1  ;;  %v2150_v6 = vmul.f32 1.442695, %v2132_v59 }
0x1df7   :  { %3478 = vpow2.f32 %v2136_v9  ;;  %v2152_v16 = vmul.f32 1.442695, %v2133_v17 }
0x1df8   :  { %3480 = vpow2.f32 %v2138_v26 }
0x1df9   :  { %3482 = vpow2.f32 %v2140_v57 }
0x1dfa   :  { %3484 = vpow2.f32 %v2142_v49 }
0x1dfb   :  { %3486 = vpow2.f32 %v2144_v50 }
0x1dfc   :  { %3488 = vpow2.f32 %v2146_v27 }
0x1dfd   :  { %3490 = vpow2.f32 %v2148_v38 }
0x1dfe   :  { %3492 = vpow2.f32 %v2150_v6  ;;  %v2222_v6 = vld [vmem:[#allocation5 + $0x18] sm:$0xff] }
0x1dff   :  { %3494 = vpow2.f32 %v2152_v16  ;;  %v2484_v16 = vld [vmem:[%s4791_s12 + $0x10] sm:$0xff] }
0x1e00   :  { %v3477_v35 = vpop.eup %3476 }
0x1e01   :  { %v3479_v41 = vpop.eup %3478 }
0x1e02   :  { %v2154_v8 = vadd.f32 %v3479_v41, %v3477_v35  ;;  %v3481_v12 = vpop.eup %3480 }
0x1e03   :  { %v3483_v22 = vpop.eup %3482 }
0x1e04   :  { %v2155_v19 = vadd.f32 %v3481_v12, %v2154_v8  ;;  %v3485_v28 = vpop.eup %3484  ;;  %v2223_v8 = vld [vmem:[#allocation5 + $0x20] sm:$0xff] }
0x1e05   :  { %v3487_v5 = vpop.eup %3486 }
0x1e06   :  { %v2156_v25 = vadd.f32 %v3483_v22, %v2155_v19  ;;  %v3489_v46 = vpop.eup %3488  ;;  %v2485_v19 = vld [vmem:[%s4791_s12 + $0x18] sm:$0xff] }
0x1e07   :  { %v3491_v48 = vpop.eup %3490 }
0x1e08   :  { %v2157_v44 = vadd.f32 %v3485_v28, %v2156_v25  ;;  %v3493_v43 = vpop.eup %3492  ;;  %v2752_v25 = vld [vmem:[%s4790_s11] ss:$0 sm:$0xff] }
0x1e09   :  { %v3495_v56 = vpop.eup %3494 }
0x1e0a   :  { %v2158_v31 = vadd.f32 %v3487_v5, %v2157_v44 }
0x1e0c   :  { %v2159_v33 = vadd.f32 %v3489_v46, %v2158_v31 }
0x1e0e   :  { %v2160_v37 = vadd.f32 %v3491_v48, %v2159_v33 }
0x1e10   :  { %v2161_v18 = vadd.f32 %v3493_v43, %v2160_v37 }
0x1e12   :  { %v2162_v52 = vadd.f32 %v3495_v56, %v2161_v18 }
0x1e14   :  { %3496 = vrcp.f32 %v2162_v52 }
0x1e1e   :  { %v3497_v54 = vpop.eup %3496 }
0x1e1f   :  { %v2164_v29 = vmul.f32 %v3497_v54, %v3477_v35  ;;  %v2165_v7 = vmul.f32 %v3497_v54, %v3479_v41  ;;  %v2166_v0 = vmul.f32 %v3497_v54, %v3481_v12  ;;  %v2167_v4 = vmul.f32 %v3497_v54, %v3483_v22  ;;  %v2221_v41 = vld [vmem:[#allocation5 + $0x10] sm:$0xff]  ;;  %v2224_v12 = vld [vmem:[#allocation5 + $0x28] sm:$0xff] }
0x1e20   :  { %v2168_v32 = vmul.f32 %v3497_v54, %v3485_v28  ;;  %v2169_v53 = vmul.f32 %v3497_v54, %v3487_v5  ;;  %v2170_v11 = vmul.f32 %v3497_v54, %v3489_v46  ;;  %v2172_v9 = vmul.f32 %v3497_v54, %v3493_v43 }
0x1e21   :  { %v2174_v24 = vmul.f32 %v4402_v45, %v2164_v29  ;;  %v2175_v51 = vmul.f32 %v4408_v42, %v2165_v7  ;;  %v2176_v62 = vmul.f32 %v4414_v30, %v2166_v0  ;;  %v2177_v10 = vmul.f32 %v4420_v55, %v2167_v4 }
0x1e22   :  { %v2178_v14 = vmul.f32 %v4428_v2, %v2168_v32  ;;  %v2171_v45 = vmul.f32 %v3497_v54, %v3491_v48  ;;  %v2179_v42 = vmul.f32 %v4435_v15, %v2169_v53  ;;  %v2180_v55 = vmul.f32 %v4442_v58, %v2170_v11 }
0x1e23   :  { %v2184_v36 = vsel %vm57_vm0, %v2174_v24, 0.0  ;;  %v2185_v13 = vsel %vm57_vm0, %v2175_v51, 0.0  ;;  %v2187_v3 = vsel %vm57_vm0, %v2176_v62, 0.0  ;;  %v2189_v20 = vsel %vm57_vm0, %v2177_v10, 0.0 }
0x1e24   :  { %v2186_v34 = vadd.f32 %v2185_v13, %v2184_v36  ;;  %v2191_v40 = vsel %vm57_vm0, %v2178_v14, 0.0  ;;  %v2173_v47 = vmul.f32 %v3497_v54, %v3495_v56  ;;  %v2181_v57 = vmul.f32 %v4449_v39, %v2171_v45  ;;  %v2753_v54 = vld [vmem:[%s4792_s13] ss:$0 sm:$0xff]  ;;  %s3623_s13 = smov [#allocation9]  }
0x1e25   :  { %v2193_v2 = vsel %vm57_vm0, %v2179_v42, 0.0  ;;  %v2182_v49 = vmul.f32 %v4456_v63, %v2172_v9  ;;  %v2195_v1 = vsel %vm57_vm0, %v2180_v55, 0.0  ;;  %v2219_v63 = vld [vmem:[#allocation5] sm:$0xff]  ;;  %v3175_v22 = vpack.c.bf16 %v2485_v19, %v2484_v16  ;;  %s2690_s23 = sshll.u32 %s3623_s13, 4  ;;  %s2691_s23 = int_to_ptr.vmem [resolvable:$true] %s2690_s23 }
0x1e26   :  { %v2188_v21 = vadd.f32 %v2187_v3, %v2186_v34  ;;  %v2183_v50 = vmul.f32 %v4463_v60, %v2173_v47  ;;  %v2197_v59 = vsel %vm57_vm0, %v2181_v57, 0.0  ;;  %v2220_v60 = vld [vmem:[#allocation5 + $0x8] sm:$0xff]  ;;  %s3545_s20 = scalar_lea.vmem %s2691_s23, 128  ;;  %p3550_p1 = scmp.lt.s32.totalorder %s2691_s23, %s2691_s23 }
0x1e27   :  { %v2199_v58 = vsel %vm57_vm0, %v2182_v49, 0.0  ;;  %3176 = vmatprep.subr.bf16.mxu1 %v3175_v22  ;;  %p3546_p0 = scmp.ne.s32.totalorder %s2691_s23, %s3545_s20  ;;  %p3551_p2 = scmp.lt.s32.totalorder %s3545_s20, %s3545_s20 }
0x1e28   :  { %v2190_v30 = vadd.f32 %v2189_v20, %v2188_v21  ;;  %v2201_v38 = vsel %vm57_vm0, %v2183_v50, 0.0  ;;  %3178 = vmatpush3.bf16.msra.mxu1 %v3175_v22 }
0x1e29   :  { %p3552_p3 = por %p3551_p2, %p3550_p1 }
0x1e2a   :  { %v2192_v26 = vadd.f32 %v2191_v40, %v2190_v30 }
0x1e2b   :  { %p3553_p4 = pnand %p3552_p3, %p3546_p0 }
0x1e2c   :  { %v2194_v61 = vadd.f32 %v2193_v2, %v2192_v26 }
0x1e2e   :  { %v2196_v15 = vadd.f32 %v2195_v1, %v2194_v61 }
0x1e30   :  { %v2198_v27 = vadd.f32 %v2197_v59, %v2196_v15 }
0x1e32   :  { %v2200_v17 = vadd.f32 %v2199_v58, %v2198_v27 }
0x1e34   :  { %v2202_v35 = vadd.f32 %v2201_v38, %v2200_v17 }
0x1e36   :  { %2210 = vst.msk [vmem:[#allocation4] sm:$0xff] %vm57_vm0, %v2202_v35  ;;  %2214 = vst.msk [vmem:[#allocation6 + $0x28] sm:$0xff] %vm57_vm0, %v2202_v35 }
0x1e3d   :  { %v2230_v39 = vld [vmem:[#allocation6 + $0x28] sm:$0xff] }
0x1e3e   :  { %2913 = vmatmul.mubr.msk.f32.gmra.mrb[14].mxu0 %vm57_vm0, %v2230_v39 }
0x1e3f   :  { %2923 = vmatprep.mubr.msk.f32.mxu0 %vm53_vm1, %v2219_v63 }
0x1e42   :  { %2924 = vmatmul.mubr.msk.f32.vlgmr.msra.gmra.mrb[10].mxu0 %vm53_vm1, %v2220_v60 }
0x1e43   :  { %2926 = vmatprep.mubr.msk.f32.mxu0 %vm53_vm1, %v2221_v41 }
0x1e46   :  { %2927 = vmatmul.mubr.msk.f32.gmra.mrb[12].mxu0 %vm53_vm1, %v2222_v6 }
0x1e47   :  { %2929 = vmatprep.mubr.msk.f32.mxu0 %vm53_vm1, %v2223_v8 }
0x1e4a   :  { %2930 = vmatmul.mubr.msk.f32.gmra.mrb[14].mxu0 %vm53_vm1, %v2224_v12 }
0x1f15   :  { %v2925_v28 = vpop.f32.mrb[10].mxu0 }
0x1f16   :  { %v2440_v44 = vpop.f32.mrb[11].mxu0  ;;  %v2477_v31 = vadd.f32 %v2925_v28, %v2752_v25 }
0x1f17   :  { %v2476_v5 = vadd.f32 %v2752_v25, %v2440_v44 }
0x1f19   :  { %v2928_v46 = vpop.f32.mrb[12].mxu0  ;;  %2940 = vmatprep.mubr.msk.f32.mxu1 %vm53_vm1, %v2476_v5 }
0x1f1a   :  { %v2450_v33 = vpop.f32.mrb[13].mxu0  ;;  %2941 = vmatmul.mubr.msk.f32.vlgmr.msra.gmra.mrb[14].mxu1 %vm53_vm1, %v2477_v31  ;;  %v2479_v37 = vadd.f32 %v2928_v46, %v2752_v25 }
0x1f1b   :  { %v2478_v48 = vadd.f32 %v2752_v25, %v2450_v33 }
0x1f1d   :  { %v2931_v43 = vpop.f32.mrb[14].mxu0  ;;  %2943 = vmatprep.mubr.msk.f32.mxu1 %vm53_vm1, %v2478_v48 }
0x1f1e   :  { %v2460_v18 = vpop.f32.mrb[15].mxu0  ;;  %2944 = vmatmul.mubr.msk.f32.gmra.mrb[16].mxu1 %vm53_vm1, %v2479_v37  ;;  %v2481_v52 = vadd.f32 %v2931_v43, %v2752_v25 }
0x1f1f   :  { %v2480_v56 = vadd.f32 %v2752_v25, %v2460_v18 }
0x1f21   :  { %2946 = vmatprep.mubr.msk.f32.mxu1 %vm53_vm1, %v2480_v56 }
0x1f22   :  { %2947 = vmatmul.mubr.msk.f32.gmra.mrb[18].mxu1 %vm53_vm1, %v2481_v52 }
0x1fed   :  { %v2942_v29 = vpop.f32.mrb[14].mxu1 }
0x1fee   :  { %v2583_v7 = vadd.f32 %v2942_v29, %v2753_v54  ;;  %v2577_v0 = vpop.f32.mrb[15].mxu1 }
0x1fef   :  { %v2578_v4 = vadd.f32 %v2753_v54, %v2577_v0 }
0x1ff0   :  { %2608 = vmax.xlane.f32.xlu1 %v2583_v7 }
0x1ff1   :  { %2606 = vmax.xlane.f32.xlu0 %v2578_v4  ;;  %v2945_v24 = vpop.f32.mrb[16].mxu1 }
0x1ff2   :  { %v2593_v51 = vadd.f32 %v2945_v24, %v2753_v54  ;;  %v2587_v32 = vpop.f32.mrb[17].mxu1 }
0x1ff3   :  { %v2588_v62 = vadd.f32 %v2753_v54, %v2587_v32 }
0x1ff4   :  { %2612 = vmax.xlane.f32.xlu1 %v2593_v51 }
0x1ff5   :  { %2610 = vmax.xlane.f32.xlu0 %v2588_v62  ;;  %v2948_v53 = vpop.f32.mrb[18].mxu1 }
0x1ff6   :  { %v2603_v10 = vadd.f32 %v2948_v53, %v2753_v54  ;;  %v2597_v36 = vpop.f32.mrb[19].mxu1 }
0x1ff7   :  { %v2598_v13 = vadd.f32 %v2753_v54, %v2597_v36 }
0x1ff8   :  { %2616 = vmax.xlane.f32.xlu1 %v2603_v10 }
0x1ff9   :  { %2614 = vmax.xlane.f32.xlu0 %v2598_v13 }
0x207d   :  { %v2609_v34 = vpop.xlane.xlu1 %2608 }
0x207e   :  { %v4708_v11 = vsub.f32 %v2583_v7, %v2609_v34  ;;  %v2607_v14 = vpop.xlane.xlu0 %2606 }
0x207f   :  { %v4710_v3 = vsub.f32 %v2578_v4, %v2607_v14 }
0x2080   :  { %v2626_v21 = vmul.f32 1.442695, %v4708_v11 }
0x2081   :  { %v2624_v45 = vmul.f32 1.442695, %v4710_v3  ;;  %v2613_v42 = vpop.xlane.xlu1 %2612 }
0x2082   :  { %3498 = vpow2.f32 %v2626_v21  ;;  %v4714_v20 = vsub.f32 %v2593_v51, %v2613_v42  ;;  %v2611_v30 = vpop.xlane.xlu0 %2610 }
0x2083   :  { %3500 = vpow2.f32 %v2624_v45  ;;  %v4716_v9 = vsub.f32 %v2588_v62, %v2611_v30 }
0x2084   :  { %v2630_v55 = vmul.f32 1.442695, %v4714_v20 }
0x2085   :  { %v2628_v40 = vmul.f32 1.442695, %v4716_v9  ;;  %v2617_v26 = vpop.xlane.xlu1 %2616 }
0x2086   :  { %3502 = vpow2.f32 %v2630_v55  ;;  %v4720_v47 = vsub.f32 %v2603_v10, %v2617_v26  ;;  %v2615_v57 = vpop.xlane.xlu0 %2614 }
0x2087   :  { %3504 = vpow2.f32 %v2628_v40  ;;  %v4722_v2 = vsub.f32 %v2598_v13, %v2615_v57 }
0x2088   :  { %v2634_v61 = vmul.f32 1.442695, %v4720_v47 }
0x2089   :  { %v2632_v49 = vmul.f32 1.442695, %v4722_v2 }
0x208a   :  { %3506 = vpow2.f32 %v2634_v61 }
0x208b   :  { %3508 = vpow2.f32 %v2632_v49 }
0x208c   :  { %v3499_v1 = vpop.eup %3498 }
0x208d   :  { %v3501_v15 = vpop.eup %3500  ;;  %2638 = vadd.xlane.f32.xlu1 %v3499_v1 }
0x208e   :  { %2636 = vadd.xlane.f32.xlu0 %v3501_v15 }
0x2090   :  { %v3503_v50 = vpop.eup %3502 }
0x2091   :  { %v3505_v59 = vpop.eup %3504  ;;  %2642 = vadd.xlane.f32.xlu1 %v3503_v50 }
0x2092   :  { %2640 = vadd.xlane.f32.xlu0 %v3505_v59 }
0x2094   :  { %v3507_v27 = vpop.eup %3506 }
0x2095   :  { %v3509_v58 = vpop.eup %3508  ;;  %2646 = vadd.xlane.f32.xlu1 %v3507_v27 }
0x2096   :  { %2644 = vadd.xlane.f32.xlu0 %v3509_v58 }
0x20ac   :  { %2206 = vrot.lane.b32.xlu0 %v4582_v23, %s3622_s26 }
0x20ad   :  { %3556 = shalt.err (!%p3553_p4)
}
0x20ae   :  { %s3557_s10 = scalar_lea.hbm %s4794_s15, 128 }
0x20af   :  { %p3558_p5 = scmp.ne.s32.totalorder %s4794_s15, %s3557_s10  ;;  %p3561_p6 = scmp.lt.u32.totalorder %s3557_s10, %s4794_s15 }
0x20b1   :  { %p3563_p7 = pnand %p3561_p6, %p3558_p5 }
0x20b3   :  { %3566 = shalt.err (!%p3563_p7)
}
0x20b4   :  { %2693 = dma.vmem_to_hbm [thread:$0]  %s2691_s23, 128, %s4794_s15, [#allocation10]  }
0x20b5   :  { %s3624_s15 = smov [#allocation11]   ;;  %s3625_s19 = smov [#allocation7]  }
0x20b6   :  { %s2700_s28 = sshll.u32 %s3624_s15, 4  ;;  %s2677_s17 = sshll.u32 %s3625_s19, 4  ;;  %s2701_s28 = int_to_ptr.vmem [resolvable:$true] %s2700_s28  ;;  %s4745_s17 = int_to_ptr.vmem [resolvable:$true] %s2677_s17 }
0x20b7   :  { %s3567_s1 = scalar_lea.vmem %s2701_s28, 128  ;;  %p3572_p9 = scmp.lt.s32.totalorder %s2701_s28, %s2701_s28 }
0x20b8   :  { %p3568_p8 = scmp.ne.s32.totalorder %s2701_s28, %s3567_s1  ;;  %p3573_p10 = scmp.lt.s32.totalorder %s3567_s1, %s3567_s1 }
0x20ba   :  { %p3574_p11 = por %p3573_p10, %p3572_p9 }
0x20bc   :  { %p3575_p12 = pnand %p3574_p11, %p3568_p8 }
0x211a   :  { %v2639_v23 = vpop.xlane.xlu1 %2638 }
0x211b   :  { %3510 = vlog2.f32 %v2639_v23  ;;  %v2637_v17 = vpop.xlane.xlu0 %2636 }
0x211c   :  { %3512 = vlog2.f32 %v2637_v17 }
0x211e   :  { %v2643_v38 = vpop.xlane.xlu1 %2642 }
0x211f   :  { %3514 = vlog2.f32 %v2643_v38  ;;  %v2641_v35 = vpop.xlane.xlu0 %2640 }
0x2120   :  { %3516 = vlog2.f32 %v2641_v35 }
0x2122   :  { %v2647_v39 = vpop.xlane.xlu1 %2646 }
0x2123   :  { %3518 = vlog2.f32 %v2647_v39  ;;  %v2645_v63 = vpop.xlane.xlu0 %2644 }
0x2124   :  { %3520 = vlog2.f32 %v2645_v63 }
0x2125   :  { %v3511_v60 = vpop.eup %3510 }
0x2126   :  { %v3513_v41 = vpop.eup %3512  ;;  %v2651_v6 = vmul.f32 0.6931472, %v3511_v60 }
0x2127   :  { %v2649_v8 = vmul.f32 0.6931472, %v3513_v41  ;;  %v2207_v12 = vpop.permute.xlu0 %2206 }
0x2128   :  { %v2661_v16 = vsub.f32 %v4708_v11, %v2651_v6  ;;  %2209 = vst.msk [vmem:[#allocation3] sm:$0xff] %vm53_vm1, %v2207_v12 }
0x2129   :  { %v3515_v19 = vpop.eup %3514  ;;  %v2660_v22 = vsub.f32 %v4710_v3, %v2649_v8 }
0x212a   :  { %v3517_v25 = vpop.eup %3516  ;;  %2667 = vst [vmem:[#allocation7 + $0x8] sm:$0xff] %v2661_v16  ;;  %v2655_v28 = vmul.f32 0.6931472, %v3515_v19 }
0x212b   :  { %2666 = vst [vmem:[#allocation7] sm:$0xff] %v2660_v22  ;;  %v2653_v44 = vmul.f32 0.6931472, %v3517_v25 }
0x212c   :  { %v2663_v5 = vsub.f32 %v4714_v20, %v2655_v28 }
0x212d   :  { %v3519_v31 = vpop.eup %3518  ;;  %v2662_v46 = vsub.f32 %v4716_v9, %v2653_v44 }
0x212e   :  { %v3521_v33 = vpop.eup %3520  ;;  %2669 = vst [vmem:[#allocation7 + $0x18] sm:$0xff] %v2663_v5  ;;  %v2659_v48 = vmul.f32 0.6931472, %v3519_v31 }
0x212f   :  { %2668 = vst [vmem:[#allocation7 + $0x10] sm:$0xff] %v2662_v46  ;;  %v2657_v37 = vmul.f32 0.6931472, %v3521_v33  ;;  %v2217_v43 = vld [vmem:[#allocation3] sm:$0xff] }
0x2130   :  { %v2665_v18 = vsub.f32 %v4720_v47, %v2659_v48  ;;  %2218 = vst.msk [vmem:[#allocation11] sm:$0xff] %vm53_vm1, %v2217_v43 }
0x2131   :  { %v2664_v56 = vsub.f32 %v4722_v2, %v2657_v37 }
0x2132   :  { %3578 = shalt.err (!%p3575_p12)
}
0x2133   :  { %s3579_s30 = scalar_lea.hbm %s4795_s16, 128 }
0x2134   :  { %p3580_p13 = scmp.ne.s32.totalorder %s4795_s16, %s3579_s30  ;;  %p3583_p0 = scmp.lt.u32.totalorder %s3579_s30, %s4795_s16 }
0x2136   :  { %p3585_p1 = pnand %p3583_p0, %p3580_p13 }
0x2138   :  { %3588 = shalt.err (!%p3585_p1)
}
0x2139   :  { %2703 = dma.vmem_to_hbm [thread:$0]  %s2701_s28, 128, %s4795_s16, [#allocation10]   ;;  %2671 = vst [vmem:[#allocation7 + $0x28] sm:$0xff] %v2665_v18  ;;  %2670 = vst [vmem:[#allocation7 + $0x20] sm:$0xff] %v2664_v56 }
0x213a   :  { %s3589_s22 = scalar_lea.vmem %s4745_s17, 768  ;;  %p3594_p3 = scmp.lt.s32.totalorder %s4745_s17, %s4745_s17 }
0x213b   :  { %p3590_p2 = scmp.ne.s32.totalorder %s4745_s17, %s3589_s22  ;;  %p3595_p4 = scmp.lt.s32.totalorder %s3589_s22, %s3589_s22 }
0x213d   :  { %p3596_p5 = por %p3595_p4, %p3594_p3 }
0x213f   :  { %p3597_p6 = pnand %p3596_p5, %p3590_p2 }
0x2141   :  { %3600 = shalt.err (!%p3597_p6)
}
0x2142   :  { %s3601_s13 = scalar_lea.hbm %s4793_s14, 768 }
0x2143   :  { %p3602_p7 = scmp.ne.s32.totalorder %s4793_s14, %s3601_s13  ;;  %p3605_p8 = scmp.lt.u32.totalorder %s3601_s13, %s4793_s14 }
0x2145   :  { %p3607_p9 = pnand %p3605_p8, %p3602_p7 }
0x2147   :  { %3610 = shalt.err (!%p3607_p9)
}
0x2148   :  { %s3626_s2 = smov 128   ;;  %s3627_s10 = smov 8  }
0x2149   :  { %2683 = dma.vmem_to_hbm [thread:$0]  %s4745_s17, 768, %s4793_s14, [#allocation8], %s3626_s2, %s3626_s2, %s3627_s10  }
0x214a   :  { %3611 = dma.done.wait [#allocation8], 768  }
0x214b   :  { %3612 = vsyncadd [#allocation8], 4294966528 }
0x214c   :  { %3613 = dma.done.wait [#allocation10], 256  }
0x214d   :  { %3614 = vsyncadd [#allocation10], 4294967040 }
0x214e   :  { %2713 = vsyncpa [#allocation8], 1 }
0x214f   :  { %2714 = vsyncpa [#allocation10], 1 }

</bundles_post_ra>
